<compile_context>
chip_gen: v7x
topology: tpu7x:2x2x1
jax: 0.10.0
libtpu: 0.0.40
codegen_flags: <defaults>
</compile_context>

<pallas_src>
import jax
import jax.numpy as jnp
from jax.experimental import pallas as pl
from jax.experimental.pallas import tpu as pltpu

H = W = 28
P = H * W                 # 784 spatial positions (lane axis of the conv planes)
C_OUT = 16
K_FLAT = C_OUT * P        # 12544
N_OUT = 128
CG = 8                    # channels per grid step  -> K tile = CG * 784 = 6272
N_STEPS = C_OUT // CG     # 2


# --------------------------- Fused conv + linear kernel ----------------------
def encoder_fused_kernel(patches_ref, cw_ref, cb_ref, w_ref, lb_ref,
                         o_ref, acc_ref):
    # patches_ref: (9, Bp, 784) f32  VMEM  im2col taps (tap = di*3+dj), resident
    # cw_ref:      (16, 9)      f32  SMEM  conv weights
    # cb_ref:      (16, 1)      f32  SMEM  conv bias
    # w_ref:       (CG, 784, 128) bf16 VMEM  FC weight tile for this channel group
    # lb_ref:      (1, 128)     f32  VMEM  FC bias
    # o_ref:       (Bp, 128)    f32  output
    # acc_ref:     (Bp, 128)    f32  scratch accumulator
    g = pl.program_id(0)

    @pl.when(g == 0)
    def _():
        acc_ref[...] = jnp.zeros_like(acc_ref)

    acc = acc_ref[...]
    for cl in range(CG):                       # static unroll: channels in group
        c = g * CG + cl                        # global channel index
        # 3x3 conv for channel c over the whole padded batch, (Bp, 784) layout.
        conv = cw_ref[c, 0] * patches_ref[0]
        for t in range(1, 9):
            conv = conv + cw_ref[c, t] * patches_ref[t]
        act_c = jnp.maximum(conv + cb_ref[c, 0], 0.0).astype(jnp.bfloat16)
        # FC partial product for this channel: (Bp,784) @ (784,128) on the MXU.
        acc = acc + jnp.dot(act_c, w_ref[cl], preferred_element_type=jnp.float32)
    acc_ref[...] = acc

    @pl.when(g == N_STEPS - 1)
    def _():
        o_ref[...] = jnp.maximum(acc_ref[...] + lb_ref[...], 0.0).astype(o_ref.dtype)


# ----------------------------- Wrapper ---------------------------------------
def encoder_forward(x, conv_w, conv_b, lin_w, lin_b):
    """x: (B, 1, 28, 28) float32.  Returns (B, 128) float32."""
    B = x.shape[0]
    Bp = max(8, -(-B // 8) * 8)                                 # pad batch to 8k

    # glue (plain JAX): spatial pad, batch pad, im2col taps, weight re-layout.
    xp = jnp.pad(x[:, 0], ((0, Bp - B), (1, 1), (1, 1)))        # (Bp, 30, 30)
    patches = jnp.stack(
        [xp[:, di:di + H, dj:dj + W].reshape(Bp, P)
         for di in range(3) for dj in range(3)], axis=0)        # (9, Bp, 784)

    cw9 = conv_w[:, 0].reshape(C_OUT, 9)                        # (16, 9)
    cb = conv_b.reshape(C_OUT, 1)                               # (16, 1)
    # PyTorch Flatten on NCHW is channel-major: lin_w.T rows are already grouped
    # by channel, so (16, 784, 128) slices align with the per-channel conv planes.
    wt = lin_w.T.reshape(C_OUT, P, N_OUT).astype(jnp.bfloat16)  # (16, 784, 128)
    lb = lin_b.reshape(1, N_OUT)                                # (1, 128)

    out = pl.pallas_call(
        encoder_fused_kernel,
        out_shape=jax.ShapeDtypeStruct((Bp, N_OUT), jnp.float32),
        grid_spec=pltpu.PrefetchScalarGridSpec(
            num_scalar_prefetch=0,
            grid=(N_STEPS,),
            in_specs=[
                pl.BlockSpec((9, Bp, P), lambda g: (0, 0, 0)),        # im2col taps
                pl.BlockSpec(memory_space=pltpu.MemorySpace.SMEM),    # conv weight
                pl.BlockSpec(memory_space=pltpu.MemorySpace.SMEM),    # conv bias
                pl.BlockSpec((CG, P, N_OUT), lambda g: (g, 0, 0)),    # FC weight tile
                pl.BlockSpec((1, N_OUT), lambda g: (0, 0)),           # FC bias
            ],
            out_specs=pl.BlockSpec((Bp, N_OUT), lambda g: (0, 0)),
            scratch_shapes=[pltpu.VMEM((Bp, N_OUT), jnp.float32)],
        ),
        compiler_params=pltpu.CompilerParams(
            dimension_semantics=("arbitrary",)),
    )(patches, cw9, cb, wt, lb)

    return out[:B]


# ----------------------------- Pure-JAX reference (f32) ----------------------
def encoder_ref(x, conv_w, conv_b, lin_w, lin_b):
    y = jax.lax.conv_general_dilated(
        x, conv_w, window_strides=(1, 1), padding=((1, 1), (1, 1)),
        dimension_numbers=("NCHW", "OIHW", "NCHW"))
    y = jnp.maximum(y + conv_b[None, :, None, None], 0.0)
    f = y.reshape(x.shape[0], -1)
    z = jnp.maximum(f @ lin_w.T + lin_b, 0.0)
    return z


if __name__ == "__main__":
    # deterministic parameter init (synthetic, same shapes as the nn.Module)
    kp = jax.random.PRNGKey(42)
    k1, k2, k3, k4 = jax.random.split(kp, 4)
    conv_w = jax.random.normal(k1, (C_OUT, 1, 3, 3), jnp.float32) * 0.2
    conv_b = jax.random.normal(k2, (C_OUT,), jnp.float32) * 0.05
    lin_w = jax.random.normal(k3, (N_OUT, K_FLAT), jnp.float32) * 0.01
    lin_b = jax.random.normal(k4, (N_OUT,), jnp.float32) * 0.05

    # deterministic example input: batch=2, NCHW (1, 28, 28) as implied by lin1
    kx = jax.random.PRNGKey(0)
    x = jax.random.normal(kx, (2, 1, 28, 28), jnp.float32)

    out = encoder_forward(x, conv_w, conv_b, lin_w, lin_b)
    out = jax.block_until_ready(out)

    ref = encoder_ref(x, conv_w, conv_b, lin_w, lin_b)
    assert out.shape == (2, 128), out.shape
    # tolerance loosened (vs f32 reference) because the FC weight/activation are
    # streamed through the MXU in bfloat16 with f32 accumulation.
    assert jnp.allclose(out, ref, rtol=2e-2, atol=2e-2), float(
        jnp.max(jnp.abs(out - ref)))

    print("KERNEL_OK")
</pallas_src>

<mosaic_0001>
module attributes {stable_mosaic.version = 11 : i64} {
  func.func @encoder_fused_kernel(%arg0: i32, %arg1: memref<9x8x784xf32, #tpu.memory_space<vmem>>, %arg2: memref<16x9xf32, #tpu.memory_space<smem>>, %arg3: memref<16x1xf32, #tpu.memory_space<smem>>, %arg4: memref<8x784x128xbf16, #tpu.memory_space<vmem>>, %arg5: memref<1x128xf32, #tpu.memory_space<vmem>>, %arg6: memref<8x128xf32, #tpu.memory_space<vmem>>, %arg7: memref<8x128xf32, #tpu.memory_space<vmem>>) attributes {dimension_semantics = [#tpu.dimension_semantics<arbitrary>], iteration_bounds = array<i64: 2>, scalar_prefetch = 0 : i64, scratch_operands = 1 : i64, tpu.core_type = #tpu.core_type<tc>, window_params = [{pipeline_mode = #tpu.pipeline_mode<synchronous>, transform_indices = @transform_0, window_bounds = array<i64: 9, 8, 784>}, {transform_indices = @transform_1, window_bounds = array<i64: 16, 9>}, {transform_indices = @transform_2, window_bounds = array<i64: 16, 1>}, {transform_indices = @transform_3, window_bounds = array<i64: 8, 784, 128>}, {pipeline_mode = #tpu.pipeline_mode<synchronous>, transform_indices = @transform_4, window_bounds = array<i64: 1, 128>}, {pipeline_mode = #tpu.pipeline_mode<synchronous>, transform_indices = @transform_5, window_bounds = array<i64: 8, 128>}]} {
    %c0_i32 = arith.constant 0 : i32
    %0 = arith.cmpi eq, %arg0, %c0_i32 : i32
    %1 = arith.extui %0 : i1 to i32
    %c0_i32_0 = arith.constant 0 : i32
    %2 = arith.cmpi ne, %1, %c0_i32_0 : i32
    scf.if %2 {
      %cst_341 = arith.constant 0.000000e+00 : f32
      %608 = vector.broadcast %cst_341 : f32 to vector<8x128xf32>
      %c0_342 = arith.constant 0 : index
      %c0_343 = arith.constant 0 : index
      %609 = vector.load %arg7[%c0_342, %c0_343] : memref<8x128xf32, #tpu.memory_space<vmem>>, vector<8x128xf32>
      tpu.vector_store %arg7[%c0_342, %c0_343], %608 {strides = array<i32>} : memref<8x128xf32, #tpu.memory_space<vmem>>, vector<8x128xf32>,
    } else {
    }
    %c0 = arith.constant 0 : index
    %c0_1 = arith.constant 0 : index
    %3 = vector.load %arg7[%c0, %c0_1] : memref<8x128xf32, #tpu.memory_space<vmem>>, vector<8x128xf32>
    %c8_i32 = arith.constant 8 : i32
    %4 = arith.muli %arg0, %c8_i32 : i32
    %c0_i32_2 = arith.constant 0 : i32
    %5 = arith.addi %4, %c0_i32_2 : i32
    %6 = arith.index_cast %5 : i32 to index
    %c0_3 = arith.constant 0 : index
    %7 = memref.load %arg2[%6, %c0_3] : memref<16x9xf32, #tpu.memory_space<smem>>
    %c0_4 = arith.constant 0 : index
    %c0_5 = arith.constant 0 : index
    %c0_6 = arith.constant 0 : index
    %8 = vector.load %arg1[%c0_4, %c0_5, %c0_6] : memref<9x8x784xf32, #tpu.memory_space<vmem>>, vector<1x8x784xf32>
    %9 = vector.shape_cast %8 : vector<1x8x784xf32> to vector<8x784xf32>
    %10 = vector.broadcast %7 : f32 to vector<8x784xf32>
    %11 = arith.mulf %10, %9 : vector<8x784xf32>
    %12 = arith.index_cast %5 : i32 to index
    %c1 = arith.constant 1 : index
    %13 = memref.load %arg2[%12, %c1] : memref<16x9xf32, #tpu.memory_space<smem>>
    %c1_7 = arith.constant 1 : index
    %c0_8 = arith.constant 0 : index
    %c0_9 = arith.constant 0 : index
    %14 = vector.load %arg1[%c1_7, %c0_8, %c0_9] : memref<9x8x784xf32, #tpu.memory_space<vmem>>, vector<1x8x784xf32>
    %15 = vector.shape_cast %14 : vector<1x8x784xf32> to vector<8x784xf32>
    %16 = vector.broadcast %13 : f32 to vector<8x784xf32>
    %17 = arith.mulf %16, %15 : vector<8x784xf32>
    %18 = arith.addf %11, %17 : vector<8x784xf32>
    %19 = arith.index_cast %5 : i32 to index
    %c2 = arith.constant 2 : index
    %20 = memref.load %arg2[%19, %c2] : memref<16x9xf32, #tpu.memory_space<smem>>
    %c2_10 = arith.constant 2 : index
    %c0_11 = arith.constant 0 : index
    %c0_12 = arith.constant 0 : index
    %21 = vector.load %arg1[%c2_10, %c0_11, %c0_12] : memref<9x8x784xf32, #tpu.memory_space<vmem>>, vector<1x8x784xf32>
    %22 = vector.shape_cast %21 : vector<1x8x784xf32> to vector<8x784xf32>
    %23 = vector.broadcast %20 : f32 to vector<8x784xf32>
    %24 = arith.mulf %23, %22 : vector<8x784xf32>
    %25 = arith.addf %18, %24 : vector<8x784xf32>
    %26 = arith.index_cast %5 : i32 to index
    %c3 = arith.constant 3 : index
    %27 = memref.load %arg2[%26, %c3] : memref<16x9xf32, #tpu.memory_space<smem>>
    %c3_13 = arith.constant 3 : index
    %c0_14 = arith.constant 0 : index
    %c0_15 = arith.constant 0 : index
    %28 = vector.load %arg1[%c3_13, %c0_14, %c0_15] : memref<9x8x784xf32, #tpu.memory_space<vmem>>, vector<1x8x784xf32>
    %29 = vector.shape_cast %28 : vector<1x8x784xf32> to vector<8x784xf32>
    %30 = vector.broadcast %27 : f32 to vector<8x784xf32>
    %31 = arith.mulf %30, %29 : vector<8x784xf32>
    %32 = arith.addf %25, %31 : vector<8x784xf32>
    %33 = arith.index_cast %5 : i32 to index
    %c4 = arith.constant 4 : index
    %34 = memref.load %arg2[%33, %c4] : memref<16x9xf32, #tpu.memory_space<smem>>
    %c4_16 = arith.constant 4 : index
    %c0_17 = arith.constant 0 : index
    %c0_18 = arith.constant 0 : index
    %35 = vector.load %arg1[%c4_16, %c0_17, %c0_18] : memref<9x8x784xf32, #tpu.memory_space<vmem>>, vector<1x8x784xf32>
    %36 = vector.shape_cast %35 : vector<1x8x784xf32> to vector<8x784xf32>
    %37 = vector.broadcast %34 : f32 to vector<8x784xf32>
    %38 = arith.mulf %37, %36 : vector<8x784xf32>
    %39 = arith.addf %32, %38 : vector<8x784xf32>
    %40 = arith.index_cast %5 : i32 to index
    %c5 = arith.constant 5 : index
    %41 = memref.load %arg2[%40, %c5] : memref<16x9xf32, #tpu.memory_space<smem>>
    %c5_19 = arith.constant 5 : index
    %c0_20 = arith.constant 0 : index
    %c0_21 = arith.constant 0 : index
    %42 = vector.load %arg1[%c5_19, %c0_20, %c0_21] : memref<9x8x784xf32, #tpu.memory_space<vmem>>, vector<1x8x784xf32>
    %43 = vector.shape_cast %42 : vector<1x8x784xf32> to vector<8x784xf32>
    %44 = vector.broadcast %41 : f32 to vector<8x784xf32>
    %45 = arith.mulf %44, %43 : vector<8x784xf32>
    %46 = arith.addf %39, %45 : vector<8x784xf32>
    %47 = arith.index_cast %5 : i32 to index
    %c6 = arith.constant 6 : index
    %48 = memref.load %arg2[%47, %c6] : memref<16x9xf32, #tpu.memory_space<smem>>
    %c6_22 = arith.constant 6 : index
    %c0_23 = arith.constant 0 : index
    %c0_24 = arith.constant 0 : index
    %49 = vector.load %arg1[%c6_22, %c0_23, %c0_24] : memref<9x8x784xf32, #tpu.memory_space<vmem>>, vector<1x8x784xf32>
    %50 = vector.shape_cast %49 : vector<1x8x784xf32> to vector<8x784xf32>
    %51 = vector.broadcast %48 : f32 to vector<8x784xf32>
    %52 = arith.mulf %51, %50 : vector<8x784xf32>
    %53 = arith.addf %46, %52 : vector<8x784xf32>
    %54 = arith.index_cast %5 : i32 to index
    %c7 = arith.constant 7 : index
    %55 = memref.load %arg2[%54, %c7] : memref<16x9xf32, #tpu.memory_space<smem>>
    %c7_25 = arith.constant 7 : index
    %c0_26 = arith.constant 0 : index
    %c0_27 = arith.constant 0 : index
    %56 = vector.load %arg1[%c7_25, %c0_26, %c0_27] : memref<9x8x784xf32, #tpu.memory_space<vmem>>, vector<1x8x784xf32>
    %57 = vector.shape_cast %56 : vector<1x8x784xf32> to vector<8x784xf32>
    %58 = vector.broadcast %55 : f32 to vector<8x784xf32>
    %59 = arith.mulf %58, %57 : vector<8x784xf32>
    %60 = arith.addf %53, %59 : vector<8x784xf32>
    %61 = arith.index_cast %5 : i32 to index
    %c8 = arith.constant 8 : index
    %62 = memref.load %arg2[%61, %c8] : memref<16x9xf32, #tpu.memory_space<smem>>
    %c8_28 = arith.constant 8 : index
    %c0_29 = arith.constant 0 : index
    %c0_30 = arith.constant 0 : index
    %63 = vector.load %arg1[%c8_28, %c0_29, %c0_30] : memref<9x8x784xf32, #tpu.memory_space<vmem>>, vector<1x8x784xf32>
    %64 = vector.shape_cast %63 : vector<1x8x784xf32> to vector<8x784xf32>
    %65 = vector.broadcast %62 : f32 to vector<8x784xf32>
    %66 = arith.mulf %65, %64 : vector<8x784xf32>
    %67 = arith.addf %60, %66 : vector<8x784xf32>
    %68 = arith.index_cast %5 : i32 to index
    %c0_31 = arith.constant 0 : index
    %69 = memref.load %arg3[%68, %c0_31] : memref<16x1xf32, #tpu.memory_space<smem>>
    %70 = vector.broadcast %69 : f32 to vector<8x784xf32>
    %71 = arith.addf %67, %70 : vector<8x784xf32>
    %cst = arith.constant 0.000000e+00 : f32
    %72 = vector.broadcast %cst : f32 to vector<8x784xf32>
    %73 = arith.maximumf %71, %72 : vector<8x784xf32>
    %74 = arith.truncf %73 : vector<8x784xf32> to vector<8x784xbf16>
    %c0_32 = arith.constant 0 : index
    %c0_33 = arith.constant 0 : index
    %c0_34 = arith.constant 0 : index
    %75 = vector.load %arg4[%c0_32, %c0_33, %c0_34] : memref<8x784x128xbf16, #tpu.memory_space<vmem>>, vector<1x784x128xbf16>
    %76 = vector.shape_cast %75 : vector<1x784x128xbf16> to vector<784x128xbf16>
    %cst_35 = arith.constant dense<0.000000e+00> : vector<8x128xf32>
    %77 = tpu.matmul %74, %76, %cst_35 {dimension_numbers = #tpu.dot_dimension_numbers<[1], [0], [0], [1], [0, 0, 1, 1], [], []>} : vector<8x784xbf16>, vector<784x128xbf16>, vector<8x128xf32> -> vector<8x128xf32>
    %78 = arith.addf %3, %77 : vector<8x128xf32>
    %c8_i32_36 = arith.constant 8 : i32
    %79 = arith.muli %arg0, %c8_i32_36 : i32
    %c1_i32 = arith.constant 1 : i32
    %80 = arith.addi %79, %c1_i32 : i32
    %81 = arith.index_cast %80 : i32 to index
    %c0_37 = arith.constant 0 : index
    %82 = memref.load %arg2[%81, %c0_37] : memref<16x9xf32, #tpu.memory_space<smem>>
    %c0_38 = arith.constant 0 : index
    %c0_39 = arith.constant 0 : index
    %c0_40 = arith.constant 0 : index
    %83 = vector.load %arg1[%c0_38, %c0_39, %c0_40] : memref<9x8x784xf32, #tpu.memory_space<vmem>>, vector<1x8x784xf32>
    %84 = vector.shape_cast %83 : vector<1x8x784xf32> to vector<8x784xf32>
    %85 = vector.broadcast %82 : f32 to vector<8x784xf32>
    %86 = arith.mulf %85, %84 : vector<8x784xf32>
    %87 = arith.index_cast %80 : i32 to index
    %c1_41 = arith.constant 1 : index
    %88 = memref.load %arg2[%87, %c1_41] : memref<16x9xf32, #tpu.memory_space<smem>>
    %c1_42 = arith.constant 1 : index
    %c0_43 = arith.constant 0 : index
    %c0_44 = arith.constant 0 : index
    %89 = vector.load %arg1[%c1_42, %c0_43, %c0_44] : memref<9x8x784xf32, #tpu.memory_space<vmem>>, vector<1x8x784xf32>
    %90 = vector.shape_cast %89 : vector<1x8x784xf32> to vector<8x784xf32>
    %91 = vector.broadcast %88 : f32 to vector<8x784xf32>
    %92 = arith.mulf %91, %90 : vector<8x784xf32>
    %93 = arith.addf %86, %92 : vector<8x784xf32>
    %94 = arith.index_cast %80 : i32 to index
    %c2_45 = arith.constant 2 : index
    %95 = memref.load %arg2[%94, %c2_45] : memref<16x9xf32, #tpu.memory_space<smem>>
    %c2_46 = arith.constant 2 : index
    %c0_47 = arith.constant 0 : index
    %c0_48 = arith.constant 0 : index
    %96 = vector.load %arg1[%c2_46, %c0_47, %c0_48] : memref<9x8x784xf32, #tpu.memory_space<vmem>>, vector<1x8x784xf32>
    %97 = vector.shape_cast %96 : vector<1x8x784xf32> to vector<8x784xf32>
    %98 = vector.broadcast %95 : f32 to vector<8x784xf32>
    %99 = arith.mulf %98, %97 : vector<8x784xf32>
    %100 = arith.addf %93, %99 : vector<8x784xf32>
    %101 = arith.index_cast %80 : i32 to index
    %c3_49 = arith.constant 3 : index
    %102 = memref.load %arg2[%101, %c3_49] : memref<16x9xf32, #tpu.memory_space<smem>>
    %c3_50 = arith.constant 3 : index
    %c0_51 = arith.constant 0 : index
    %c0_52 = arith.constant 0 : index
    %103 = vector.load %arg1[%c3_50, %c0_51, %c0_52] : memref<9x8x784xf32, #tpu.memory_space<vmem>>, vector<1x8x784xf32>
    %104 = vector.shape_cast %103 : vector<1x8x784xf32> to vector<8x784xf32>
    %105 = vector.broadcast %102 : f32 to vector<8x784xf32>
    %106 = arith.mulf %105, %104 : vector<8x784xf32>
    %107 = arith.addf %100, %106 : vector<8x784xf32>
    %108 = arith.index_cast %80 : i32 to index
    %c4_53 = arith.constant 4 : index
    %109 = memref.load %arg2[%108, %c4_53] : memref<16x9xf32, #tpu.memory_space<smem>>
    %c4_54 = arith.constant 4 : index
    %c0_55 = arith.constant 0 : index
    %c0_56 = arith.constant 0 : index
    %110 = vector.load %arg1[%c4_54, %c0_55, %c0_56] : memref<9x8x784xf32, #tpu.memory_space<vmem>>, vector<1x8x784xf32>
    %111 = vector.shape_cast %110 : vector<1x8x784xf32> to vector<8x784xf32>
    %112 = vector.broadcast %109 : f32 to vector<8x784xf32>
    %113 = arith.mulf %112, %111 : vector<8x784xf32>
    %114 = arith.addf %107, %113 : vector<8x784xf32>
    %115 = arith.index_cast %80 : i32 to index
    %c5_57 = arith.constant 5 : index
    %116 = memref.load %arg2[%115, %c5_57] : memref<16x9xf32, #tpu.memory_space<smem>>
    %c5_58 = arith.constant 5 : index
    %c0_59 = arith.constant 0 : index
    %c0_60 = arith.constant 0 : index
    %117 = vector.load %arg1[%c5_58, %c0_59, %c0_60] : memref<9x8x784xf32, #tpu.memory_space<vmem>>, vector<1x8x784xf32>
    %118 = vector.shape_cast %117 : vector<1x8x784xf32> to vector<8x784xf32>
    %119 = vector.broadcast %116 : f32 to vector<8x784xf32>
    %120 = arith.mulf %119, %118 : vector<8x784xf32>
    %121 = arith.addf %114, %120 : vector<8x784xf32>
    %122 = arith.index_cast %80 : i32 to index
    %c6_61 = arith.constant 6 : index
    %123 = memref.load %arg2[%122, %c6_61] : memref<16x9xf32, #tpu.memory_space<smem>>
    %c6_62 = arith.constant 6 : index
    %c0_63 = arith.constant 0 : index
    %c0_64 = arith.constant 0 : index
    %124 = vector.load %arg1[%c6_62, %c0_63, %c0_64] : memref<9x8x784xf32, #tpu.memory_space<vmem>>, vector<1x8x784xf32>
    %125 = vector.shape_cast %124 : vector<1x8x784xf32> to vector<8x784xf32>
    %126 = vector.broadcast %123 : f32 to vector<8x784xf32>
    %127 = arith.mulf %126, %125 : vector<8x784xf32>
    %128 = arith.addf %121, %127 : vector<8x784xf32>
    %129 = arith.index_cast %80 : i32 to index
    %c7_65 = arith.constant 7 : index
    %130 = memref.load %arg2[%129, %c7_65] : memref<16x9xf32, #tpu.memory_space<smem>>
    %c7_66 = arith.constant 7 : index
    %c0_67 = arith.constant 0 : index
    %c0_68 = arith.constant 0 : index
    %131 = vector.load %arg1[%c7_66, %c0_67, %c0_68] : memref<9x8x784xf32, #tpu.memory_space<vmem>>, vector<1x8x784xf32>
    %132 = vector.shape_cast %131 : vector<1x8x784xf32> to vector<8x784xf32>
    %133 = vector.broadcast %130 : f32 to vector<8x784xf32>
    %134 = arith.mulf %133, %132 : vector<8x784xf32>
    %135 = arith.addf %128, %134 : vector<8x784xf32>
    %136 = arith.index_cast %80 : i32 to index
    %c8_69 = arith.constant 8 : index
    %137 = memref.load %arg2[%136, %c8_69] : memref<16x9xf32, #tpu.memory_space<smem>>
    %c8_70 = arith.constant 8 : index
    %c0_71 = arith.constant 0 : index
    %c0_72 = arith.constant 0 : index
    %138 = vector.load %arg1[%c8_70, %c0_71, %c0_72] : memref<9x8x784xf32, #tpu.memory_space<vmem>>, vector<1x8x784xf32>
    %139 = vector.shape_cast %138 : vector<1x8x784xf32> to vector<8x784xf32>
    %140 = vector.broadcast %137 : f32 to vector<8x784xf32>
    %141 = arith.mulf %140, %139 : vector<8x784xf32>
    %142 = arith.addf %135, %141 : vector<8x784xf32>
    %143 = arith.index_cast %80 : i32 to index
    %c0_73 = arith.constant 0 : index
    %144 = memref.load %arg3[%143, %c0_73] : memref<16x1xf32, #tpu.memory_space<smem>>
    %145 = vector.broadcast %144 : f32 to vector<8x784xf32>
    %146 = arith.addf %142, %145 : vector<8x784xf32>
    %cst_74 = arith.constant 0.000000e+00 : f32
    %147 = vector.broadcast %cst_74 : f32 to vector<8x784xf32>
    %148 = arith.maximumf %146, %147 : vector<8x784xf32>
    %149 = arith.truncf %148 : vector<8x784xf32> to vector<8x784xbf16>
    %c1_75 = arith.constant 1 : index
    %c0_76 = arith.constant 0 : index
    %c0_77 = arith.constant 0 : index
    %150 = vector.load %arg4[%c1_75, %c0_76, %c0_77] : memref<8x784x128xbf16, #tpu.memory_space<vmem>>, vector<1x784x128xbf16>
    %151 = vector.shape_cast %150 : vector<1x784x128xbf16> to vector<784x128xbf16>
    %cst_78 = arith.constant dense<0.000000e+00> : vector<8x128xf32>
    %152 = tpu.matmul %149, %151, %cst_78 {dimension_numbers = #tpu.dot_dimension_numbers<[1], [0], [0], [1], [0, 0, 1, 1], [], []>} : vector<8x784xbf16>, vector<784x128xbf16>, vector<8x128xf32> -> vector<8x128xf32>
    %153 = arith.addf %78, %152 : vector<8x128xf32>
    %c8_i32_79 = arith.constant 8 : i32
    %154 = arith.muli %arg0, %c8_i32_79 : i32
    %c2_i32 = arith.constant 2 : i32
    %155 = arith.addi %154, %c2_i32 : i32
    %156 = arith.index_cast %155 : i32 to index
    %c0_80 = arith.constant 0 : index
    %157 = memref.load %arg2[%156, %c0_80] : memref<16x9xf32, #tpu.memory_space<smem>>
    %c0_81 = arith.constant 0 : index
    %c0_82 = arith.constant 0 : index
    %c0_83 = arith.constant 0 : index
    %158 = vector.load %arg1[%c0_81, %c0_82, %c0_83] : memref<9x8x784xf32, #tpu.memory_space<vmem>>, vector<1x8x784xf32>
    %159 = vector.shape_cast %158 : vector<1x8x784xf32> to vector<8x784xf32>
    %160 = vector.broadcast %157 : f32 to vector<8x784xf32>
    %161 = arith.mulf %160, %159 : vector<8x784xf32>
    %162 = arith.index_cast %155 : i32 to index
    %c1_84 = arith.constant 1 : index
    %163 = memref.load %arg2[%162, %c1_84] : memref<16x9xf32, #tpu.memory_space<smem>>
    %c1_85 = arith.constant 1 : index
    %c0_86 = arith.constant 0 : index
    %c0_87 = arith.constant 0 : index
    %164 = vector.load %arg1[%c1_85, %c0_86, %c0_87] : memref<9x8x784xf32, #tpu.memory_space<vmem>>, vector<1x8x784xf32>
    %165 = vector.shape_cast %164 : vector<1x8x784xf32> to vector<8x784xf32>
    %166 = vector.broadcast %163 : f32 to vector<8x784xf32>
    %167 = arith.mulf %166, %165 : vector<8x784xf32>
    %168 = arith.addf %161, %167 : vector<8x784xf32>
    %169 = arith.index_cast %155 : i32 to index
    %c2_88 = arith.constant 2 : index
    %170 = memref.load %arg2[%169, %c2_88] : memref<16x9xf32, #tpu.memory_space<smem>>
    %c2_89 = arith.constant 2 : index
    %c0_90 = arith.constant 0 : index
    %c0_91 = arith.constant 0 : index
    %171 = vector.load %arg1[%c2_89, %c0_90, %c0_91] : memref<9x8x784xf32, #tpu.memory_space<vmem>>, vector<1x8x784xf32>
    %172 = vector.shape_cast %171 : vector<1x8x784xf32> to vector<8x784xf32>
    %173 = vector.broadcast %170 : f32 to vector<8x784xf32>
    %174 = arith.mulf %173, %172 : vector<8x784xf32>
    %175 = arith.addf %168, %174 : vector<8x784xf32>
    %176 = arith.index_cast %155 : i32 to index
    %c3_92 = arith.constant 3 : index
    %177 = memref.load %arg2[%176, %c3_92] : memref<16x9xf32, #tpu.memory_space<smem>>
    %c3_93 = arith.constant 3 : index
    %c0_94 = arith.constant 0 : index
    %c0_95 = arith.constant 0 : index
    %178 = vector.load %arg1[%c3_93, %c0_94, %c0_95] : memref<9x8x784xf32, #tpu.memory_space<vmem>>, vector<1x8x784xf32>
    %179 = vector.shape_cast %178 : vector<1x8x784xf32> to vector<8x784xf32>
    %180 = vector.broadcast %177 : f32 to vector<8x784xf32>
    %181 = arith.mulf %180, %179 : vector<8x784xf32>
    %182 = arith.addf %175, %181 : vector<8x784xf32>
    %183 = arith.index_cast %155 : i32 to index
    %c4_96 = arith.constant 4 : index
    %184 = memref.load %arg2[%183, %c4_96] : memref<16x9xf32, #tpu.memory_space<smem>>
    %c4_97 = arith.constant 4 : index
    %c0_98 = arith.constant 0 : index
    %c0_99 = arith.constant 0 : index
    %185 = vector.load %arg1[%c4_97, %c0_98, %c0_99] : memref<9x8x784xf32, #tpu.memory_space<vmem>>, vector<1x8x784xf32>
    %186 = vector.shape_cast %185 : vector<1x8x784xf32> to vector<8x784xf32>
    %187 = vector.broadcast %184 : f32 to vector<8x784xf32>
    %188 = arith.mulf %187, %186 : vector<8x784xf32>
    %189 = arith.addf %182, %188 : vector<8x784xf32>
    %190 = arith.index_cast %155 : i32 to index
    %c5_100 = arith.constant 5 : index
    %191 = memref.load %arg2[%190, %c5_100] : memref<16x9xf32, #tpu.memory_space<smem>>
    %c5_101 = arith.constant 5 : index
    %c0_102 = arith.constant 0 : index
    %c0_103 = arith.constant 0 : index
    %192 = vector.load %arg1[%c5_101, %c0_102, %c0_103] : memref<9x8x784xf32, #tpu.memory_space<vmem>>, vector<1x8x784xf32>
    %193 = vector.shape_cast %192 : vector<1x8x784xf32> to vector<8x784xf32>
    %194 = vector.broadcast %191 : f32 to vector<8x784xf32>
    %195 = arith.mulf %194, %193 : vector<8x784xf32>
    %196 = arith.addf %189, %195 : vector<8x784xf32>
    %197 = arith.index_cast %155 : i32 to index
    %c6_104 = arith.constant 6 : index
    %198 = memref.load %arg2[%197, %c6_104] : memref<16x9xf32, #tpu.memory_space<smem>>
    %c6_105 = arith.constant 6 : index
    %c0_106 = arith.constant 0 : index
    %c0_107 = arith.constant 0 : index
    %199 = vector.load %arg1[%c6_105, %c0_106, %c0_107] : memref<9x8x784xf32, #tpu.memory_space<vmem>>, vector<1x8x784xf32>
    %200 = vector.shape_cast %199 : vector<1x8x784xf32> to vector<8x784xf32>
    %201 = vector.broadcast %198 : f32 to vector<8x784xf32>
    %202 = arith.mulf %201, %200 : vector<8x784xf32>
    %203 = arith.addf %196, %202 : vector<8x784xf32>
    %204 = arith.index_cast %155 : i32 to index
    %c7_108 = arith.constant 7 : index
    %205 = memref.load %arg2[%204, %c7_108] : memref<16x9xf32, #tpu.memory_space<smem>>
    %c7_109 = arith.constant 7 : index
    %c0_110 = arith.constant 0 : index
    %c0_111 = arith.constant 0 : index
    %206 = vector.load %arg1[%c7_109, %c0_110, %c0_111] : memref<9x8x784xf32, #tpu.memory_space<vmem>>, vector<1x8x784xf32>
    %207 = vector.shape_cast %206 : vector<1x8x784xf32> to vector<8x784xf32>
    %208 = vector.broadcast %205 : f32 to vector<8x784xf32>
    %209 = arith.mulf %208, %207 : vector<8x784xf32>
    %210 = arith.addf %203, %209 : vector<8x784xf32>
    %211 = arith.index_cast %155 : i32 to index
    %c8_112 = arith.constant 8 : index
    %212 = memref.load %arg2[%211, %c8_112] : memref<16x9xf32, #tpu.memory_space<smem>>
    %c8_113 = arith.constant 8 : index
    %c0_114 = arith.constant 0 : index
    %c0_115 = arith.constant 0 : index
    %213 = vector.load %arg1[%c8_113, %c0_114, %c0_115] : memref<9x8x784xf32, #tpu.memory_space<vmem>>, vector<1x8x784xf32>
    %214 = vector.shape_cast %213 : vector<1x8x784xf32> to vector<8x784xf32>
    %215 = vector.broadcast %212 : f32 to vector<8x784xf32>
    %216 = arith.mulf %215, %214 : vector<8x784xf32>
    %217 = arith.addf %210, %216 : vector<8x784xf32>
    %218 = arith.index_cast %155 : i32 to index
    %c0_116 = arith.constant 0 : index
    %219 = memref.load %arg3[%218, %c0_116] : memref<16x1xf32, #tpu.memory_space<smem>>
    %220 = vector.broadcast %219 : f32 to vector<8x784xf32>
    %221 = arith.addf %217, %220 : vector<8x784xf32>
    %cst_117 = arith.constant 0.000000e+00 : f32
    %222 = vector.broadcast %cst_117 : f32 to vector<8x784xf32>
    %223 = arith.maximumf %221, %222 : vector<8x784xf32>
    %224 = arith.truncf %223 : vector<8x784xf32> to vector<8x784xbf16>
    %c2_118 = arith.constant 2 : index
    %c0_119 = arith.constant 0 : index
    %c0_120 = arith.constant 0 : index
    %225 = vector.load %arg4[%c2_118, %c0_119, %c0_120] : memref<8x784x128xbf16, #tpu.memory_space<vmem>>, vector<1x784x128xbf16>
    %226 = vector.shape_cast %225 : vector<1x784x128xbf16> to vector<784x128xbf16>
    %cst_121 = arith.constant dense<0.000000e+00> : vector<8x128xf32>
    %227 = tpu.matmul %224, %226, %cst_121 {dimension_numbers = #tpu.dot_dimension_numbers<[1], [0], [0], [1], [0, 0, 1, 1], [], []>} : vector<8x784xbf16>, vector<784x128xbf16>, vector<8x128xf32> -> vector<8x128xf32>
    %228 = arith.addf %153, %227 : vector<8x128xf32>
    %c8_i32_122 = arith.constant 8 : i32
    %229 = arith.muli %arg0, %c8_i32_122 : i32
    %c3_i32 = arith.constant 3 : i32
    %230 = arith.addi %229, %c3_i32 : i32
    %231 = arith.index_cast %230 : i32 to index
    %c0_123 = arith.constant 0 : index
    %232 = memref.load %arg2[%231, %c0_123] : memref<16x9xf32, #tpu.memory_space<smem>>
    %c0_124 = arith.constant 0 : index
    %c0_125 = arith.constant 0 : index
    %c0_126 = arith.constant 0 : index
    %233 = vector.load %arg1[%c0_124, %c0_125, %c0_126] : memref<9x8x784xf32, #tpu.memory_space<vmem>>, vector<1x8x784xf32>
    %234 = vector.shape_cast %233 : vector<1x8x784xf32> to vector<8x784xf32>
    %235 = vector.broadcast %232 : f32 to vector<8x784xf32>
    %236 = arith.mulf %235, %234 : vector<8x784xf32>
    %237 = arith.index_cast %230 : i32 to index
    %c1_127 = arith.constant 1 : index
    %238 = memref.load %arg2[%237, %c1_127] : memref<16x9xf32, #tpu.memory_space<smem>>
    %c1_128 = arith.constant 1 : index
    %c0_129 = arith.constant 0 : index
    %c0_130 = arith.constant 0 : index
    %239 = vector.load %arg1[%c1_128, %c0_129, %c0_130] : memref<9x8x784xf32, #tpu.memory_space<vmem>>, vector<1x8x784xf32>
    %240 = vector.shape_cast %239 : vector<1x8x784xf32> to vector<8x784xf32>
    %241 = vector.broadcast %238 : f32 to vector<8x784xf32>
    %242 = arith.mulf %241, %240 : vector<8x784xf32>
    %243 = arith.addf %236, %242 : vector<8x784xf32>
    %244 = arith.index_cast %230 : i32 to index
    %c2_131 = arith.constant 2 : index
    %245 = memref.load %arg2[%244, %c2_131] : memref<16x9xf32, #tpu.memory_space<smem>>
    %c2_132 = arith.constant 2 : index
    %c0_133 = arith.constant 0 : index
    %c0_134 = arith.constant 0 : index
    %246 = vector.load %arg1[%c2_132, %c0_133, %c0_134] : memref<9x8x784xf32, #tpu.memory_space<vmem>>, vector<1x8x784xf32>
    %247 = vector.shape_cast %246 : vector<1x8x784xf32> to vector<8x784xf32>
    %248 = vector.broadcast %245 : f32 to vector<8x784xf32>
    %249 = arith.mulf %248, %247 : vector<8x784xf32>
    %250 = arith.addf %243, %249 : vector<8x784xf32>
    %251 = arith.index_cast %230 : i32 to index
    %c3_135 = arith.constant 3 : index
    %252 = memref.load %arg2[%251, %c3_135] : memref<16x9xf32, #tpu.memory_space<smem>>
    %c3_136 = arith.constant 3 : index
    %c0_137 = arith.constant 0 : index
    %c0_138 = arith.constant 0 : index
    %253 = vector.load %arg1[%c3_136, %c0_137, %c0_138] : memref<9x8x784xf32, #tpu.memory_space<vmem>>, vector<1x8x784xf32>
    %254 = vector.shape_cast %253 : vector<1x8x784xf32> to vector<8x784xf32>
    %255 = vector.broadcast %252 : f32 to vector<8x784xf32>
    %256 = arith.mulf %255, %254 : vector<8x784xf32>
    %257 = arith.addf %250, %256 : vector<8x784xf32>
    %258 = arith.index_cast %230 : i32 to index
    %c4_139 = arith.constant 4 : index
    %259 = memref.load %arg2[%258, %c4_139] : memref<16x9xf32, #tpu.memory_space<smem>>
    %c4_140 = arith.constant 4 : index
    %c0_141 = arith.constant 0 : index
    %c0_142 = arith.constant 0 : index
    %260 = vector.load %arg1[%c4_140, %c0_141, %c0_142] : memref<9x8x784xf32, #tpu.memory_space<vmem>>, vector<1x8x784xf32>
    %261 = vector.shape_cast %260 : vector<1x8x784xf32> to vector<8x784xf32>
    %262 = vector.broadcast %259 : f32 to vector<8x784xf32>
    %263 = arith.mulf %262, %261 : vector<8x784xf32>
    %264 = arith.addf %257, %263 : vector<8x784xf32>
    %265 = arith.index_cast %230 : i32 to index
    %c5_143 = arith.constant 5 : index
    %266 = memref.load %arg2[%265, %c5_143] : memref<16x9xf32, #tpu.memory_space<smem>>
    %c5_144 = arith.constant 5 : index
    %c0_145 = arith.constant 0 : index
    %c0_146 = arith.constant 0 : index
    %267 = vector.load %arg1[%c5_144, %c0_145, %c0_146] : memref<9x8x784xf32, #tpu.memory_space<vmem>>, vector<1x8x784xf32>
    %268 = vector.shape_cast %267 : vector<1x8x784xf32> to vector<8x784xf32>
    %269 = vector.broadcast %266 : f32 to vector<8x784xf32>
    %270 = arith.mulf %269, %268 : vector<8x784xf32>
    %271 = arith.addf %264, %270 : vector<8x784xf32>
    %272 = arith.index_cast %230 : i32 to index
    %c6_147 = arith.constant 6 : index
    %273 = memref.load %arg2[%272, %c6_147] : memref<16x9xf32, #tpu.memory_space<smem>>
    %c6_148 = arith.constant 6 : index
    %c0_149 = arith.constant 0 : index
    %c0_150 = arith.constant 0 : index
    %274 = vector.load %arg1[%c6_148, %c0_149, %c0_150] : memref<9x8x784xf32, #tpu.memory_space<vmem>>, vector<1x8x784xf32>
    %275 = vector.shape_cast %274 : vector<1x8x784xf32> to vector<8x784xf32>
    %276 = vector.broadcast %273 : f32 to vector<8x784xf32>
    %277 = arith.mulf %276, %275 : vector<8x784xf32>
    %278 = arith.addf %271, %277 : vector<8x784xf32>
    %279 = arith.index_cast %230 : i32 to index
    %c7_151 = arith.constant 7 : index
    %280 = memref.load %arg2[%279, %c7_151] : memref<16x9xf32, #tpu.memory_space<smem>>
    %c7_152 = arith.constant 7 : index
    %c0_153 = arith.constant 0 : index
    %c0_154 = arith.constant 0 : index
    %281 = vector.load %arg1[%c7_152, %c0_153, %c0_154] : memref<9x8x784xf32, #tpu.memory_space<vmem>>, vector<1x8x784xf32>
    %282 = vector.shape_cast %281 : vector<1x8x784xf32> to vector<8x784xf32>
    %283 = vector.broadcast %280 : f32 to vector<8x784xf32>
    %284 = arith.mulf %283, %282 : vector<8x784xf32>
    %285 = arith.addf %278, %284 : vector<8x784xf32>
    %286 = arith.index_cast %230 : i32 to index
    %c8_155 = arith.constant 8 : index
    %287 = memref.load %arg2[%286, %c8_155] : memref<16x9xf32, #tpu.memory_space<smem>>
    %c8_156 = arith.constant 8 : index
    %c0_157 = arith.constant 0 : index
    %c0_158 = arith.constant 0 : index
    %288 = vector.load %arg1[%c8_156, %c0_157, %c0_158] : memref<9x8x784xf32, #tpu.memory_space<vmem>>, vector<1x8x784xf32>
    %289 = vector.shape_cast %288 : vector<1x8x784xf32> to vector<8x784xf32>
    %290 = vector.broadcast %287 : f32 to vector<8x784xf32>
    %291 = arith.mulf %290, %289 : vector<8x784xf32>
    %292 = arith.addf %285, %291 : vector<8x784xf32>
    %293 = arith.index_cast %230 : i32 to index
    %c0_159 = arith.constant 0 : index
    %294 = memref.load %arg3[%293, %c0_159] : memref<16x1xf32, #tpu.memory_space<smem>>
    %295 = vector.broadcast %294 : f32 to vector<8x784xf32>
    %296 = arith.addf %292, %295 : vector<8x784xf32>
    %cst_160 = arith.constant 0.000000e+00 : f32
    %297 = vector.broadcast %cst_160 : f32 to vector<8x784xf32>
    %298 = arith.maximumf %296, %297 : vector<8x784xf32>
    %299 = arith.truncf %298 : vector<8x784xf32> to vector<8x784xbf16>
    %c3_161 = arith.constant 3 : index
    %c0_162 = arith.constant 0 : index
    %c0_163 = arith.constant 0 : index
    %300 = vector.load %arg4[%c3_161, %c0_162, %c0_163] : memref<8x784x128xbf16, #tpu.memory_space<vmem>>, vector<1x784x128xbf16>
    %301 = vector.shape_cast %300 : vector<1x784x128xbf16> to vector<784x128xbf16>
    %cst_164 = arith.constant dense<0.000000e+00> : vector<8x128xf32>
    %302 = tpu.matmul %299, %301, %cst_164 {dimension_numbers = #tpu.dot_dimension_numbers<[1], [0], [0], [1], [0, 0, 1, 1], [], []>} : vector<8x784xbf16>, vector<784x128xbf16>, vector<8x128xf32> -> vector<8x128xf32>
    %303 = arith.addf %228, %302 : vector<8x128xf32>
    %c8_i32_165 = arith.constant 8 : i32
    %304 = arith.muli %arg0, %c8_i32_165 : i32
    %c4_i32 = arith.constant 4 : i32
    %305 = arith.addi %304, %c4_i32 : i32
    %306 = arith.index_cast %305 : i32 to index
    %c0_166 = arith.constant 0 : index
    %307 = memref.load %arg2[%306, %c0_166] : memref<16x9xf32, #tpu.memory_space<smem>>
    %c0_167 = arith.constant 0 : index
    %c0_168 = arith.constant 0 : index
    %c0_169 = arith.constant 0 : index
    %308 = vector.load %arg1[%c0_167, %c0_168, %c0_169] : memref<9x8x784xf32, #tpu.memory_space<vmem>>, vector<1x8x784xf32>
    %309 = vector.shape_cast %308 : vector<1x8x784xf32> to vector<8x784xf32>
    %310 = vector.broadcast %307 : f32 to vector<8x784xf32>
    %311 = arith.mulf %310, %309 : vector<8x784xf32>
    %312 = arith.index_cast %305 : i32 to index
    %c1_170 = arith.constant 1 : index
    %313 = memref.load %arg2[%312, %c1_170] : memref<16x9xf32, #tpu.memory_space<smem>>
    %c1_171 = arith.constant 1 : index
    %c0_172 = arith.constant 0 : index
    %c0_173 = arith.constant 0 : index
    %314 = vector.load %arg1[%c1_171, %c0_172, %c0_173] : memref<9x8x784xf32, #tpu.memory_space<vmem>>, vector<1x8x784xf32>
    %315 = vector.shape_cast %314 : vector<1x8x784xf32> to vector<8x784xf32>
    %316 = vector.broadcast %313 : f32 to vector<8x784xf32>
    %317 = arith.mulf %316, %315 : vector<8x784xf32>
    %318 = arith.addf %311, %317 : vector<8x784xf32>
    %319 = arith.index_cast %305 : i32 to index
    %c2_174 = arith.constant 2 : index
    %320 = memref.load %arg2[%319, %c2_174] : memref<16x9xf32, #tpu.memory_space<smem>>
    %c2_175 = arith.constant 2 : index
    %c0_176 = arith.constant 0 : index
    %c0_177 = arith.constant 0 : index
    %321 = vector.load %arg1[%c2_175, %c0_176, %c0_177] : memref<9x8x784xf32, #tpu.memory_space<vmem>>, vector<1x8x784xf32>
    %322 = vector.shape_cast %321 : vector<1x8x784xf32> to vector<8x784xf32>
    %323 = vector.broadcast %320 : f32 to vector<8x784xf32>
    %324 = arith.mulf %323, %322 : vector<8x784xf32>
    %325 = arith.addf %318, %324 : vector<8x784xf32>
    %326 = arith.index_cast %305 : i32 to index
    %c3_178 = arith.constant 3 : index
    %327 = memref.load %arg2[%326, %c3_178] : memref<16x9xf32, #tpu.memory_space<smem>>
    %c3_179 = arith.constant 3 : index
    %c0_180 = arith.constant 0 : index
    %c0_181 = arith.constant 0 : index
    %328 = vector.load %arg1[%c3_179, %c0_180, %c0_181] : memref<9x8x784xf32, #tpu.memory_space<vmem>>, vector<1x8x784xf32>
    %329 = vector.shape_cast %328 : vector<1x8x784xf32> to vector<8x784xf32>
    %330 = vector.broadcast %327 : f32 to vector<8x784xf32>
    %331 = arith.mulf %330, %329 : vector<8x784xf32>
    %332 = arith.addf %325, %331 : vector<8x784xf32>
    %333 = arith.index_cast %305 : i32 to index
    %c4_182 = arith.constant 4 : index
    %334 = memref.load %arg2[%333, %c4_182] : memref<16x9xf32, #tpu.memory_space<smem>>
    %c4_183 = arith.constant 4 : index
    %c0_184 = arith.constant 0 : index
    %c0_185 = arith.constant 0 : index
    %335 = vector.load %arg1[%c4_183, %c0_184, %c0_185] : memref<9x8x784xf32, #tpu.memory_space<vmem>>, vector<1x8x784xf32>
    %336 = vector.shape_cast %335 : vector<1x8x784xf32> to vector<8x784xf32>
    %337 = vector.broadcast %334 : f32 to vector<8x784xf32>
    %338 = arith.mulf %337, %336 : vector<8x784xf32>
    %339 = arith.addf %332, %338 : vector<8x784xf32>
    %340 = arith.index_cast %305 : i32 to index
    %c5_186 = arith.constant 5 : index
    %341 = memref.load %arg2[%340, %c5_186] : memref<16x9xf32, #tpu.memory_space<smem>>
    %c5_187 = arith.constant 5 : index
    %c0_188 = arith.constant 0 : index
    %c0_189 = arith.constant 0 : index
    %342 = vector.load %arg1[%c5_187, %c0_188, %c0_189] : memref<9x8x784xf32, #tpu.memory_space<vmem>>, vector<1x8x784xf32>
    %343 = vector.shape_cast %342 : vector<1x8x784xf32> to vector<8x784xf32>
    %344 = vector.broadcast %341 : f32 to vector<8x784xf32>
    %345 = arith.mulf %344, %343 : vector<8x784xf32>
    %346 = arith.addf %339, %345 : vector<8x784xf32>
    %347 = arith.index_cast %305 : i32 to index
    %c6_190 = arith.constant 6 : index
    %348 = memref.load %arg2[%347, %c6_190] : memref<16x9xf32, #tpu.memory_space<smem>>
    %c6_191 = arith.constant 6 : index
    %c0_192 = arith.constant 0 : index
    %c0_193 = arith.constant 0 : index
    %349 = vector.load %arg1[%c6_191, %c0_192, %c0_193] : memref<9x8x784xf32, #tpu.memory_space<vmem>>, vector<1x8x784xf32>
    %350 = vector.shape_cast %349 : vector<1x8x784xf32> to vector<8x784xf32>
    %351 = vector.broadcast %348 : f32 to vector<8x784xf32>
    %352 = arith.mulf %351, %350 : vector<8x784xf32>
    %353 = arith.addf %346, %352 : vector<8x784xf32>
    %354 = arith.index_cast %305 : i32 to index
    %c7_194 = arith.constant 7 : index
    %355 = memref.load %arg2[%354, %c7_194] : memref<16x9xf32, #tpu.memory_space<smem>>
    %c7_195 = arith.constant 7 : index
    %c0_196 = arith.constant 0 : index
    %c0_197 = arith.constant 0 : index
    %356 = vector.load %arg1[%c7_195, %c0_196, %c0_197] : memref<9x8x784xf32, #tpu.memory_space<vmem>>, vector<1x8x784xf32>
    %357 = vector.shape_cast %356 : vector<1x8x784xf32> to vector<8x784xf32>
    %358 = vector.broadcast %355 : f32 to vector<8x784xf32>
    %359 = arith.mulf %358, %357 : vector<8x784xf32>
    %360 = arith.addf %353, %359 : vector<8x784xf32>
    %361 = arith.index_cast %305 : i32 to index
    %c8_198 = arith.constant 8 : index
    %362 = memref.load %arg2[%361, %c8_198] : memref<16x9xf32, #tpu.memory_space<smem>>
    %c8_199 = arith.constant 8 : index
    %c0_200 = arith.constant 0 : index
    %c0_201 = arith.constant 0 : index
    %363 = vector.load %arg1[%c8_199, %c0_200, %c0_201] : memref<9x8x784xf32, #tpu.memory_space<vmem>>, vector<1x8x784xf32>
    %364 = vector.shape_cast %363 : vector<1x8x784xf32> to vector<8x784xf32>
    %365 = vector.broadcast %362 : f32 to vector<8x784xf32>
    %366 = arith.mulf %365, %364 : vector<8x784xf32>
    %367 = arith.addf %360, %366 : vector<8x784xf32>
    %368 = arith.index_cast %305 : i32 to index
    %c0_202 = arith.constant 0 : index
    %369 = memref.load %arg3[%368, %c0_202] : memref<16x1xf32, #tpu.memory_space<smem>>
    %370 = vector.broadcast %369 : f32 to vector<8x784xf32>
    %371 = arith.addf %367, %370 : vector<8x784xf32>
    %cst_203 = arith.constant 0.000000e+00 : f32
    %372 = vector.broadcast %cst_203 : f32 to vector<8x784xf32>
    %373 = arith.maximumf %371, %372 : vector<8x784xf32>
    %374 = arith.truncf %373 : vector<8x784xf32> to vector<8x784xbf16>
    %c4_204 = arith.constant 4 : index
    %c0_205 = arith.constant 0 : index
    %c0_206 = arith.constant 0 : index
    %375 = vector.load %arg4[%c4_204, %c0_205, %c0_206] : memref<8x784x128xbf16, #tpu.memory_space<vmem>>, vector<1x784x128xbf16>
    %376 = vector.shape_cast %375 : vector<1x784x128xbf16> to vector<784x128xbf16>
    %cst_207 = arith.constant dense<0.000000e+00> : vector<8x128xf32>
    %377 = tpu.matmul %374, %376, %cst_207 {dimension_numbers = #tpu.dot_dimension_numbers<[1], [0], [0], [1], [0, 0, 1, 1], [], []>} : vector<8x784xbf16>, vector<784x128xbf16>, vector<8x128xf32> -> vector<8x128xf32>
    %378 = arith.addf %303, %377 : vector<8x128xf32>
    %c8_i32_208 = arith.constant 8 : i32
    %379 = arith.muli %arg0, %c8_i32_208 : i32
    %c5_i32 = arith.constant 5 : i32
    %380 = arith.addi %379, %c5_i32 : i32
    %381 = arith.index_cast %380 : i32 to index
    %c0_209 = arith.constant 0 : index
    %382 = memref.load %arg2[%381, %c0_209] : memref<16x9xf32, #tpu.memory_space<smem>>
    %c0_210 = arith.constant 0 : index
    %c0_211 = arith.constant 0 : index
    %c0_212 = arith.constant 0 : index
    %383 = vector.load %arg1[%c0_210, %c0_211, %c0_212] : memref<9x8x784xf32, #tpu.memory_space<vmem>>, vector<1x8x784xf32>
    %384 = vector.shape_cast %383 : vector<1x8x784xf32> to vector<8x784xf32>
    %385 = vector.broadcast %382 : f32 to vector<8x784xf32>
    %386 = arith.mulf %385, %384 : vector<8x784xf32>
    %387 = arith.index_cast %380 : i32 to index
    %c1_213 = arith.constant 1 : index
    %388 = memref.load %arg2[%387, %c1_213] : memref<16x9xf32, #tpu.memory_space<smem>>
    %c1_214 = arith.constant 1 : index
    %c0_215 = arith.constant 0 : index
    %c0_216 = arith.constant 0 : index
    %389 = vector.load %arg1[%c1_214, %c0_215, %c0_216] : memref<9x8x784xf32, #tpu.memory_space<vmem>>, vector<1x8x784xf32>
    %390 = vector.shape_cast %389 : vector<1x8x784xf32> to vector<8x784xf32>
    %391 = vector.broadcast %388 : f32 to vector<8x784xf32>
    %392 = arith.mulf %391, %390 : vector<8x784xf32>
    %393 = arith.addf %386, %392 : vector<8x784xf32>
    %394 = arith.index_cast %380 : i32 to index
    %c2_217 = arith.constant 2 : index
    %395 = memref.load %arg2[%394, %c2_217] : memref<16x9xf32, #tpu.memory_space<smem>>
    %c2_218 = arith.constant 2 : index
    %c0_219 = arith.constant 0 : index
    %c0_220 = arith.constant 0 : index
    %396 = vector.load %arg1[%c2_218, %c0_219, %c0_220] : memref<9x8x784xf32, #tpu.memory_space<vmem>>, vector<1x8x784xf32>
    %397 = vector.shape_cast %396 : vector<1x8x784xf32> to vector<8x784xf32>
    %398 = vector.broadcast %395 : f32 to vector<8x784xf32>
    %399 = arith.mulf %398, %397 : vector<8x784xf32>
    %400 = arith.addf %393, %399 : vector<8x784xf32>
    %401 = arith.index_cast %380 : i32 to index
    %c3_221 = arith.constant 3 : index
    %402 = memref.load %arg2[%401, %c3_221] : memref<16x9xf32, #tpu.memory_space<smem>>
    %c3_222 = arith.constant 3 : index
    %c0_223 = arith.constant 0 : index
    %c0_224 = arith.constant 0 : index
    %403 = vector.load %arg1[%c3_222, %c0_223, %c0_224] : memref<9x8x784xf32, #tpu.memory_space<vmem>>, vector<1x8x784xf32>
    %404 = vector.shape_cast %403 : vector<1x8x784xf32> to vector<8x784xf32>
    %405 = vector.broadcast %402 : f32 to vector<8x784xf32>
    %406 = arith.mulf %405, %404 : vector<8x784xf32>
    %407 = arith.addf %400, %406 : vector<8x784xf32>
    %408 = arith.index_cast %380 : i32 to index
    %c4_225 = arith.constant 4 : index
    %409 = memref.load %arg2[%408, %c4_225] : memref<16x9xf32, #tpu.memory_space<smem>>
    %c4_226 = arith.constant 4 : index
    %c0_227 = arith.constant 0 : index
    %c0_228 = arith.constant 0 : index
    %410 = vector.load %arg1[%c4_226, %c0_227, %c0_228] : memref<9x8x784xf32, #tpu.memory_space<vmem>>, vector<1x8x784xf32>
    %411 = vector.shape_cast %410 : vector<1x8x784xf32> to vector<8x784xf32>
    %412 = vector.broadcast %409 : f32 to vector<8x784xf32>
    %413 = arith.mulf %412, %411 : vector<8x784xf32>
    %414 = arith.addf %407, %413 : vector<8x784xf32>
    %415 = arith.index_cast %380 : i32 to index
    %c5_229 = arith.constant 5 : index
    %416 = memref.load %arg2[%415, %c5_229] : memref<16x9xf32, #tpu.memory_space<smem>>
    %c5_230 = arith.constant 5 : index
    %c0_231 = arith.constant 0 : index
    %c0_232 = arith.constant 0 : index
    %417 = vector.load %arg1[%c5_230, %c0_231, %c0_232] : memref<9x8x784xf32, #tpu.memory_space<vmem>>, vector<1x8x784xf32>
    %418 = vector.shape_cast %417 : vector<1x8x784xf32> to vector<8x784xf32>
    %419 = vector.broadcast %416 : f32 to vector<8x784xf32>
    %420 = arith.mulf %419, %418 : vector<8x784xf32>
    %421 = arith.addf %414, %420 : vector<8x784xf32>
    %422 = arith.index_cast %380 : i32 to index
    %c6_233 = arith.constant 6 : index
    %423 = memref.load %arg2[%422, %c6_233] : memref<16x9xf32, #tpu.memory_space<smem>>
    %c6_234 = arith.constant 6 : index
    %c0_235 = arith.constant 0 : index
    %c0_236 = arith.constant 0 : index
    %424 = vector.load %arg1[%c6_234, %c0_235, %c0_236] : memref<9x8x784xf32, #tpu.memory_space<vmem>>, vector<1x8x784xf32>
    %425 = vector.shape_cast %424 : vector<1x8x784xf32> to vector<8x784xf32>
    %426 = vector.broadcast %423 : f32 to vector<8x784xf32>
    %427 = arith.mulf %426, %425 : vector<8x784xf32>
    %428 = arith.addf %421, %427 : vector<8x784xf32>
    %429 = arith.index_cast %380 : i32 to index
    %c7_237 = arith.constant 7 : index
    %430 = memref.load %arg2[%429, %c7_237] : memref<16x9xf32, #tpu.memory_space<smem>>
    %c7_238 = arith.constant 7 : index
    %c0_239 = arith.constant 0 : index
    %c0_240 = arith.constant 0 : index
    %431 = vector.load %arg1[%c7_238, %c0_239, %c0_240] : memref<9x8x784xf32, #tpu.memory_space<vmem>>, vector<1x8x784xf32>
    %432 = vector.shape_cast %431 : vector<1x8x784xf32> to vector<8x784xf32>
    %433 = vector.broadcast %430 : f32 to vector<8x784xf32>
    %434 = arith.mulf %433, %432 : vector<8x784xf32>
    %435 = arith.addf %428, %434 : vector<8x784xf32>
    %436 = arith.index_cast %380 : i32 to index
    %c8_241 = arith.constant 8 : index
    %437 = memref.load %arg2[%436, %c8_241] : memref<16x9xf32, #tpu.memory_space<smem>>
    %c8_242 = arith.constant 8 : index
    %c0_243 = arith.constant 0 : index
    %c0_244 = arith.constant 0 : index
    %438 = vector.load %arg1[%c8_242, %c0_243, %c0_244] : memref<9x8x784xf32, #tpu.memory_space<vmem>>, vector<1x8x784xf32>
    %439 = vector.shape_cast %438 : vector<1x8x784xf32> to vector<8x784xf32>
    %440 = vector.broadcast %437 : f32 to vector<8x784xf32>
    %441 = arith.mulf %440, %439 : vector<8x784xf32>
    %442 = arith.addf %435, %441 : vector<8x784xf32>
    %443 = arith.index_cast %380 : i32 to index
    %c0_245 = arith.constant 0 : index
    %444 = memref.load %arg3[%443, %c0_245] : memref<16x1xf32, #tpu.memory_space<smem>>
    %445 = vector.broadcast %444 : f32 to vector<8x784xf32>
    %446 = arith.addf %442, %445 : vector<8x784xf32>
    %cst_246 = arith.constant 0.000000e+00 : f32
    %447 = vector.broadcast %cst_246 : f32 to vector<8x784xf32>
    %448 = arith.maximumf %446, %447 : vector<8x784xf32>
    %449 = arith.truncf %448 : vector<8x784xf32> to vector<8x784xbf16>
    %c5_247 = arith.constant 5 : index
    %c0_248 = arith.constant 0 : index
    %c0_249 = arith.constant 0 : index
    %450 = vector.load %arg4[%c5_247, %c0_248, %c0_249] : memref<8x784x128xbf16, #tpu.memory_space<vmem>>, vector<1x784x128xbf16>
    %451 = vector.shape_cast %450 : vector<1x784x128xbf16> to vector<784x128xbf16>
    %cst_250 = arith.constant dense<0.000000e+00> : vector<8x128xf32>
    %452 = tpu.matmul %449, %451, %cst_250 {dimension_numbers = #tpu.dot_dimension_numbers<[1], [0], [0], [1], [0, 0, 1, 1], [], []>} : vector<8x784xbf16>, vector<784x128xbf16>, vector<8x128xf32> -> vector<8x128xf32>
    %453 = arith.addf %378, %452 : vector<8x128xf32>
    %c8_i32_251 = arith.constant 8 : i32
    %454 = arith.muli %arg0, %c8_i32_251 : i32
    %c6_i32 = arith.constant 6 : i32
    %455 = arith.addi %454, %c6_i32 : i32
    %456 = arith.index_cast %455 : i32 to index
    %c0_252 = arith.constant 0 : index
    %457 = memref.load %arg2[%456, %c0_252] : memref<16x9xf32, #tpu.memory_space<smem>>
    %c0_253 = arith.constant 0 : index
    %c0_254 = arith.constant 0 : index
    %c0_255 = arith.constant 0 : index
    %458 = vector.load %arg1[%c0_253, %c0_254, %c0_255] : memref<9x8x784xf32, #tpu.memory_space<vmem>>, vector<1x8x784xf32>
    %459 = vector.shape_cast %458 : vector<1x8x784xf32> to vector<8x784xf32>
    %460 = vector.broadcast %457 : f32 to vector<8x784xf32>
    %461 = arith.mulf %460, %459 : vector<8x784xf32>
    %462 = arith.index_cast %455 : i32 to index
    %c1_256 = arith.constant 1 : index
    %463 = memref.load %arg2[%462, %c1_256] : memref<16x9xf32, #tpu.memory_space<smem>>
    %c1_257 = arith.constant 1 : index
    %c0_258 = arith.constant 0 : index
    %c0_259 = arith.constant 0 : index
    %464 = vector.load %arg1[%c1_257, %c0_258, %c0_259] : memref<9x8x784xf32, #tpu.memory_space<vmem>>, vector<1x8x784xf32>
    %465 = vector.shape_cast %464 : vector<1x8x784xf32> to vector<8x784xf32>
    %466 = vector.broadcast %463 : f32 to vector<8x784xf32>
    %467 = arith.mulf %466, %465 : vector<8x784xf32>
    %468 = arith.addf %461, %467 : vector<8x784xf32>
    %469 = arith.index_cast %455 : i32 to index
    %c2_260 = arith.constant 2 : index
    %470 = memref.load %arg2[%469, %c2_260] : memref<16x9xf32, #tpu.memory_space<smem>>
    %c2_261 = arith.constant 2 : index
    %c0_262 = arith.constant 0 : index
    %c0_263 = arith.constant 0 : index
    %471 = vector.load %arg1[%c2_261, %c0_262, %c0_263] : memref<9x8x784xf32, #tpu.memory_space<vmem>>, vector<1x8x784xf32>
    %472 = vector.shape_cast %471 : vector<1x8x784xf32> to vector<8x784xf32>
    %473 = vector.broadcast %470 : f32 to vector<8x784xf32>
    %474 = arith.mulf %473, %472 : vector<8x784xf32>
    %475 = arith.addf %468, %474 : vector<8x784xf32>
    %476 = arith.index_cast %455 : i32 to index
    %c3_264 = arith.constant 3 : index
    %477 = memref.load %arg2[%476, %c3_264] : memref<16x9xf32, #tpu.memory_space<smem>>
    %c3_265 = arith.constant 3 : index
    %c0_266 = arith.constant 0 : index
    %c0_267 = arith.constant 0 : index
    %478 = vector.load %arg1[%c3_265, %c0_266, %c0_267] : memref<9x8x784xf32, #tpu.memory_space<vmem>>, vector<1x8x784xf32>
    %479 = vector.shape_cast %478 : vector<1x8x784xf32> to vector<8x784xf32>
    %480 = vector.broadcast %477 : f32 to vector<8x784xf32>
    %481 = arith.mulf %480, %479 : vector<8x784xf32>
    %482 = arith.addf %475, %481 : vector<8x784xf32>
    %483 = arith.index_cast %455 : i32 to index
    %c4_268 = arith.constant 4 : index
    %484 = memref.load %arg2[%483, %c4_268] : memref<16x9xf32, #tpu.memory_space<smem>>
    %c4_269 = arith.constant 4 : index
    %c0_270 = arith.constant 0 : index
    %c0_271 = arith.constant 0 : index
    %485 = vector.load %arg1[%c4_269, %c0_270, %c0_271] : memref<9x8x784xf32, #tpu.memory_space<vmem>>, vector<1x8x784xf32>
    %486 = vector.shape_cast %485 : vector<1x8x784xf32> to vector<8x784xf32>
    %487 = vector.broadcast %484 : f32 to vector<8x784xf32>
    %488 = arith.mulf %487, %486 : vector<8x784xf32>
    %489 = arith.addf %482, %488 : vector<8x784xf32>
    %490 = arith.index_cast %455 : i32 to index
    %c5_272 = arith.constant 5 : index
    %491 = memref.load %arg2[%490, %c5_272] : memref<16x9xf32, #tpu.memory_space<smem>>
    %c5_273 = arith.constant 5 : index
    %c0_274 = arith.constant 0 : index
    %c0_275 = arith.constant 0 : index
    %492 = vector.load %arg1[%c5_273, %c0_274, %c0_275] : memref<9x8x784xf32, #tpu.memory_space<vmem>>, vector<1x8x784xf32>
    %493 = vector.shape_cast %492 : vector<1x8x784xf32> to vector<8x784xf32>
    %494 = vector.broadcast %491 : f32 to vector<8x784xf32>
    %495 = arith.mulf %494, %493 : vector<8x784xf32>
    %496 = arith.addf %489, %495 : vector<8x784xf32>
    %497 = arith.index_cast %455 : i32 to index
    %c6_276 = arith.constant 6 : index
    %498 = memref.load %arg2[%497, %c6_276] : memref<16x9xf32, #tpu.memory_space<smem>>
    %c6_277 = arith.constant 6 : index
    %c0_278 = arith.constant 0 : index
    %c0_279 = arith.constant 0 : index
    %499 = vector.load %arg1[%c6_277, %c0_278, %c0_279] : memref<9x8x784xf32, #tpu.memory_space<vmem>>, vector<1x8x784xf32>
    %500 = vector.shape_cast %499 : vector<1x8x784xf32> to vector<8x784xf32>
    %501 = vector.broadcast %498 : f32 to vector<8x784xf32>
    %502 = arith.mulf %501, %500 : vector<8x784xf32>
    %503 = arith.addf %496, %502 : vector<8x784xf32>
    %504 = arith.index_cast %455 : i32 to index
    %c7_280 = arith.constant 7 : index
    %505 = memref.load %arg2[%504, %c7_280] : memref<16x9xf32, #tpu.memory_space<smem>>
    %c7_281 = arith.constant 7 : index
    %c0_282 = arith.constant 0 : index
    %c0_283 = arith.constant 0 : index
    %506 = vector.load %arg1[%c7_281, %c0_282, %c0_283] : memref<9x8x784xf32, #tpu.memory_space<vmem>>, vector<1x8x784xf32>
    %507 = vector.shape_cast %506 : vector<1x8x784xf32> to vector<8x784xf32>
    %508 = vector.broadcast %505 : f32 to vector<8x784xf32>
    %509 = arith.mulf %508, %507 : vector<8x784xf32>
    %510 = arith.addf %503, %509 : vector<8x784xf32>
    %511 = arith.index_cast %455 : i32 to index
    %c8_284 = arith.constant 8 : index
    %512 = memref.load %arg2[%511, %c8_284] : memref<16x9xf32, #tpu.memory_space<smem>>
    %c8_285 = arith.constant 8 : index
    %c0_286 = arith.constant 0 : index
    %c0_287 = arith.constant 0 : index
    %513 = vector.load %arg1[%c8_285, %c0_286, %c0_287] : memref<9x8x784xf32, #tpu.memory_space<vmem>>, vector<1x8x784xf32>
    %514 = vector.shape_cast %513 : vector<1x8x784xf32> to vector<8x784xf32>
    %515 = vector.broadcast %512 : f32 to vector<8x784xf32>
    %516 = arith.mulf %515, %514 : vector<8x784xf32>
    %517 = arith.addf %510, %516 : vector<8x784xf32>
    %518 = arith.index_cast %455 : i32 to index
    %c0_288 = arith.constant 0 : index
    %519 = memref.load %arg3[%518, %c0_288] : memref<16x1xf32, #tpu.memory_space<smem>>
    %520 = vector.broadcast %519 : f32 to vector<8x784xf32>
    %521 = arith.addf %517, %520 : vector<8x784xf32>
    %cst_289 = arith.constant 0.000000e+00 : f32
    %522 = vector.broadcast %cst_289 : f32 to vector<8x784xf32>
    %523 = arith.maximumf %521, %522 : vector<8x784xf32>
    %524 = arith.truncf %523 : vector<8x784xf32> to vector<8x784xbf16>
    %c6_290 = arith.constant 6 : index
    %c0_291 = arith.constant 0 : index
    %c0_292 = arith.constant 0 : index
    %525 = vector.load %arg4[%c6_290, %c0_291, %c0_292] : memref<8x784x128xbf16, #tpu.memory_space<vmem>>, vector<1x784x128xbf16>
    %526 = vector.shape_cast %525 : vector<1x784x128xbf16> to vector<784x128xbf16>
    %cst_293 = arith.constant dense<0.000000e+00> : vector<8x128xf32>
    %527 = tpu.matmul %524, %526, %cst_293 {dimension_numbers = #tpu.dot_dimension_numbers<[1], [0], [0], [1], [0, 0, 1, 1], [], []>} : vector<8x784xbf16>, vector<784x128xbf16>, vector<8x128xf32> -> vector<8x128xf32>
    %528 = arith.addf %453, %527 : vector<8x128xf32>
    %c8_i32_294 = arith.constant 8 : i32
    %529 = arith.muli %arg0, %c8_i32_294 : i32
    %c7_i32 = arith.constant 7 : i32
    %530 = arith.addi %529, %c7_i32 : i32
    %531 = arith.index_cast %530 : i32 to index
    %c0_295 = arith.constant 0 : index
    %532 = memref.load %arg2[%531, %c0_295] : memref<16x9xf32, #tpu.memory_space<smem>>
    %c0_296 = arith.constant 0 : index
    %c0_297 = arith.constant 0 : index
    %c0_298 = arith.constant 0 : index
    %533 = vector.load %arg1[%c0_296, %c0_297, %c0_298] : memref<9x8x784xf32, #tpu.memory_space<vmem>>, vector<1x8x784xf32>
    %534 = vector.shape_cast %533 : vector<1x8x784xf32> to vector<8x784xf32>
    %535 = vector.broadcast %532 : f32 to vector<8x784xf32>
    %536 = arith.mulf %535, %534 : vector<8x784xf32>
    %537 = arith.index_cast %530 : i32 to index
    %c1_299 = arith.constant 1 : index
    %538 = memref.load %arg2[%537, %c1_299] : memref<16x9xf32, #tpu.memory_space<smem>>
    %c1_300 = arith.constant 1 : index
    %c0_301 = arith.constant 0 : index
    %c0_302 = arith.constant 0 : index
    %539 = vector.load %arg1[%c1_300, %c0_301, %c0_302] : memref<9x8x784xf32, #tpu.memory_space<vmem>>, vector<1x8x784xf32>
    %540 = vector.shape_cast %539 : vector<1x8x784xf32> to vector<8x784xf32>
    %541 = vector.broadcast %538 : f32 to vector<8x784xf32>
    %542 = arith.mulf %541, %540 : vector<8x784xf32>
    %543 = arith.addf %536, %542 : vector<8x784xf32>
    %544 = arith.index_cast %530 : i32 to index
    %c2_303 = arith.constant 2 : index
    %545 = memref.load %arg2[%544, %c2_303] : memref<16x9xf32, #tpu.memory_space<smem>>
    %c2_304 = arith.constant 2 : index
    %c0_305 = arith.constant 0 : index
    %c0_306 = arith.constant 0 : index
    %546 = vector.load %arg1[%c2_304, %c0_305, %c0_306] : memref<9x8x784xf32, #tpu.memory_space<vmem>>, vector<1x8x784xf32>
    %547 = vector.shape_cast %546 : vector<1x8x784xf32> to vector<8x784xf32>
    %548 = vector.broadcast %545 : f32 to vector<8x784xf32>
    %549 = arith.mulf %548, %547 : vector<8x784xf32>
    %550 = arith.addf %543, %549 : vector<8x784xf32>
    %551 = arith.index_cast %530 : i32 to index
    %c3_307 = arith.constant 3 : index
    %552 = memref.load %arg2[%551, %c3_307] : memref<16x9xf32, #tpu.memory_space<smem>>
    %c3_308 = arith.constant 3 : index
    %c0_309 = arith.constant 0 : index
    %c0_310 = arith.constant 0 : index
    %553 = vector.load %arg1[%c3_308, %c0_309, %c0_310] : memref<9x8x784xf32, #tpu.memory_space<vmem>>, vector<1x8x784xf32>
    %554 = vector.shape_cast %553 : vector<1x8x784xf32> to vector<8x784xf32>
    %555 = vector.broadcast %552 : f32 to vector<8x784xf32>
    %556 = arith.mulf %555, %554 : vector<8x784xf32>
    %557 = arith.addf %550, %556 : vector<8x784xf32>
    %558 = arith.index_cast %530 : i32 to index
    %c4_311 = arith.constant 4 : index
    %559 = memref.load %arg2[%558, %c4_311] : memref<16x9xf32, #tpu.memory_space<smem>>
    %c4_312 = arith.constant 4 : index
    %c0_313 = arith.constant 0 : index
    %c0_314 = arith.constant 0 : index
    %560 = vector.load %arg1[%c4_312, %c0_313, %c0_314] : memref<9x8x784xf32, #tpu.memory_space<vmem>>, vector<1x8x784xf32>
    %561 = vector.shape_cast %560 : vector<1x8x784xf32> to vector<8x784xf32>
    %562 = vector.broadcast %559 : f32 to vector<8x784xf32>
    %563 = arith.mulf %562, %561 : vector<8x784xf32>
    %564 = arith.addf %557, %563 : vector<8x784xf32>
    %565 = arith.index_cast %530 : i32 to index
    %c5_315 = arith.constant 5 : index
    %566 = memref.load %arg2[%565, %c5_315] : memref<16x9xf32, #tpu.memory_space<smem>>
    %c5_316 = arith.constant 5 : index
    %c0_317 = arith.constant 0 : index
    %c0_318 = arith.constant 0 : index
    %567 = vector.load %arg1[%c5_316, %c0_317, %c0_318] : memref<9x8x784xf32, #tpu.memory_space<vmem>>, vector<1x8x784xf32>
    %568 = vector.shape_cast %567 : vector<1x8x784xf32> to vector<8x784xf32>
    %569 = vector.broadcast %566 : f32 to vector<8x784xf32>
    %570 = arith.mulf %569, %568 : vector<8x784xf32>
    %571 = arith.addf %564, %570 : vector<8x784xf32>
    %572 = arith.index_cast %530 : i32 to index
    %c6_319 = arith.constant 6 : index
    %573 = memref.load %arg2[%572, %c6_319] : memref<16x9xf32, #tpu.memory_space<smem>>
    %c6_320 = arith.constant 6 : index
    %c0_321 = arith.constant 0 : index
    %c0_322 = arith.constant 0 : index
    %574 = vector.load %arg1[%c6_320, %c0_321, %c0_322] : memref<9x8x784xf32, #tpu.memory_space<vmem>>, vector<1x8x784xf32>
    %575 = vector.shape_cast %574 : vector<1x8x784xf32> to vector<8x784xf32>
    %576 = vector.broadcast %573 : f32 to vector<8x784xf32>
    %577 = arith.mulf %576, %575 : vector<8x784xf32>
    %578 = arith.addf %571, %577 : vector<8x784xf32>
    %579 = arith.index_cast %530 : i32 to index
    %c7_323 = arith.constant 7 : index
    %580 = memref.load %arg2[%579, %c7_323] : memref<16x9xf32, #tpu.memory_space<smem>>
    %c7_324 = arith.constant 7 : index
    %c0_325 = arith.constant 0 : index
    %c0_326 = arith.constant 0 : index
    %581 = vector.load %arg1[%c7_324, %c0_325, %c0_326] : memref<9x8x784xf32, #tpu.memory_space<vmem>>, vector<1x8x784xf32>
    %582 = vector.shape_cast %581 : vector<1x8x784xf32> to vector<8x784xf32>
    %583 = vector.broadcast %580 : f32 to vector<8x784xf32>
    %584 = arith.mulf %583, %582 : vector<8x784xf32>
    %585 = arith.addf %578, %584 : vector<8x784xf32>
    %586 = arith.index_cast %530 : i32 to index
    %c8_327 = arith.constant 8 : index
    %587 = memref.load %arg2[%586, %c8_327] : memref<16x9xf32, #tpu.memory_space<smem>>
    %c8_328 = arith.constant 8 : index
    %c0_329 = arith.constant 0 : index
    %c0_330 = arith.constant 0 : index
    %588 = vector.load %arg1[%c8_328, %c0_329, %c0_330] : memref<9x8x784xf32, #tpu.memory_space<vmem>>, vector<1x8x784xf32>
    %589 = vector.shape_cast %588 : vector<1x8x784xf32> to vector<8x784xf32>
    %590 = vector.broadcast %587 : f32 to vector<8x784xf32>
    %591 = arith.mulf %590, %589 : vector<8x784xf32>
    %592 = arith.addf %585, %591 : vector<8x784xf32>
    %593 = arith.index_cast %530 : i32 to index
    %c0_331 = arith.constant 0 : index
    %594 = memref.load %arg3[%593, %c0_331] : memref<16x1xf32, #tpu.memory_space<smem>>
    %595 = vector.broadcast %594 : f32 to vector<8x784xf32>
    %596 = arith.addf %592, %595 : vector<8x784xf32>
    %cst_332 = arith.constant 0.000000e+00 : f32
    %597 = vector.broadcast %cst_332 : f32 to vector<8x784xf32>
    %598 = arith.maximumf %596, %597 : vector<8x784xf32>
    %599 = arith.truncf %598 : vector<8x784xf32> to vector<8x784xbf16>
    %c7_333 = arith.constant 7 : index
    %c0_334 = arith.constant 0 : index
    %c0_335 = arith.constant 0 : index
    %600 = vector.load %arg4[%c7_333, %c0_334, %c0_335] : memref<8x784x128xbf16, #tpu.memory_space<vmem>>, vector<1x784x128xbf16>
    %601 = vector.shape_cast %600 : vector<1x784x128xbf16> to vector<784x128xbf16>
    %cst_336 = arith.constant dense<0.000000e+00> : vector<8x128xf32>
    %602 = tpu.matmul %599, %601, %cst_336 {dimension_numbers = #tpu.dot_dimension_numbers<[1], [0], [0], [1], [0, 0, 1, 1], [], []>} : vector<8x784xbf16>, vector<784x128xbf16>, vector<8x128xf32> -> vector<8x128xf32>
    %603 = arith.addf %528, %602 : vector<8x128xf32>
    %c0_337 = arith.constant 0 : index
    %c0_338 = arith.constant 0 : index
    %604 = vector.load %arg7[%c0_337, %c0_338] : memref<8x128xf32, #tpu.memory_space<vmem>>, vector<8x128xf32>
    tpu.vector_store %arg7[%c0_337, %c0_338], %603 {strides = array<i32>} : memref<8x128xf32, #tpu.memory_space<vmem>>, vector<8x128xf32>,
    %c1_i32_339 = arith.constant 1 : i32
    %605 = arith.cmpi eq, %arg0, %c1_i32_339 : i32
    %606 = arith.extui %605 : i1 to i32
    %c0_i32_340 = arith.constant 0 : i32
    %607 = arith.cmpi ne, %606, %c0_i32_340 : i32
    scf.if %607 {
      %c0_341 = arith.constant 0 : index
      %c0_342 = arith.constant 0 : index
      %608 = vector.load %arg7[%c0_341, %c0_342] : memref<8x128xf32, #tpu.memory_space<vmem>>, vector<8x128xf32>
      %c0_343 = arith.constant 0 : index
      %c0_344 = arith.constant 0 : index
      %609 = vector.load %arg5[%c0_343, %c0_344] : memref<1x128xf32, #tpu.memory_space<vmem>>, vector<1x128xf32>
      %610 = vector.broadcast %609 : vector<1x128xf32> to vector<8x128xf32>
      %611 = arith.addf %608, %610 : vector<8x128xf32>
      %cst_345 = arith.constant 0.000000e+00 : f32
      %612 = vector.broadcast %cst_345 : f32 to vector<8x128xf32>
      %613 = arith.maximumf %611, %612 : vector<8x128xf32>
      %c0_346 = arith.constant 0 : index
      %c0_347 = arith.constant 0 : index
      %614 = vector.load %arg6[%c0_346, %c0_347] : memref<8x128xf32, #tpu.memory_space<vmem>>, vector<8x128xf32>
      tpu.vector_store %arg6[%c0_346, %c0_347], %613 {strides = array<i32>} : memref<8x128xf32, #tpu.memory_space<vmem>>, vector<8x128xf32>,
    } else {
    }
    return
  }
  func.func @transform_0(%arg0: i32) -> (i32, i32, i32) {
    %c0_i32 = arith.constant 0 : i32
    %c0_i32_0 = arith.constant 0 : i32
    %c0_i32_1 = arith.constant 0 : i32
    %c0_i32_2 = arith.constant 0 : i32
    return %c0_i32, %c0_i32_0, %c0_i32_1 : i32, i32, i32
  }
  func.func @transform_1(%arg0: i32) -> (i32, i32) {
    %c0_i32 = arith.constant 0 : i32
    %c0_i32_0 = arith.constant 0 : i32
    %c0_i32_1 = arith.constant 0 : i32
    return %c0_i32, %c0_i32_0 : i32, i32
  }
  func.func @transform_2(%arg0: i32) -> (i32, i32) {
    %c0_i32 = arith.constant 0 : i32
    %c0_i32_0 = arith.constant 0 : i32
    %c0_i32_1 = arith.constant 0 : i32
    return %c0_i32, %c0_i32_0 : i32, i32
  }
  func.func @transform_3(%arg0: i32) -> (i32, i32, i32) {
    %c0_i32 = arith.constant 0 : i32
    %c0_i32_0 = arith.constant 0 : i32
    %c0_i32_1 = arith.constant 0 : i32
    return %arg0, %c0_i32, %c0_i32_0 : i32, i32, i32
  }
  func.func @transform_4(%arg0: i32) -> (i32, i32) {
    %c0_i32 = arith.constant 0 : i32
    %c0_i32_0 = arith.constant 0 : i32
    %c0_i32_1 = arith.constant 0 : i32
    return %c0_i32, %c0_i32_0 : i32, i32
  }
  func.func @transform_5(%arg0: i32) -> (i32, i32) {
    %c0_i32 = arith.constant 0 : i32
    %c0_i32_0 = arith.constant 0 : i32
    %c0_i32_1 = arith.constant 0 : i32
    return %c0_i32, %c0_i32_0 : i32, i32
  }
}

</mosaic_0001>

<bundles_post_ra>
// kernel: tpu_custom_call.1
= control target key start
LH: loop header
LB: loop body
LE: loop exit
PB: predicated region body
PF: predicated region fallthrough
CT: control target
= control target key end

     0   :  { %10 = vsyncpa [#allocation4], 0  ;;  %s11754_s0 = inlined_call_operand.hbm [shape: f32[9,8,784], index: 0, kind: input, shape index: {}]   ;;  %s11755_s1 = inlined_call_operand.hbm [shape: f32[16,9], index: 1, kind: input, shape index: {}]   ;;  %s11756_s2 = inlined_call_operand.vmem [shape: f32[16,1], index: 2, kind: input, shape index: {}]   ;;  %s11757_s3 = inlined_call_operand.hbm [shape: bf16[16,784,128], index: 3, kind: input, shape index: {}]   ;;  %s11758_s4 = inlined_call_operand.hbm [shape: f32[1,128], index: 4, kind: input, shape index: {}]   ;;  %s11759_s5 = inlined_call_operand.hbm [shape: f32[8,128], index: 5, kind: output, shape index: {}]  }
   0x1   :  { %11 = vsyncpa [#allocation6], 0 }
   0x2   :  { %12 = vsyncpa [#allocation7], 0 }
   0x3   :  { %13 = vsyncpa [#allocation11], 0 }
   0x4   :  { %15 = vsyncpa [#allocation11 + $0x1], 0 }
   0x5   :  { %16 = vsyncpa [#allocation5], 0  ;;  %s8963_s18 = smov 0   ;;  %s8965_s19 = smov 0  }
   0x6   :  { %s8967_s20 = smov 0   ;;  %s8969_s21 = smov 0  }
   0x7 LB: > { %s8982_s22 = sadd.s32 4294967295, %s8916_s21   ;;  %p105_p0 = scmp.ne.s32.totalorder %s8908_s19, %s8904_s18  ;;  %s8916_s21 = sphi %s8969_s21, %s11981_s21   ;;  %s8912_s20 = sphi %s8967_s20, %s11980_s20   ;;  %s8908_s19 = sphi %s8965_s19, %s11979_s19   ;;  %s8904_s18 = sphi %s8963_s18, %s11978_s18  }
   0x8   : > { %p11760_p1 = scmp.eq.s32.totalorder %s8982_s22, 0  ;;  %p6302_p2 = scmp.ge.s32.totalorder %s8916_s21, 1 }
   0x9   : > { %p158_p3 = scmp.lt.s32.totalorder %s8916_s21, 3  ;;  %s8918_s25 = smov [#allocation12]  }
   0xa   : > { %p8991_p5 = por %p11760_p1, %p105_p0  ;;  %s208_s26 = sshll.u32 %s8918_s25, 4  ;;  %s209_s26 = int_to_ptr.vmem [resolvable:$true] %s208_s26 }
   0xb   : > { %p8995_p6 = pnand %p6302_p2, %p158_p3  ;;  %s8919_s27 = smov [#allocation3]  }
   0xc   : > { %s11828_s23 = scalar_select %p8991_p5, 1, 0 }
   0xd   : > { %s11829_s24 = scalar_select %p8995_p6, 1, 0 }
   0xe   : > { %p8057_p7 = pneg %p8995_p6  ;;  %s170_s28 = sshll.u32 %s8919_s27, 4  ;;  %s9007_s28 = int_to_ptr.vmem [resolvable:$true] %s170_s28 }
   0xf   : > { %s8722_s7 = scalar_lea.hbm %s11758_s4, 16 }
  0x10   : > { %p9003_p8 = pnand %p8057_p7, %p11760_p1  ;;  %p8723_p9 = scmp.ne.s32.totalorder %s11758_s4, %s8722_s7 }
  0x11   : > { %p8729_p13 = scmp.lt.u32.totalorder %s8722_s7, %s11758_s4 }
  0x12   : > { %p9017_p10 = pneg %p9003_p8 }
  0x14   : > { %p8725_p11 = pnand %p9017_p10, %p8723_p9 }
  0x16   : > { %p8726_p12 = pneg %p8725_p11 }
  0x18   : > { %p8731_p0 = pnand %p8729_p13, %p8726_p12 }
  0x1a   : > { %8734 = shalt.err (!%p8731_p0)
}
  0x1b   : > { %s8735_s13 = scalar_lea.vmem %s209_s26, 16  ;;  %s8742_s14 = scalar_lea.vmem %s209_s26, 32 }
  0x1c   : > { %p8736_p2 = scmp.ne.s32.totalorder %s209_s26, %s8735_s13  ;;  %p8743_p4 = scmp.lt.s32.totalorder %s209_s26, %s209_s26 }
  0x1d   : > { %p8744_p1 = scmp.lt.s32.totalorder %s8742_s14, %s8735_s13 }
  0x1e   : > { %p8738_p3 = pnand %p8736_p2, %p9017_p10 }
  0x1f   : > { %p8745_p5 = por %p8744_p1, %p8743_p4 }
  0x20   : > { %p8739_p7 = pneg %p8738_p3 }
  0x22   : > { %p8746_p6 = pnand %p8745_p5, %p8739_p7 }
  0x24   : > { %8749 = shalt.err (!%p8746_p6)
}
  0x25   : > { %8069 = dma.hbm_to_vmem [thread:$0]  (!%p9003_p8), %s11758_s4, 16, %s209_s26, [#allocation11]  }
  0x26   : > { %s8750_s25 = scalar_lea.hbm %s11754_s0, 8064 }
  0x27   : > { %p8751_p9 = scmp.ne.s32.totalorder %s11754_s0, %s8750_s25  ;;  %p8757_p4 = scmp.lt.u32.totalorder %s8750_s25, %s11754_s0 }
  0x29   : > { %p8753_p11 = pnand %p8751_p9, %p9017_p10 }
  0x2b   : > { %p8754_p1 = pneg %p8753_p11 }
  0x2d   : > { %p8759_p5 = pnand %p8757_p4, %p8754_p1 }
  0x2f   : > { %8762 = shalt.err (!%p8759_p5)
}
  0x30   : > { %s8763_s26 = scalar_lea.vmem %s9007_s28, 8064  ;;  %p8771_p0 = scmp.lt.s32.totalorder %s9007_s28, %s9007_s28 }
  0x31   : > { %p8764_p6 = scmp.ne.s32.totalorder %s9007_s28, %s8763_s26  ;;  %p8772_p2 = scmp.lt.s32.totalorder %s8763_s26, %s8763_s26 }
  0x33   : > { %p8766_p12 = pnand %p8764_p6, %p9017_p10  ;;  %p8773_p3 = por %p8772_p2, %p8771_p0 }
  0x35   : > { %p8767_p13 = pneg %p8766_p12 }
  0x37   : > { %p8774_p7 = pnand %p8773_p3, %p8767_p13 }
  0x39   : > { %8777 = shalt.err (!%p8774_p7)
}
  0x3a   : > { %s8920_s8 = smov 896   ;;  %s8921_s9 = smov 56  }
  0x3b   : > { %8060 = dma.hbm_to_vmem [thread:$0]  (!%p9003_p8), %s11754_s0, 8064, %s9007_s28, [#allocation4], %s8920_s8, %s8920_s8, %s8921_s9  }
  0x3c   : > { %s194_s15 = sshll.u32 %s11756_s2, 4  ;;  %s8778_s18 = scalar_lea.hbm %s11755_s1, 256  ;;  %s195_s15 = int_to_ptr.vmem [resolvable:$true] %s194_s15 }
  0x3d   : > { %p8779_p9 = scmp.ne.s32.totalorder %s11755_s1, %s8778_s18  ;;  %p8785_p4 = scmp.lt.u32.totalorder %s8778_s18, %s11755_s1 }
  0x3f   : > { %p8781_p11 = pnand %p8779_p9, %p9017_p10 }
  0x41   : > { %p8782_p1 = pneg %p8781_p11 }
  0x43   : > { %p8787_p5 = pnand %p8785_p4, %p8782_p1 }
  0x45   : > { %8790 = shalt.err (!%p8787_p5)
}
  0x46   : > { %s8922_s28 = smov [#allocation8]   ;;  %s8923_s7 = smov 128  }
  0x47   : > { %s8924_s26 = smov 8   ;;  %s8791_s11 = scalar_lea.vmem %s195_s15, 256 }
  0x48   : > { %8063 = dma.hbm_to_smem (!%p9003_p8), %s11755_s1, 256, %s8922_s28, [#allocation6], %s8923_s7, %s8923_s7, %s8924_s26  }
  0x49   : > { %p8792_p6 = scmp.ne.s32.totalorder %s195_s15, %s8791_s11  ;;  %p8799_p0 = scmp.lt.s32.totalorder %s195_s15, %s195_s15 }
  0x4a   : > { %p8800_p2 = scmp.lt.s32.totalorder %s8791_s11, %s8791_s11 }
  0x4b   : > { %p8794_p12 = pnand %p8792_p6, %p9017_p10 }
  0x4c   : > { %p8801_p3 = por %p8800_p2, %p8799_p0 }
  0x4d   : > { %p8795_p13 = pneg %p8794_p12 }
  0x4f   : > { %p8802_p7 = pnand %p8801_p3, %p8795_p13 }
  0x51   : > { %8805 = shalt.err (!%p8802_p7)
}
  0x52   : > { %s8925_s12 = smov [#allocation9]   ;;  %s9080_s10 = sadd.s32 1, %s8916_s21  }
  0x53   : > { %8066 = dma.vmem_to_smem (!%p9003_p8), %s195_s15, 256, %s8925_s12, [#allocation7], %s8923_s7, %s8923_s7, %s8924_s26  }
  0x54   : > { %s89_s13 = ssub.s32 %s8916_s21, %s9080_s10  ;;  %s92_s14 = sadd.s32 1, %s8912_s20 }
  0x55   : > { %p90_p10 = scmp.eq.s32.totalorder %s89_s13, 0  ;;  %p99_p9 = scmp.ne.s32.totalorder %s8912_s20, %s8908_s19 }
  0x56   : > { %p100_p11 = scmp.eq.s32.totalorder %s8916_s21, 0  ;;  %p8078_p4 = scmp.lt.s32.totalorder %s8916_s21, 2 }
  0x57   : > { %s9089_s29 = scalar_select %p90_p10, %s8912_s20, %s92_s14  }
  0x58   : > { %p101_p1 = por %p100_p11, %p99_p9  ;;  %s219_s16 = sand.u32 1, %s8916_s21  }
  0x59   : > { %s221_s17 = sand.u32 1, %s8912_s20   ;;  %s8033_s25 = smul.u32 50176, %s8916_s21 }
  0x5a   : > { %s8032_s18 = smul.u32 3136, %s221_s17  ;;  %p9095_p5 = pnand %p8078_p4, %p101_p1 }
  0x5b   : > { %s9102_s6 = scalar_lea.hbm %s11757_s3, %s8033_s25  ;;  %s9106_s21 = scalar_lea.sflag [#allocation11], %s219_s16 }
  0x5c   : > { %s223_s28 = scalar_lea.vmem [#allocation10], %s8032_s18  ;;  %s8806_s26 = scalar_lea.hbm %s9102_s6, 50176 }
  0x5d   : > { %s231_s7 = sshll.u32 %s223_s28, 4  ;;  %p8807_p8 = scmp.ne.s32.totalorder %s9102_s6, %s8806_s26  ;;  %s9104_s7 = int_to_ptr.vmem [resolvable:$true] %s231_s7 }
  0x5e   : > { %p8808_p6 = pneg %p9095_p5  ;;  %s8811_s11 = scalar_lea.hbm %s11757_s3, 100352 }
  0x5f   : > { %p8812_p0 = scmp.lt.u32.totalorder %s9102_s6, %s11757_s3  ;;  %p8813_p2 = scmp.lt.u32.totalorder %s8811_s11, %s8806_s26 }
  0x60   : > { %p8809_p12 = pnand %p8808_p6, %p8807_p8  ;;  %p8815_p7 = scmp.lt.u32.totalorder %s8806_s26, %s9102_s6 }
  0x61   : > { %p8814_p3 = por %p8813_p2, %p8812_p0 }
  0x62   : > { %p8810_p13 = pneg %p8809_p12 }
  0x63   : > { %p8816_p10 = por %p8815_p7, %p8814_p3 }
  0x65   : > { %p8817_p9 = pnand %p8816_p10, %p8810_p13 }
  0x67   : > { %8820 = shalt.err (!%p8817_p9)
}
  0x68   : > { %s8821_s14 = scalar_lea.vmem %s9104_s7, 50176  ;;  %s8926_s16 = smov [#allocation10]  }
  0x69   : > { %p8822_p11 = scmp.ne.s32.totalorder %s9104_s7, %s8821_s14  ;;  %s8826_s17 = sshll.u32 %s8926_s16, 4  ;;  %s8827_s17 = int_to_ptr.vmem [resolvable:$false] %s8826_s17 }
  0x6a   : > { %s8828_s18 = scalar_lea.vmem %s8827_s17, 100352  ;;  %p8829_p8 = scmp.lt.s32.totalorder %s9104_s7, %s8827_s17 }
  0x6b   : > { %p8824_p1 = pnand %p8822_p11, %p8808_p6  ;;  %p8830_p12 = scmp.lt.s32.totalorder %s8828_s18, %s8821_s14 }
  0x6d   : > { %p8825_p4 = pneg %p8824_p1  ;;  %p8831_p0 = por %p8830_p12, %p8829_p8 }
  0x6f   : > { %p8832_p2 = pnand %p8831_p0, %p8825_p4 }
  0x71   : > { %8835 = shalt.err (!%p8832_p2)
}
  0x72   : > { %s8927_s25 = smov 64   ;;  %s8928_s15 = smov 4  }
  0x73   : > { %8073 = dma.hbm_to_vmem [thread:$0]  (!%p9095_p5), %s9102_s6, 50176, %s9104_s7, %s9106_s21, %s8927_s25, %s8927_s25, %s8928_s15  }
  0x74   : > { %p11833_p6 = scmp.ne.s32.totalorder %s11829_s24, 0 }
  0x76   : > { %243 = sbr.rel (%p11833_p6) target bundleno = 856 (0x358), region = 40 }
  0x7d   : > { %p11834_p13 = scmp.eq.s32.totalorder %s8982_s22, 0 }
  0x7f   : > { %8879 = dma.done.wait (%p11834_p13), [#allocation4], 8064   ;;  %p11835_p3 = pmov %p11834_p13 }
  0x81   : > { %8881 = vsyncadd (%p11835_p3), [#allocation4], 4294959232  ;;  %p11836_p7 = pmov %p11835_p3 }
  0x82   : > { %p11837_p10 = pmov %p11835_p3 }
  0x83   : > { %8883 = dma.done.wait (%p11836_p7), [#allocation6], 256  }
  0x84   : > { %8885 = vsyncadd (%p11837_p10), [#allocation6], 4294967040  ;;  %p11838_p9 = pmov %p11835_p3 }
  0x85   : > { %p11839_p5 = pmov %p11835_p3 }
  0x86   : > { %8887 = dma.done.wait (%p11838_p9), [#allocation7], 256  }
  0x87   : > { %8889 = vsyncadd (%p11839_p5), [#allocation7], 4294967040  ;;  %s257_s24 = sand.u32 1, %s8982_s22   ;;  %s259_s27 = sand.u32 1, %s8908_s19  }
  0x88   : > { %s8034_s30 = smul.u32 3136, %s259_s27  ;;  %s258_s6 = scalar_lea.sflag [#allocation11], %s257_s24 }
  0x89   : > { %p11840_p11 = scmp.ne.s32.totalorder %s11828_s23, 0 }
  0x8a   : > { %s9150_s28 = scalar_lea.vmem [#allocation10], %s8034_s30 }
  0x8b   : > { %8891 = dma.done.wait (%p11840_p11), %s258_s6, 50176  }
  0x8c   : > { %8893 = vsyncadd (%p11840_p11), %s258_s6, 4294917120  ;;  %p11841_p1 = pmov %p11835_p3 }
  0x8e   : > { %8895 = dma.done.wait (%p11841_p1), [#allocation11], 16   ;;  %p11842_p4 = pmov %p11841_p1 }
  0x90   : > { %8897 = vsyncadd (%p11842_p4), [#allocation11], 4294967280 }
  0x91   : > { %270 = sfence }
  0x92   : > { %p11843_p8 = scmp.ne.s32.totalorder %s8982_s22, 0 }
  0x93   : > { %v8929_v0 = vmov (!%p11843_p8), 0.0  }
  0x94   : > { %293 = sbr.rel (%p11843_p8) target bundleno = 155 (0x9b), region = 64  ;;  %294 = vst [vmem:[#allocation2] sm:$0xff] (!%p11843_p8), %v8929_v0 }
  0x9b PF: > { %v8131_v1 = vld [vmem:[%s9150_s28 + $0x40] sm:$0xff]   ;;  %s9166_s23 = sshll.u32 %s8982_s22, 10  ;;  %v8135_v5 = vld [vmem:[%s9150_s28 + $0x48] sm:$0xff]   ;;  %v8139_v9 = vld [vmem:[%s9150_s28 + $0x50] sm:$0xff]   ;;  %v11763_v59 = vmov 0.0   ;;  %vm8931_vm0 = vmmov 0  }
  0x9c   : > { %v8132_v2 = vld [vmem:[%s9150_s28 + $0xc0] sm:$0xff]   ;;  %7440 = vmatprep.subr.bf16.mxu0 %v8131_v1  ;;  %v8136_v6 = vld [vmem:[%s9150_s28 + $0xc8] sm:$0xff]   ;;  %s314_s7 = sadd.s32 1, %s9166_s23  ;;  %s339_s21 = sadd.s32 2, %s9166_s23  ;;  %v8140_v10 = vld [vmem:[%s9150_s28 + $0xd0] sm:$0xff]   ;;  %vm929_vm1 = vcmask 130048  }
  0x9d   : > { %v8133_v3 = vld [vmem:[%s9150_s28] sm:$0xff]   ;;  %7462 = vmatprep.subr.bf16.mxu1 %v8132_v2  ;;  %v8137_v7 = vld [vmem:[%s9150_s28 + $0x8] sm:$0xff]   ;;  %s9176_s26 = sld [smem:[#allocation8 + %s9166_s23]]  ;;  %v8141_v11 = vld [vmem:[%s9150_s28 + $0x10] sm:$0xff]   ;;  %s364_s11 = sadd.s32 3, %s9166_s23 }
  0x9e   : > { %v8134_v4 = vld [vmem:[%s9150_s28 + $0x80] sm:$0xff]   ;;  %7441 = vmatpush3.bf16.msra.mxu0 %v8133_v3  ;;  %v8138_v8 = vld [vmem:[%s9150_s28 + $0x88] sm:$0xff]   ;;  %s9179_s8 = sld [smem:[#allocation8 + %s314_s7]]  ;;  %v8142_v12 = vld [vmem:[%s9150_s28 + $0x90] sm:$0xff]   ;;  %s389_s12 = sadd.s32 4, %s9166_s23 }
  0x9f   : > { %7463 = vmatpush3.bf16.msra.mxu1 %v8134_v4  ;;  %7442 = vmatprep.subr.bf16.mxu0 %v8135_v5  ;;  %s9182_s9 = sld [smem:[#allocation8 + %s339_s21]]  ;;  %v8143_v13 = vld [vmem:[%s9150_s28 + $0x58] sm:$0xff]   ;;  %s414_s13 = sadd.s32 5, %s9166_s23  ;;  %v8147_v17 = vld [vmem:[%s9150_s28 + $0x60] sm:$0xff]   ;;  %v8151_v21 = vld [vmem:[%s9150_s28 + $0x68] sm:$0xff]  }
  0xa0   : > { %7464 = vmatprep.subr.bf16.mxu1 %v8136_v6  ;;  %v8144_v14 = vld [vmem:[%s9150_s28 + $0xd8] sm:$0xff]   ;;  %s9191_s14 = sld [smem:[#allocation8 + %s364_s11]]  ;;  %s439_s18 = sadd.s32 6, %s9166_s23  ;;  %v8148_v18 = vld [vmem:[%s9150_s28 + $0xe0] sm:$0xff]   ;;  %v8152_v22 = vld [vmem:[%s9150_s28 + $0xe8] sm:$0xff]  }
  0xa1   : > { %v8145_v15 = vld [vmem:[%s9150_s28 + $0x18] sm:$0xff]   ;;  %s9194_s16 = sld [smem:[#allocation8 + %s389_s12]]  ;;  %s464_s25 = sadd.s32 7, %s9166_s23  ;;  %v8149_v19 = vld [vmem:[%s9150_s28 + $0x20] sm:$0xff]   ;;  %v8153_v23 = vld [vmem:[%s9150_s28 + $0x28] sm:$0xff]  }
  0xa2   : > { %7443 = vmatpush3.bf16.msra.mxu0 %v8137_v7  ;;  %v8146_v16 = vld [vmem:[%s9150_s28 + $0x98] sm:$0xff]   ;;  %s9197_s17 = sld [smem:[#allocation8 + %s414_s13]]  ;;  %s489_s15 = sadd.s32 8, %s9166_s23  ;;  %v8150_v20 = vld [vmem:[%s9150_s28 + $0xa0] sm:$0xff]   ;;  %v8154_v24 = vld [vmem:[%s9150_s28 + $0xa8] sm:$0xff]  }
  0xa3   : > { %7465 = vmatpush3.bf16.msra.mxu1 %v8138_v8  ;;  %7444 = vmatprep.subr.bf16.mxu0 %v8139_v9  ;;  %s9206_s24 = sld [smem:[#allocation8 + %s439_s18]]  ;;  %s9216_s6 = sadd.s32 128, %s9166_s23  ;;  %v8155_v25 = vld [vmem:[%s9150_s28 + $0x70] sm:$0xff]   ;;  %v9225_v28 = vstv %s9176_s26  ;;  %v8159_v31 = vld [vmem:[%s9150_s28 + $0x78] sm:$0xff]   ;;  %v318_v40 = vld [vmem:[#allocation3 + $0x40] sm:$0xff] }
  0xa4   : > { %7466 = vmatprep.subr.bf16.mxu1 %v8140_v10  ;;  %s9209_s27 = sld [smem:[#allocation8 + %s464_s25]]  ;;  %s1105_s21 = sadd.s32 1, %s9216_s6  ;;  %v8156_v26 = vld [vmem:[%s9150_s28 + $0xf0] sm:$0xff]   ;;  %v9232_v30 = vstv %s9179_s8  ;;  %v8160_v33 = vld [vmem:[%s9150_s28 + $0xf8] sm:$0xff]   ;;  %v9248_v41 = vld [vmem:[#allocation3 + $0x78] sm:$0xff] }
  0xa5   : > { %s9212_s30 = sld [smem:[#allocation8 + %s489_s15]]  ;;  %v8157_v27 = vld [vmem:[%s9150_s28 + $0x30] sm:$0xff]   ;;  %v9236_v32 = vstv %s9182_s9  ;;  %v8161_v35 = vld [vmem:[%s9150_s28 + $0x38] sm:$0xff]   ;;  %v326_v47 = vmul.f32 %v9232_v30, %v318_v40  ;;  %v9270_v51 = vld [vmem:[#allocation3 + $0x120] sm:$0xff]  ;;  %s1122_s26 = sadd.s32 2, %s9216_s6 }
  0xa6   : > { %7445 = vmatpush3.bf16.msra.mxu0 %v8141_v11  ;;  %s1096_s7 = sld [smem:[#allocation8 + %s9216_s6]]  ;;  %v8158_v29 = vld [vmem:[%s9150_s28 + $0xb0] sm:$0xff]   ;;  %v9240_v34 = vstv %s9191_s14  ;;  %v8162_v37 = vld [vmem:[%s9150_s28 + $0xb8] sm:$0xff]   ;;  %v351_v48 = vmul.f32 %v9236_v32, %v9248_v41  ;;  %v9275_v54 = vld [vmem:[#allocation3 + $0x158] sm:$0xff]  ;;  %s1139_s8 = sadd.s32 3, %s9216_s6 }
  0xa7   : > { %7467 = vmatpush3.bf16.msra.mxu1 %v8142_v12  ;;  %7446 = vmatprep.subr.bf16.mxu0 %v8143_v13  ;;  %s1106_s11 = sld [smem:[#allocation8 + %s1105_s21]]  ;;  %v300_v39 = vld [vmem:[#allocation3 + $0x8] sm:$0xff]  ;;  %v9251_v42 = vstv %s9194_s16  ;;  %v9266_v49 = vld [vmem:[#allocation3 + $0xb0] sm:$0xff]  ;;  %v9297_v1 = vld [vmem:[#allocation3 + $0x18] sm:$0xff]  ;;  %s1156_s9 = sadd.s32 4, %s9216_s6 }
  0xa8   : > { %7468 = vmatprep.subr.bf16.mxu1 %v8144_v14  ;;  %s9228_s12 = sld [smem:[#allocation9 + %s9166_s23]]  ;;  %v9254_v43 = vstv %s9197_s17  ;;  %v308_v46 = vmul.f32 %v9225_v28, %v300_v39  ;;  %v9268_v50 = vld [vmem:[#allocation3 + $0xe8] sm:$0xff]  ;;  %v376_v53 = vmul.f32 %v9240_v34, %v9266_v49  ;;  %v9277_v55 = vld [vmem:[#allocation3 + $0x190] sm:$0xff]  ;;  %v310_v5 = vmul.f32 %v9225_v28, %v9297_v1  ;;  %v9314_v8 = vld [vmem:[#allocation3 + $0xc0] sm:$0xff]  ;;  %s1173_s17 = sadd.s32 5, %s9216_s6 }
  0xa9   : > { %v9257_v44 = vstv %s9206_s24  ;;  %v9279_v56 = vld [vmem:[#allocation3 + $0x1c8] sm:$0xff]  ;;  %v401_v62 = vmul.f32 %v9251_v42, %v9268_v50  ;;  %v426_v63 = vmul.f32 %v9254_v43, %v9270_v51  ;;  %v9299_v2 = vld [vmem:[#allocation3 + $0x50] sm:$0xff]  ;;  %v9316_v9 = vld [vmem:[#allocation3 + $0xf8] sm:$0xff]  ;;  %v378_v13 = vmul.f32 %v9240_v34, %v9314_v8  ;;  %s9350_s13 = sld [smem:[#allocation8 + %s1122_s26]]  ;;  %s1190_s25 = sadd.s32 6, %s9216_s6 }
  0xaa   : > { %7447 = vmatpush3.bf16.msra.mxu0 %v8145_v15  ;;  %v9260_v45 = vstv %s9209_s27  ;;  %v333_v61 = vadd.f32 %v326_v47, %v308_v46  ;;  %v9295_v0 = vmul.f32 %v9257_v44, %v9275_v54  ;;  %v9301_v3 = vld [vmem:[#allocation3 + $0x88] sm:$0xff]  ;;  %v328_v6 = vmul.f32 %v9232_v30, %v9299_v2  ;;  %v9318_v10 = vld [vmem:[#allocation3 + $0x130] sm:$0xff]  ;;  %v9329_v15 = vld [vmem:[#allocation3 + $0x1a0] sm:$0xff]  ;;  %s9364_s14 = sld [smem:[#allocation8 + %s1139_s8]]  ;;  %s1207_s15 = sadd.s32 7, %s9216_s6 }
  0xab   : > { %7469 = vmatpush3.bf16.msra.mxu1 %v8146_v16  ;;  %7448 = vmatprep.subr.bf16.mxu0 %v8147_v17  ;;  %v9282_v57 = vstv %s9212_s30  ;;  %v9306_v4 = vmul.f32 %v9260_v45, %v9277_v55  ;;  %v353_v7 = vmul.f32 %v9236_v32, %v9301_v3  ;;  %11844 = vst [vmem:[#allocation20_spill] sm:$0xff] %v9318_v10  ;;  %v9327_v14 = vld [vmem:[#allocation3 + $0x168] sm:$0xff]  ;;  %11846 = vst [vmem:[#allocation22_spill] sm:$0xff] %v9329_v15  ;;  %v9331_v16 = vld [vmem:[#allocation3 + $0x1d8] sm:$0xff]  ;;  %s9380_s16 = sld [smem:[#allocation8 + %s1156_s9]]  ;;  %s1224_s27 = sadd.s32 8, %s9216_s6 }
  0xac   : > { %7470 = vmatprep.subr.bf16.mxu1 %v8148_v18  ;;  %v9243_v36 = vstv %s1096_s7  ;;  %v358_v11 = vadd.f32 %v351_v48, %v333_v61  ;;  %v9323_v12 = vmul.f32 %v9282_v57, %v9279_v56  ;;  %11845 = vst [vmem:[#allocation21_spill] sm:$0xff] %v9327_v14  ;;  %11847 = vst [vmem:[#allocation23_spill] sm:$0xff] %v9331_v16  ;;  %v9374_v47 = vld [vmem:[#allocation3 + $0x150] sm:$0xff]  ;;  %v9376_v48 = vld [vmem:[#allocation3 + $0x188] sm:$0xff]  ;;  %s9411_s18 = sld [smem:[#allocation8 + %s1173_s17]]  ;;  %p7412_p12 = scmp.ne.s32.totalorder %s8982_s22, 1 }
  0xad   : > { %v9246_v38 = vstv %s1106_s11  ;;  %v1099_v52 = vmul.f32 %v9243_v36, %v300_v39  ;;  %v335_v18 = vadd.f32 %v328_v6, %v310_v5  ;;  %v478_v39 = vmul.f32 %v9260_v45, %v9329_v15  ;;  %11848 = vst [vmem:[#allocation24_spill] sm:$0xff] %v9374_v47  ;;  %11849 = vst [vmem:[#allocation25_spill] sm:$0xff] %v9376_v48  ;;  %v9387_v6 = vld [vmem:[#allocation3 + $0x10] sm:$0xff]  ;;  %s9450_s24 = sld [smem:[#allocation8 + %s1190_s25]] }
  0xae   : > { %7449 = vmatpush3.bf16.msra.mxu0 %v8149_v19  ;;  %v9285_v58 = vstv %s9228_s12  ;;  %v1109_v60 = vmul.f32 %v9246_v38, %v318_v40  ;;  %v403_v19 = vmul.f32 %v9251_v42, %v9316_v9  ;;  %v9370_v40 = vmul.f32 %v9282_v57, %v9331_v16  ;;  %11850 = vst [vmem:[#allocation26_spill] sm:$0xff] %v9387_v6  ;;  %v9403_v16 = vld [vmem:[#allocation3 + $0x128] sm:$0xff]  ;;  %s9467_s30 = sld [smem:[#allocation8 + %s1207_s15]] }
  0xaf   : > { %7471 = vmatpush3.bf16.msra.mxu1 %v8150_v20  ;;  %7450 = vmatprep.subr.bf16.mxu0 %v8151_v21  ;;  %v428_v20 = vmul.f32 %v9254_v43, %v9318_v10  ;;  %v9342_v21 = vmul.f32 %v9257_v44, %v9327_v14  ;;  %11854 = vst [vmem:[#allocation30_spill] sm:$0xff] %v9403_v16  ;;  %v9409_v10 = vld [vmem:[#allocation3 + $0x160] sm:$0xff]  ;;  %s9480_s7 = sld [smem:[#allocation8 + %s1224_s27]] }
  0xb0   : > { %7472 = vmatprep.subr.bf16.mxu1 %v8152_v22  ;;  %v9333_v17 = vadd.f32 %v1109_v60, %v1099_v52  ;;  %v9344_v22 = vld [vmem:[#allocation3] sm:$0xff]  ;;  %s9496_s21 = sld [smem:[#allocation9 + %s9216_s6]]  ;;  %s9575_s6 = sadd.s32 256, %s9166_s23 }
  0xb1   : > { %v9378_v52 = vld [vmem:[#allocation3 + $0x1c0] sm:$0xff]  ;;  %s9614_s11 = sld [smem:[#allocation8 + %s9575_s6]]  ;;  %s1832_s12 = sadd.s32 1, %s9575_s6 }
  0xb2   : > { %7451 = vmatpush3.bf16.msra.mxu0 %v8153_v23  ;;  %v9346_v23 = vld [vmem:[#allocation3 + $0x38] sm:$0xff]  ;;  %s9663_s26 = sld [smem:[#allocation8 + %s1832_s12]]  ;;  %s1849_s8 = sadd.s32 2, %s9575_s6 }
  0xb3   : > { %7473 = vmatpush3.bf16.msra.mxu1 %v8154_v24  ;;  %7452 = vmatprep.subr.bf16.mxu0 %v8155_v25  ;;  %v9348_v24 = vld [vmem:[#allocation3 + $0x70] sm:$0xff]  ;;  %v383_v25 = vadd.f32 %v376_v53, %v358_v11  ;;  %v9391_v11 = vld [vmem:[#allocation3 + $0x80] sm:$0xff]  ;;  %s1866_s9 = sadd.s32 3, %s9575_s6  ;;  %s1917_s15 = sadd.s32 6, %s9575_s6 }
  0xb4   : > { %7474 = vmatprep.subr.bf16.mxu1 %v8156_v26  ;;  %v307_v26 = vmul.f32 %v9225_v28, %v9344_v22  ;;  %11852 = vst [vmem:[#allocation28_spill] sm:$0xff] %v9391_v11  ;;  %s9829_s27 = sld [smem:[#allocation8 + %s1917_s15]] }
  0xb5   : > { %v408_v53 = vadd.f32 %v401_v62, %v383_v25  ;;  %v309_v62 = vmul.f32 %v9225_v28, %v9387_v6  ;;  %v500_v6 = vmul.f32 %v9282_v57, %v9378_v52  ;;  %s9935_s12 = sld [smem:[#allocation9 + %s9575_s6]] }
  0xb6   : > { %7453 = vmatpush3.bf16.msra.mxu0 %v8157_v27  ;;  %v325_v27 = vmul.f32 %v9232_v30, %v9346_v23 }
  0xb7   : > { %7475 = vmatpush3.bf16.msra.mxu1 %v8158_v29  ;;  %7454 = vmatprep.subr.bf16.mxu0 %v8159_v31  ;;  %v350_v29 = vmul.f32 %v9236_v32, %v9348_v24  ;;  %v9358_v31 = vld [vmem:[#allocation3 + $0xa8] sm:$0xff]  ;;  %v433_v15 = vadd.f32 %v426_v63, %v408_v53 }
  0xb8   : > { %7476 = vmatprep.subr.bf16.mxu1 %v8160_v33  ;;  %v9360_v33 = vld [vmem:[#allocation3 + $0xe0] sm:$0xff]  ;;  %v375_v46 = vmul.f32 %v9240_v34, %v9358_v31  ;;  %v332_v60 = vadd.f32 %v325_v27, %v307_v26  ;;  %v9399_v26 = vld [vmem:[#allocation3 + $0xb8] sm:$0xff]  ;;  %v9401_v27 = vld [vmem:[#allocation3 + $0xf0] sm:$0xff] }
  0xb9   : > { %v400_v61 = vmul.f32 %v9251_v42, %v9360_v33  ;;  %11853 = vst [vmem:[#allocation29_spill] sm:$0xff] %v9399_v26  ;;  %v377_v63 = vmul.f32 %v9240_v34, %v9399_v26  ;;  %v458_v53 = vadd.f32 %v9295_v0, %v433_v15  ;;  %v9428_v26 = vstv %s9350_s13  ;;  %v9432_v15 = vld [vmem:[#allocation3 + $0x1d0] sm:$0xff]  ;;  %s9708_s13 = sld [smem:[#allocation8 + %s1849_s8]] }
  0xba   : > { %7455 = vmatpush3.bf16.msra.mxu0 %v8161_v35  ;;  %v9362_v35 = vld [vmem:[#allocation3 + $0x118] sm:$0xff]  ;;  %v357_v14 = vadd.f32 %v350_v29, %v332_v60  ;;  %11855 = vst [vmem:[#allocation31_spill] sm:$0xff] %v9432_v15 }
  0xbb   : > { %7477 = vmatpush3.bf16.msra.mxu1 %v8162_v37  ;;  %v360_v37 = vadd.f32 %v353_v7, %v335_v18  ;;  %v425_v5 = vmul.f32 %v9254_v43, %v9362_v35  ;;  %v9389_v7 = vld [vmem:[#allocation3 + $0x48] sm:$0xff]  ;;  %v8163_v29 = vld [vmem:[%s9150_s28 + $0x140] sm:$0xff]   ;;  %v483_v0 = vadd.f32 %v9306_v4, %v458_v53  ;;  %v502_v53 = vmul.f32 %v9282_v57, %v9432_v15  ;;  %v9489_v15 = vld [vmem:[#allocation3 + $0x180] sm:$0xff] }
  0xbc   : > { %7984 = vmatprep.subr.bf16.mxu1 %v11763_v59  ;;  %11851 = vst [vmem:[#allocation27_spill] sm:$0xff] %v9389_v7  ;;  %v450_v59 = vmul.f32 %v9257_v44, %v9374_v47  ;;  %v327_v25 = vmul.f32 %v9232_v30, %v9389_v7  ;;  %v382_v60 = vadd.f32 %v375_v46, %v357_v14  ;;  %11860 = vst [vmem:[#allocation36_spill] sm:$0xff] %v9489_v15 }
  0xbd   : > { %v385_v18 = vadd.f32 %v378_v13, %v360_v37  ;;  %v475_v13 = vmul.f32 %v9260_v45, %v9376_v48  ;;  %v352_v37 = vmul.f32 %v9236_v32, %v9391_v11  ;;  %v402_v11 = vmul.f32 %v9251_v42, %v9401_v27  ;;  %7484 = vmatprep.subr.bf16.mxu0 %v8163_v29 }
  0xbe   : > { %v334_v47 = vadd.f32 %v327_v25, %v309_v62  ;;  %v427_v48 = vmul.f32 %v9254_v43, %v9403_v16  ;;  %v452_v25 = vmul.f32 %v9257_v44, %v9409_v10  ;;  %v407_v14 = vadd.f32 %v400_v61, %v382_v60 }
  0xbf   : > { %v410_v7 = vadd.f32 %v403_v19, %v385_v18  ;;  %v9423_v19 = vld [vmem:[#allocation3 + $0x198] sm:$0xff]  ;;  %v1126_v46 = vmul.f32 %v9428_v26, %v9248_v41  ;;  %v9437_v16 = vstv %s9364_s14  ;;  %v508_v4 = vadd.f32 %v9323_v12, %v483_v0  ;;  %s9722_s14 = sld [smem:[#allocation8 + %s1866_s9]] }
  0xc0   : > { %v359_v62 = vadd.f32 %v352_v37, %v334_v47  ;;  %v9443_v37 = vstv %s9380_s16  ;;  %v432_v61 = vadd.f32 %v425_v5, %v407_v14  ;;  %v1143_v41 = vmul.f32 %v9437_v16, %v9266_v49  ;;  %v9458_v5 = vld [vmem:[#allocation3 + $0x30] sm:$0xff]  ;;  %v9476_v14 = vld [vmem:[#allocation3 + $0xd8] sm:$0xff]  ;;  %s1883_s16 = sadd.s32 4, %s9575_s6 }
  0xc1   : > { %v435_v18 = vadd.f32 %v428_v20, %v410_v7  ;;  %v477_v7 = vmul.f32 %v9260_v45, %v9423_v19  ;;  %v1133_v29 = vadd.f32 %v1126_v46, %v9333_v17  ;;  %v1160_v60 = vmul.f32 %v9443_v37, %v9268_v50  ;;  %11856 = vst [vmem:[#allocation32_spill] sm:$0xff] %v9458_v5  ;;  %v9460_v17 = vld [vmem:[#allocation3 + $0x68] sm:$0xff]  ;;  %v9478_v46 = vld [vmem:[#allocation3 + $0x110] sm:$0xff]  ;;  %s9751_s17 = sld [smem:[#allocation8 + %s1883_s16]] }
  0xc2   : > { %v384_v47 = vadd.f32 %v377_v63, %v359_v62  ;;  %v457_v12 = vadd.f32 %v450_v59, %v432_v61  ;;  %11857 = vst [vmem:[#allocation33_spill] sm:$0xff] %v9460_v17  ;;  %v9462_v62 = vld [vmem:[#allocation3 + $0xa0] sm:$0xff]  ;;  %v9465_v49 = vstv %s9411_s18  ;;  %v313_v50 = vmul.f32 %v9225_v28, %v9458_v5  ;;  %11858 = vst [vmem:[#allocation34_spill] sm:$0xff] %v9478_v46  ;;  %s1900_s18 = sadd.s32 5, %s9575_s6 }
  0xc3   : > { %v460_v20 = vadd.f32 %v9342_v21, %v435_v18  ;;  %v517_v18 = vadd.f32 %v9285_v58, %v508_v4  ;;  %v331_v59 = vmul.f32 %v9232_v30, %v9460_v17  ;;  %s9795_s25 = sld [smem:[#allocation8 + %s1900_s18]] }
  0xc4   : > { %v409_v63 = vadd.f32 %v402_v11, %v384_v47  ;;  %v482_v47 = vadd.f32 %v475_v13, %v457_v12  ;;  %v406_v13 = vmul.f32 %v9251_v42, %v9478_v46  ;;  %v9706_v46 = vstv %s9614_s11  ;;  %s9928_s11 = sadd.s32 384, %s9166_s23 }
  0xc5   : > { %v485_v21 = vadd.f32 %v478_v39, %v460_v20  ;;  %v1098_v39 = vmul.f32 %v9243_v36, %v9344_v22  ;;  %v524_v20 = vmax.f32 %v517_v18, 0.0  ;;  %v356_v22 = vmul.f32 %v9236_v32, %v9462_v62  ;;  %s2576_s9 = sadd.s32 2, %s9928_s11 }
  0xc6   : > { %v434_v0 = vadd.f32 %v427_v48, %v409_v63  ;;  %v1150_v48 = vadd.f32 %v1143_v41, %v1133_v29  ;;  %v381_v63 = vmul.f32 %v9240_v34, %v9476_v14  ;;  %v507_v5 = vadd.f32 %v500_v6, %v482_v47  ;;  %s10008_s16 = sld [smem:[#allocation8 + %s2576_s9]] }
  0xc7   : > { %v510_v11 = vadd.f32 %v9370_v40, %v485_v21  ;;  %v9484_v40 = vld [vmem:[#allocation3 + $0x148] sm:$0xff]  ;;  %v338_v21 = vadd.f32 %v331_v59, %v313_v50  ;;  %v531_v17 = vpack.c.bf16 %v524_v20, %v524_v20  ;;  %v1177_v18 = vmul.f32 %v9465_v49, %v9270_v51 }
  0xc8   : > { %11859 = vst [vmem:[#allocation35_spill] sm:$0xff] %v9484_v40  ;;  %v459_v61 = vadd.f32 %v452_v25, %v434_v0  ;;  %v431_v12 = vmul.f32 %v9254_v43, %v9484_v40  ;;  %v456_v6 = vmul.f32 %v9257_v44, %v9489_v15  ;;  %v1167_v0 = vadd.f32 %v1160_v60, %v1150_v48  ;;  %v9684_v40 = vld [vmem:[#allocation3 + $0x138] sm:$0xff] }
  0xc9   : > { %v519_v4 = vadd.f32 %v9285_v58, %v510_v11  ;;  %v363_v41 = vadd.f32 %v356_v22, %v338_v21  ;;  %965 = vmatprep.mubr.bf16.mxu0 %v531_v17  ;;  %v516_v11 = vadd.f32 %v9285_v58, %v507_v5  ;;  %v9504_v50 = vstv %s9450_s24  ;;  %v8164_v17 = vld [vmem:[%s9150_s28 + $0x100] sm:$0xff]   ;;  %s1934_s24 = sadd.s32 7, %s9575_s6 }
  0xca   : > { %v484_v25 = vadd.f32 %v477_v7, %v459_v61  ;;  %v9506_v7 = vld [vmem:[#allocation3 + $0x1b8] sm:$0xff]  ;;  %v1194_v47 = vmul.f32 %v9504_v50, %v9275_v54  ;;  %v1184_v5 = vadd.f32 %v1177_v18, %v1167_v0  ;;  %v1108_v60 = vmul.f32 %v9246_v38, %v9346_v23  ;;  %v9517_v61 = vld [vmem:[#allocation3 + $0x1f0] sm:$0xff]  ;;  %v8166_v18 = vld [vmem:[%s9150_s28 + $0x148] sm:$0xff]  }
  0xcb   : > { %v526_v29 = vmax.f32 %v519_v4, 0.0  ;;  %v388_v20 = vadd.f32 %v381_v63, %v363_v41  ;;  %11861 = vst [vmem:[#allocation37_spill] sm:$0xff] %v9506_v7  ;;  %v523_v22 = vmax.f32 %v516_v11, 0.0  ;;  %v9512_v4 = vstv %s9467_s30  ;;  %11862 = vst [vmem:[#allocation38_spill] sm:$0xff] %v9517_v61  ;;  %s9841_s30 = sld [smem:[#allocation8 + %s1934_s24]]  ;;  %s2644_s24 = sadd.s32 6, %s9928_s11 }
  0xcc   : > { %v509_v59 = vadd.f32 %v502_v53, %v484_v25  ;;  %v1211_v21 = vmul.f32 %v9512_v4, %v9277_v55  ;;  %v9522_v54 = vstv %s9480_s7  ;;  %v1201_v23 = vadd.f32 %v1194_v47, %v1184_v5  ;;  %v8168_v5 = vld [vmem:[%s9150_s28 + $0x1c8] sm:$0xff]   ;;  %s1951_s7 = sadd.s32 8, %s9575_s6  ;;  %s2559_s6 = sadd.s32 1, %s9928_s11 }
  0xcd   : > { %v533_v51 = vpack.c.bf16 %v526_v29, %v526_v29  ;;  %v413_v53 = vadd.f32 %v406_v13, %v388_v20  ;;  %v530_v63 = vpack.c.bf16 %v523_v22, %v523_v22  ;;  %v481_v29 = vmul.f32 %v9260_v45, %v9506_v7  ;;  %v8165_v13 = vld [vmem:[%s9150_s28 + $0x180] sm:$0xff]   ;;  %s9961_s8 = sld [smem:[#allocation8 + %s2559_s6]] }
  0xce   : > { %v518_v48 = vadd.f32 %v9285_v58, %v509_v59  ;;  %v1228_v25 = vmul.f32 %v9522_v54, %v9279_v56  ;;  %v1115_v0 = vadd.f32 %v1108_v60, %v1098_v39  ;;  %v1125_v55 = vmul.f32 %v9428_v26, %v9348_v24  ;;  %v8169_v24 = vld [vmem:[%s9150_s28 + $0x150] sm:$0xff]   ;;  %s10234_s6 = sld [smem:[#allocation9 + %s9928_s11]] }
  0xcf   : > { %1005 = vmatprep.mubr.bf16.mxu1 %v533_v51  ;;  %v438_v11 = vadd.f32 %v431_v12, %v413_v53  ;;  %966 = vmatmul.mubr.bf16.vlgmr.msra.gmra.mrb[0].mxu0 %v530_v63  ;;  %v8167_v51 = vld [vmem:[%s9150_s28 + $0x108] sm:$0xff]   ;;  %v506_v59 = vmul.f32 %v9282_v57, %v9517_v61  ;;  %v1218_v20 = vadd.f32 %v1211_v21, %v1201_v23  ;;  %v9536_v22 = vstv %s9496_s21  ;;  %s9870_s21 = sld [smem:[#allocation8 + %s1951_s7]] }
  0xd0   : > { %v525_v41 = vmax.f32 %v518_v48, 0.0  ;;  %v1142_v47 = vmul.f32 %v9437_v16, %v9358_v31  ;;  %7485 = vmatpush3.bf16.msra.mxu0 %v8164_v17  ;;  %v1132_v48 = vadd.f32 %v1125_v55, %v1115_v0  ;;  %v1159_v39 = vmul.f32 %v9443_v37, %v9360_v33  ;;  %v8170_v0 = vld [vmem:[%s9150_s28 + $0x188] sm:$0xff]  }
  0xd1   : > { %v463_v12 = vadd.f32 %v456_v6, %v438_v11  ;;  %7486 = vmatprep.subr.bf16.mxu0 %v8166_v18  ;;  %v1235_v60 = vadd.f32 %v1228_v25, %v1218_v20  ;;  %v1101_v53 = vmul.f32 %v9243_v36, %v9297_v1  ;;  %v1111_v31 = vmul.f32 %v9246_v38, %v9299_v2  ;;  %v8173_v25 = vld [vmem:[%s9150_s28 + $0x158] sm:$0xff]  }
  0xd2   : > { %v532_v56 = vpack.c.bf16 %v525_v41, %v525_v41  ;;  %v1149_v63 = vadd.f32 %v1142_v47, %v1132_v48  ;;  %v1128_v6 = vmul.f32 %v9428_v26, %v9301_v3  ;;  %v11863_v33 = vmov 0.0  }
  0xd3   : > { %v488_v21 = vadd.f32 %v481_v29, %v463_v12  ;;  %v1244_v17 = vadd.f32 %v9536_v22, %v1235_v60  ;;  %v1176_v1 = vmul.f32 %v9465_v49, %v9362_v35  ;;  %v1145_v18 = vmul.f32 %v9437_v16, %v9314_v8  ;;  %v8171_v29 = vld [vmem:[%s9150_s28 + $0x110] sm:$0xff]   ;;  %v8177_v12 = vld [vmem:[%s9150_s28 + $0x160] sm:$0xff]  }
  0xd4   : > { %1006 = vmatmul.mubr.bf16.vlgmr.msra.gmra.mrb[0].mxu1 %v532_v56  ;;  %7487 = vmatpush3.bf16.msra.mxu0 %v8167_v51  ;;  %v1166_v3 = vadd.f32 %v1159_v39, %v1149_v63  ;;  %v1118_v23 = vadd.f32 %v1111_v31, %v1101_v53  ;;  %v1162_v35 = vmul.f32 %v9443_v37, %v9316_v9  ;;  %v11864_v8 = vld [vmem:[#allocation24_spill] sm:$0xff]  ;;  %v11866_v60 = vld [vmem:[#allocation26_spill] sm:$0xff] }
  0xd5   : > { %7985 = vmatpush3.bf16.msra.mxu1 %v8165_v13  ;;  %7986 = vmatprep.mubr.msk.bf16.mxu1 %vm8931_vm0, %v11863_v33  ;;  %v513_v2 = vadd.f32 %v506_v59, %v488_v21  ;;  %v1251_v41 = vmax.f32 %v1244_v17, 0.0  ;;  %v1193_v55 = vmul.f32 %v9504_v50, %v11864_v8  ;;  %v8175_v59 = vld [vmem:[%s9150_s28 + $0x118] sm:$0xff]   ;;  %v11865_v56 = vld [vmem:[#allocation20_spill] sm:$0xff]  ;;  %v1100_v53 = vmul.f32 %v9243_v36, %v11866_v60  ;;  %v11867_v21 = vld [vmem:[#allocation27_spill] sm:$0xff] }
  0xd6   : > { %7508 = vmatprep.subr.bf16.mxu1 %v8168_v5  ;;  %7488 = vmatprep.subr.bf16.mxu0 %v8169_v24  ;;  %v1135_v11 = vadd.f32 %v1128_v6, %v1118_v23  ;;  %v1183_v20 = vadd.f32 %v1176_v1, %v1166_v3  ;;  %v1179_v5 = vmul.f32 %v9465_v49, %v11865_v56  ;;  %v8172_v39 = vld [vmem:[%s9150_s28 + $0x1d0] sm:$0xff]   ;;  %v8179_v6 = vld [vmem:[%s9150_s28 + $0x120] sm:$0xff]   ;;  %v9629_v33 = vld [vmem:[#allocation3 + $0x140] sm:$0xff] }
  0xd7   : > { %v522_v13 = vadd.f32 %v9285_v58, %v513_v2  ;;  %v1258_v48 = vpack.c.bf16 %v1251_v41, %v1251_v41  ;;  %v1110_v63 = vmul.f32 %v9246_v38, %v11867_v21  ;;  %v8174_v31 = vld [vmem:[%s9150_s28 + $0x190] sm:$0xff]   ;;  %v11870_v3 = vld [vmem:[#allocation22_spill] sm:$0xff]  ;;  %v9594_v41 = vld [vmem:[#allocation3 + $0x60] sm:$0xff]  ;;  %v9651_v61 = vmul.f32 %v9504_v50, %v9409_v10 }
  0xd8   : > { %7489 = vmatpush3.bf16.msra.mxu0 %v8171_v29  ;;  %v1152_v47 = vadd.f32 %v1145_v18, %v1135_v11  ;;  %v11868_v17 = vld [vmem:[#allocation25_spill] sm:$0xff]  ;;  %v9583_v18 = vmul.f32 %v9522_v54, %v9378_v52  ;;  %v9589_v23 = vmul.f32 %v9512_v4, %v11870_v3  ;;  %11872 = vst [vmem:[#allocation20_spill] sm:$0xff] %v9594_v41  ;;  %v8180_v10 = vld [vmem:[%s9150_s28 + $0x1e0] sm:$0xff]  }
  0xd9   : > { %v529_v51 = vmax.f32 %v522_v13, 0.0  ;;  %7490 = vmatprep.subr.bf16.mxu0 %v8173_v25  ;;  %v1210_v1 = vmul.f32 %v9512_v4, %v11868_v17  ;;  %v11869_v2 = vld [vmem:[#allocation21_spill] sm:$0xff]  ;;  %v9596_v13 = vld [vmem:[#allocation3 + $0x98] sm:$0xff]  ;;  %v1200_v52 = vadd.f32 %v1193_v55, %v1183_v20 }
  0xda   : > { %v1169_v24 = vadd.f32 %v1162_v35, %v1152_v47  ;;  %v1196_v29 = vmul.f32 %v9504_v50, %v11869_v2  ;;  %v9592_v25 = vld [vmem:[#allocation3 + $0x28] sm:$0xff]  ;;  %11873 = vst [vmem:[#allocation26_spill] sm:$0xff] %v9596_v13  ;;  %v11874_v35 = vld [vmem:[#allocation23_spill] sm:$0xff]  ;;  %v330_v47 = vmul.f32 %v9232_v30, %v9594_v41  ;;  %v355_v55 = vmul.f32 %v9236_v32, %v9596_v13  ;;  %v9609_v20 = vld [vmem:[#allocation3 + $0xd0] sm:$0xff] }
  0xdb   : > { %v536_v9 = vpack.c.bf16 %v529_v51, %v529_v51  ;;  %11871 = vst [vmem:[#allocation24_spill] sm:$0xff] %v9592_v25  ;;  %v9600_v8 = vmul.f32 %v9522_v54, %v11874_v35  ;;  %v8181_v51 = vld [vmem:[%s9150_s28 + $0x168] sm:$0xff]   ;;  %11875 = vst [vmem:[#allocation27_spill] sm:$0xff] %v9609_v20  ;;  %v9611_v56 = vld [vmem:[#allocation3 + $0x108] sm:$0xff]  ;;  %v380_v35 = vmul.f32 %v9240_v34, %v9609_v20 }
  0xdc   : > { %7491 = vmatpush3.bf16.msra.mxu0 %v8175_v59  ;;  %v1186_v11 = vadd.f32 %v1179_v5, %v1169_v24  ;;  %v312_v59 = vmul.f32 %v9225_v28, %v9592_v25  ;;  %v8183_v5 = vld [vmem:[%s9150_s28 + $0x128] sm:$0xff]   ;;  %v11877_v60 = vld [vmem:[#allocation29_spill] sm:$0xff]  ;;  %11880 = vst [vmem:[#allocation21_spill] sm:$0xff] %v9651_v61  ;;  %11883 = vst [vmem:[#allocation23_spill] sm:$0xff] %v9706_v46 }
  0xdd   : > { %7987 = vmatmul.mubr.msk.bf16.vlgmr.msra.gmra.mrb[4].mxu1 %vm929_vm1, %v536_v9  ;;  %7492 = vmatprep.subr.bf16.mxu0 %v8177_v12  ;;  %v1117_v12 = vadd.f32 %v1110_v63, %v1100_v53  ;;  %v11876_v9 = vld [vmem:[#allocation28_spill] sm:$0xff]  ;;  %v9622_v21 = vmul.f32 %v9437_v16, %v11877_v60  ;;  %v8178_v17 = vld [vmem:[%s9150_s28 + $0x198] sm:$0xff]   ;;  %v405_v63 = vmul.f32 %v9251_v42, %v9611_v56 }
  0xde   : > { %7509 = vmatpush3.bf16.msra.mxu1 %v8170_v0  ;;  %v8176_v0 = vld [vmem:[%s9150_s28 + $0x1d8] sm:$0xff]   ;;  %1692 = vmatprep.mubr.bf16.mxu1 %v1258_v48  ;;  %v1127_v24 = vmul.f32 %v9428_v26, %v11876_v9  ;;  %v8185_v2 = vld [vmem:[%s9150_s28 + $0x170] sm:$0xff]   ;;  %v337_v3 = vadd.f32 %v330_v47, %v312_v59  ;;  %v9633_v48 = vmul.f32 %v9443_v37, %v9401_v27  ;;  %v9641_v9 = vld [vmem:[#allocation3 + $0x20] sm:$0xff] }
  0xdf   : > { %7510 = vmatprep.subr.bf16.mxu1 %v8172_v39  ;;  %v11878_v39 = vld [vmem:[#allocation30_spill] sm:$0xff]  ;;  %v9647_v60 = vadd.f32 %v1210_v1, %v1200_v52  ;;  %v1203_v27 = vadd.f32 %v1196_v29, %v1186_v11  ;;  %v311_v7 = vmul.f32 %v9225_v28, %v9641_v9  ;;  %v9659_v52 = vld [vmem:[#allocation3 + $0xc8] sm:$0xff]  ;;  %v9661_v29 = vld [vmem:[#allocation3 + $0x100] sm:$0xff]  ;;  %v430_v11 = vmul.f32 %v9254_v43, %v9629_v33 }
  0xe0   : > { %v9637_v53 = vmul.f32 %v9465_v49, %v11878_v39  ;;  %7493 = vmatpush3.bf16.msra.mxu0 %v8179_v6  ;;  %v9643_v59 = vld [vmem:[#allocation3 + $0x58] sm:$0xff]  ;;  %v9645_v47 = vld [vmem:[#allocation3 + $0x90] sm:$0xff]  ;;  %v362_v6 = vadd.f32 %v355_v55, %v337_v3  ;;  %v9677_v55 = vmul.f32 %v9512_v4, %v9423_v19 }
  0xe1   : > { %7494 = vmatprep.subr.bf16.mxu0 %v8181_v51  ;;  %v9653_v39 = vld [vmem:[#allocation3 + $0x178] sm:$0xff]  ;;  %v329_v1 = vmul.f32 %v9232_v30, %v9643_v59  ;;  %v9669_v51 = vld [vmem:[#allocation3 + $0x1b0] sm:$0xff]  ;;  %v354_v28 = vmul.f32 %v9236_v32, %v9645_v47  ;;  %v9673_v30 = vadd.f32 %v1127_v24, %v1117_v12  ;;  %v1103_v32 = vmul.f32 %v9243_v36, %v9592_v25  ;;  %v8184_v12 = vld [vmem:[%s9150_s28 + $0x1e8] sm:$0xff]  }
  0xe2   : > { %11879 = vst [vmem:[#allocation25_spill] sm:$0xff] %v9637_v53  ;;  %7511 = vmatpush3.bf16.msra.mxu1 %v8174_v31  ;;  %v8187_v31 = vld [vmem:[%s9150_s28 + $0x130] sm:$0xff]   ;;  %11881 = vst [vmem:[#allocation22_spill] sm:$0xff] %v9677_v55  ;;  %v8189_v3 = vld [vmem:[%s9150_s28 + $0x178] sm:$0xff]   ;;  %v387_v61 = vadd.f32 %v380_v35, %v362_v6  ;;  %v379_v53 = vmul.f32 %v9240_v34, %v9659_v52  ;;  %v455_v19 = vmul.f32 %v9257_v44, %v9653_v39 }
  0xe3   : > { %7512 = vmatprep.subr.bf16.mxu1 %v8176_v0  ;;  %v8182_v0 = vld [vmem:[%s9150_s28 + $0x1a0] sm:$0xff]   ;;  %v336_v15 = vadd.f32 %v329_v1, %v311_v7  ;;  %v9692_v24 = vld [vmem:[#allocation3 + $0x1e8] sm:$0xff]  ;;  %v404_v7 = vmul.f32 %v9251_v42, %v9661_v29  ;;  %v1220_v35 = vadd.f32 %v9589_v23, %v1203_v27  ;;  %v9701_v25 = vld [vmem:[#allocation3 + $0x170] sm:$0xff]  ;;  %v1113_v55 = vmul.f32 %v9246_v38, %v9594_v41 }
  0xe4   : > { %7495 = vmatpush3.bf16.msra.mxu0 %v8183_v5  ;;  %v11882_v34 = vld [vmem:[#allocation32_spill] sm:$0xff]  ;;  %v412_v1 = vadd.f32 %v405_v63, %v387_v61  ;;  %v480_v42 = vmul.f32 %v9260_v45, %v9669_v51  ;;  %v429_v23 = vmul.f32 %v9254_v43, %v9684_v40  ;;  %v1147_v43 = vmul.f32 %v9437_v16, %v9609_v20 }
  0xe5   : > { %v9699_v6 = vmul.f32 %v9243_v36, %v11882_v34  ;;  %7496 = vmatprep.subr.bf16.mxu0 %v8185_v2  ;;  %v361_v5 = vadd.f32 %v354_v28, %v336_v15  ;;  %v9714_v61 = vld [vmem:[#allocation3 + $0x1a8] sm:$0xff]  ;;  %v1130_v15 = vmul.f32 %v9428_v26, %v9596_v13  ;;  %v8186_v63 = vld [vmem:[%s9150_s28 + $0x1a8] sm:$0xff]   ;;  %v1120_v34 = vadd.f32 %v1113_v55, %v1103_v32  ;;  %v8191_v13 = vld [vmem:[%s9150_s28 + $0x138] sm:$0xff]  }
  0xe6   : > { %7513 = vmatpush3.bf16.msra.mxu1 %v8178_v17  ;;  %v11884_v17 = vld [vmem:[#allocation33_spill] sm:$0xff]  ;;  %v437_v27 = vadd.f32 %v430_v11, %v412_v1  ;;  %v9725_v28 = vld [vmem:[#allocation3 + $0x1e0] sm:$0xff]  ;;  %v454_v41 = vmul.f32 %v9257_v44, %v9701_v25  ;;  %v1237_v11 = vadd.f32 %v9600_v8, %v1220_v35  ;;  %v9740_v20 = vstv %s9663_s26  ;;  %s9957_s26 = sld [smem:[#allocation8 + %s9928_s11]] }
  0xe7   : > { %7514 = vmatprep.subr.bf16.mxu1 %v8180_v10  ;;  %v9720_v2 = vmul.f32 %v9246_v38, %v11884_v17  ;;  %v386_v10 = vadd.f32 %v379_v53, %v361_v5  ;;  %v505_v17 = vmul.f32 %v9282_v57, %v9692_v24  ;;  %v1164_v53 = vmul.f32 %v9443_v37, %v9611_v56  ;;  %v8194_v1 = vld [vmem:[%s9150_s28 + $0x248] sm:$0xff]  }
  0xe8   : > { %7497 = vmatpush3.bf16.msra.mxu0 %v8187_v31  ;;  %v462_v55 = vadd.f32 %v455_v19, %v437_v27  ;;  %v1137_v5 = vadd.f32 %v1130_v15, %v1120_v34  ;;  %v8188_v31 = vld [vmem:[%s9150_s28 + $0x1f0] sm:$0xff]   ;;  %v479_v46 = vmul.f32 %v9260_v45, %v9714_v61  ;;  %v504_v44 = vmul.f32 %v9282_v57, %v9725_v28 }
  0xe9   : > { %7498 = vmatprep.subr.bf16.mxu0 %v8189_v3  ;;  %v411_v32 = vadd.f32 %v404_v7, %v386_v10  ;;  %v1234_v8 = vadd.f32 %v9583_v18, %v9647_v60  ;;  %v1131_v56 = vmul.f32 %v9428_v26, %v9462_v62  ;;  %v1181_v19 = vmul.f32 %v9465_v49, %v9629_v33  ;;  %v8190_v60 = vld [vmem:[%s9150_s28 + $0x1b0] sm:$0xff]  }
  0xea   : > { %7515 = vmatpush3.bf16.msra.mxu1 %v8182_v0  ;;  %v487_v0 = vadd.f32 %v480_v42, %v462_v55  ;;  %v1246_v45 = vadd.f32 %v9536_v22, %v1237_v11  ;;  %v1198_v57 = vmul.f32 %v9504_v50, %v9653_v39  ;;  %v1102_v62 = vmul.f32 %v9243_v36, %v9641_v9 }
  0xeb   : > { %7516 = vmatprep.subr.bf16.mxu1 %v8184_v12  ;;  %v436_v3 = vadd.f32 %v429_v23, %v411_v32  ;;  %v1154_v12 = vadd.f32 %v1147_v43, %v1137_v5  ;;  %v1112_v18 = vmul.f32 %v9246_v38, %v9643_v59  ;;  %v9764_v33 = vstv %s9708_s13  ;;  %s2593_s13 = sadd.s32 3, %s9928_s11 }
  0xec   : > { %7499 = vmatpush3.bf16.msra.mxu0 %v8191_v13  ;;  %v512_v7 = vadd.f32 %v505_v17, %v487_v0  ;;  %v8192_v13 = vld [vmem:[%s9150_s28 + $0x1f8] sm:$0xff]   ;;  %v1129_v39 = vmul.f32 %v9428_v26, %v9645_v47  ;;  %v1146_v36 = vmul.f32 %v9437_v16, %v9659_v52  ;;  %v9772_v38 = vstv %s9722_s14  ;;  %s2610_s14 = sadd.s32 4, %s9928_s11 }
  0xed   : > { %v461_v35 = vadd.f32 %v454_v41, %v436_v3  ;;  %7530 = vmatprep.subr.bf16.mxu0 %v8194_v1  ;;  %v1171_v42 = vadd.f32 %v1164_v53, %v1154_v12  ;;  %v1119_v23 = vadd.f32 %v1112_v18, %v1102_v62  ;;  %v1215_v27 = vmul.f32 %v9512_v4, %v9669_v51  ;;  %v8193_v53 = vld [vmem:[%s9150_s28 + $0x1b8] sm:$0xff]   ;;  %v8196_v51 = vld [vmem:[%s9150_s28 + $0x200] sm:$0xff]   ;;  %s10044_s18 = sld [smem:[#allocation8 + %s2610_s14]] }
  0xee   : > { %7517 = vmatpush3.bf16.msra.mxu1 %v8186_v63  ;;  %v521_v15 = vadd.f32 %v9285_v58, %v512_v7  ;;  %v1243_v10 = vadd.f32 %v9536_v22, %v1234_v8  ;;  %v1253_v34 = vmax.f32 %v1246_v45, 0.0  ;;  %v1151_v26 = vadd.f32 %v9622_v21, %v9673_v30 }
  0xef   : > { %7518 = vmatprep.subr.bf16.mxu1 %v8188_v31  ;;  %v486_v41 = vadd.f32 %v479_v46, %v461_v35  ;;  %v1188_v63 = vadd.f32 %v1181_v19, %v1171_v42  ;;  %v1136_v43 = vadd.f32 %v1129_v39, %v1119_v23  ;;  %v1232_v55 = vmul.f32 %v9522_v54, %v9692_v24  ;;  %v8195_v24 = vld [vmem:[%s9150_s28 + $0x208] sm:$0xff]   ;;  %v8198_v42 = vld [vmem:[%s9150_s28 + $0x250] sm:$0xff]  }
  0xf0   : > { %v528_v17 = vmax.f32 %v521_v15, 0.0  ;;  %v1163_v1 = vmul.f32 %v9443_v37, %v9661_v29  ;;  %v1121_v21 = vadd.f32 %v9720_v2, %v9699_v6  ;;  %v9790_v30 = vstv %s9751_s17  ;;  %v11885_v6 = vld [vmem:[#allocation34_spill] sm:$0xff]  ;;  %v9814_v23 = vld [vmem:[#allocation3 + $0x40] sm:$0xff]  ;;  %v8199_v15 = vld [vmem:[%s9150_s28 + $0x210] sm:$0xff]   ;;  %s10028_s17 = sld [smem:[#allocation8 + %s2593_s13]] }
  0xf1   : > { %v511_v11 = vadd.f32 %v504_v44, %v486_v41  ;;  %v1205_v46 = vadd.f32 %v1198_v57, %v1188_v63  ;;  %v1153_v32 = vadd.f32 %v1146_v36, %v1136_v43  ;;  %v1148_v8 = vmul.f32 %v9437_v16, %v9476_v14  ;;  %v8200_v14 = vld [vmem:[%s9150_s28 + $0x2c8] sm:$0xff]   ;;  %v9818_v36 = vld [vmem:[#allocation3 + $0x78] sm:$0xff]  ;;  %v11888_v63 = vld [vmem:[#allocation25_spill] sm:$0xff] }
  0xf2   : > { %7519 = vmatpush3.bf16.msra.mxu1 %v8190_v60  ;;  %v535_v5 = vpack.c.bf16 %v528_v17, %v528_v17  ;;  %v1250_v0 = vmax.f32 %v1243_v10, 0.0  ;;  %v1168_v3 = vadd.f32 %v9633_v48, %v1151_v26  ;;  %v1138_v12 = vadd.f32 %v1131_v56, %v1121_v21  ;;  %v11886_v56 = vld [vmem:[#allocation35_spill] sm:$0xff]  ;;  %v11890_v21 = vld [vmem:[#allocation37_spill] sm:$0xff] }
  0xf3   : > { %7520 = vmatprep.subr.bf16.mxu1 %v8192_v13  ;;  %v520_v31 = vadd.f32 %v9285_v58, %v511_v11  ;;  %v1222_v44 = vadd.f32 %v1215_v27, %v1205_v46  ;;  %v1165_v2 = vmul.f32 %v9443_v37, %v11885_v6  ;;  %v8197_v58 = vld [vmem:[%s9150_s28 + $0x1c0] sm:$0xff]   ;;  %v1260_v45 = vpack.c.bf16 %v1253_v34, %v1253_v34  ;;  %v9808_v37 = vld [vmem:[#allocation3 + $0x8] sm:$0xff]  ;;  %v8202_v43 = vld [vmem:[%s9150_s28 + $0x288] sm:$0xff]  }
  0xf4   : > { %1045 = vmatprep.mubr.bf16.mxu0 %v535_v5  ;;  %v1180_v16 = vmul.f32 %v9465_v49, %v9684_v40  ;;  %v1170_v62 = vadd.f32 %v1163_v1, %v1153_v32  ;;  %v1155_v48 = vadd.f32 %v1148_v8, %v1138_v12  ;;  %v1182_v18 = vmul.f32 %v9465_v49, %v11886_v56  ;;  %v11887_v60 = vld [vmem:[#allocation23_spill] sm:$0xff]  ;;  %v11889_v34 = vld [vmem:[#allocation36_spill] sm:$0xff]  ;;  %v9834_v46 = vld [vmem:[#allocation3 + $0xb0] sm:$0xff] }
  0xf5   : > { %v527_v19 = vmax.f32 %v520_v31, 0.0  ;;  %v1239_v57 = vadd.f32 %v1232_v55, %v1222_v44  ;;  %v1826_v7 = vmul.f32 %v9808_v37, %v11887_v60  ;;  %v1836_v39 = vmul.f32 %v9814_v23, %v9740_v20  ;;  %v11891_v44 = vld [vmem:[#allocation38_spill] sm:$0xff]  ;;  %v9851_v6 = vld [vmem:[#allocation3 + $0xe8] sm:$0xff] }
  0xf6   : > { %7521 = vmatpush3.bf16.msra.mxu1 %v8193_v53  ;;  %v1853_v49 = vmul.f32 %v9818_v36, %v9764_v33  ;;  %v1257_v41 = vpack.c.bf16 %v1250_v0, %v1250_v0  ;;  %v1185_v27 = vadd.f32 %v11888_v63, %v1168_v3  ;;  %v1172_v10 = vadd.f32 %v1165_v2, %v1155_v48  ;;  %v8203_v3 = vld [vmem:[%s9150_s28 + $0x218] sm:$0xff]   ;;  %v9865_v56 = vld [vmem:[#allocation3 + $0x88] sm:$0xff] }
  0xf7   : > { %7522 = vmatprep.subr.bf16.mxu1 %v8196_v51  ;;  %v534_v35 = vpack.c.bf16 %v527_v19, %v527_v19  ;;  %v1248_v13 = vadd.f32 %v9536_v22, %v1239_v57  ;;  %v1199_v26 = vmul.f32 %v9504_v50, %v11889_v34  ;;  %v1197_v11 = vmul.f32 %v9504_v50, %v9701_v25  ;;  %v8204_v51 = vld [vmem:[%s9150_s28 + $0x2d0] sm:$0xff]   ;;  %v8201_v50 = vld [vmem:[%s9150_s28 + $0x258] sm:$0xff]   ;;  %v9855_v19 = vld [vmem:[#allocation3 + $0x18] sm:$0xff] }
  0xf8   : > { %v1843_v53 = vadd.f32 %v1836_v39, %v1826_v7  ;;  %v1870_v55 = vmul.f32 %v9834_v46, %v9772_v38  ;;  %v1187_v32 = vadd.f32 %v1180_v16, %v1170_v62  ;;  %v1189_v1 = vadd.f32 %v1182_v18, %v1172_v10  ;;  %v8206_v16 = vld [vmem:[%s9150_s28 + $0x290] sm:$0xff]   ;;  %v8208_v7 = vld [vmem:[%s9150_s28 + $0x2d8] sm:$0xff]   ;;  %v8207_v10 = vld [vmem:[%s9150_s28 + $0x220] sm:$0xff]  }
  0xf9   : > { %1046 = vmatmul.mubr.bf16.vlgmr.msra.gmra.mrb[4].mxu0 %v534_v35  ;;  %v1255_v17 = vmax.f32 %v1248_v13, 0.0  ;;  %v1216_v5 = vmul.f32 %v9512_v4, %v11890_v21  ;;  %v1233_v8 = vmul.f32 %v9522_v54, %v11891_v44  ;;  %v1887_v2 = vmul.f32 %v9851_v6, %v9790_v30  ;;  %v9872_v13 = vld [vmem:[#allocation3 + $0xc0] sm:$0xff]  ;;  %v8212_v21 = vld [vmem:[%s9150_s28 + $0x2e0] sm:$0xff]  }
  0xfa   : > { %7523 = vmatpush3.bf16.msra.mxu1 %v8197_v58  ;;  %7531 = vmatpush3.bf16.msra.mxu0 %v8195_v24  ;;  %v1860_v0 = vadd.f32 %v1853_v49, %v1843_v53  ;;  %v9847_v24 = vstv %s9795_s25  ;;  %v1206_v12 = vadd.f32 %v1199_v26, %v1189_v1  ;;  %v1828_v58 = vmul.f32 %v9855_v19, %v11887_v60  ;;  %v8205_v49 = vld [vmem:[%s9150_s28 + $0x260] sm:$0xff]   ;;  %s2627_s25 = sadd.s32 5, %s9928_s11 }
  0xfb   : > { %7552 = vmatprep.subr.bf16.mxu1 %v8200_v14  ;;  %7532 = vmatprep.subr.bf16.mxu0 %v8198_v42  ;;  %v1262_v31 = vpack.c.bf16 %v1255_v17, %v1255_v17  ;;  %v11892_v14 = vld [vmem:[#allocation21_spill] sm:$0xff]  ;;  %v1855_v18 = vmul.f32 %v9865_v56, %v9764_v33  ;;  %11893 = vst [vmem:[#allocation28_spill] sm:$0xff] %v9872_v13  ;;  %v9884_v17 = vld [vmem:[#allocation3 + $0xf8] sm:$0xff]  ;;  %v9893_v1 = vstv %s9829_s27  ;;  %s10089_s15 = sld [smem:[#allocation8 + %s2627_s25]] }
  0xfc   : > { %1732 = vmatprep.mubr.bf16.mxu0 %v1260_v45  ;;  %v9859_v45 = vld [vmem:[#allocation3 + $0x50] sm:$0xff]  ;;  %v1202_v62 = vadd.f32 %v11892_v14, %v1185_v27  ;;  %v1877_v48 = vadd.f32 %v1870_v55, %v1860_v0  ;;  %v1223_v35 = vadd.f32 %v1216_v5, %v1206_v12  ;;  %v1872_v39 = vmul.f32 %v9872_v13, %v9772_v38  ;;  %s10125_s27 = sld [smem:[#allocation8 + %s2644_s24]] }
  0xfd   : > { %1693 = vmatmul.mubr.bf16.vlgmr.msra.gmra.mrb[8].mxu1 %v1257_v41  ;;  %v1838_v57 = vmul.f32 %v9859_v45, %v9740_v20  ;;  %v1204_v41 = vadd.f32 %v1197_v11, %v1187_v32  ;;  %v1214_v63 = vmul.f32 %v9512_v4, %v9714_v61  ;;  %11894 = vst [vmem:[#allocation29_spill] sm:$0xff] %v9884_v17  ;;  %v8210_v11 = vld [vmem:[%s9150_s28 + $0x298] sm:$0xff]  }
  0xfe   : > { %7553 = vmatpush3.bf16.msra.mxu1 %v8202_v43  ;;  %1772 = vmatprep.mubr.bf16.mxu1 %v1262_v31  ;;  %v1240_v34 = vadd.f32 %v1233_v8, %v1223_v35  ;;  %v1894_v26 = vadd.f32 %v1887_v2, %v1877_v48  ;;  %v1889_v53 = vmul.f32 %v9884_v17, %v9790_v30  ;;  %v11895_v4 = vld [vmem:[#allocation22_spill] sm:$0xff]  ;;  %v8209_v8 = vld [vmem:[%s9150_s28 + $0x268] sm:$0xff]  }
  0xff   : > { %7533 = vmatpush3.bf16.msra.mxu0 %v8199_v15  ;;  %7554 = vmatprep.subr.bf16.mxu1 %v8204_v51  ;;  %v1845_v42 = vadd.f32 %v1838_v57, %v1828_v58  ;;  %v9879_v15 = vld [vmem:[#allocation3 + $0x120] sm:$0xff]  ;;  %v1219_v55 = vadd.f32 %v11895_v4, %v1202_v62  ;;  %v9899_v31 = vld [vmem:[#allocation3 + $0x130] sm:$0xff]  ;;  %v1221_v0 = vadd.f32 %v1214_v63, %v1204_v41  ;;  %v9910_v57 = vld [vmem:[#allocation3 + $0x158] sm:$0xff]  ;;  %v9932_v41 = vstv %s9870_s21  ;;  %s2678_s21 = sadd.s32 8, %s9928_s11 }
 0x100   : > { %7534 = vmatprep.subr.bf16.mxu0 %v8201_v50  ;;  %v1904_v27 = vmul.f32 %v9879_v15, %v9847_v24  ;;  %v11896_v51 = vld [vmem:[#allocation31_spill] sm:$0xff]  ;;  %v9897_v5 = vadd.f32 %v9536_v22, %v1240_v34  ;;  %11897 = vst [vmem:[#allocation30_spill] sm:$0xff] %v9899_v31  ;;  %v1906_v44 = vmul.f32 %v9899_v31, %v9847_v24  ;;  %v9914_v62 = vld [vmem:[#allocation3 + $0x168] sm:$0xff] }
 0x101   : > { %v1862_v43 = vadd.f32 %v1855_v18, %v1845_v42  ;;  %v1229_v32 = vmul.f32 %v9522_v54, %v11896_v51  ;;  %v1231_v12 = vmul.f32 %v9522_v54, %v9725_v28  ;;  %v8211_v2 = vld [vmem:[%s9150_s28 + $0x228] sm:$0xff]   ;;  %11898 = vst [vmem:[#allocation32_spill] sm:$0xff] %v9914_v62  ;;  %v1923_v48 = vmul.f32 %v9914_v62, %v9893_v1  ;;  %v8214_v54 = vld [vmem:[%s9150_s28 + $0x2a0] sm:$0xff]  }
 0x102   : > { %7555 = vmatpush3.bf16.msra.mxu1 %v8206_v16  ;;  %v1911_v58 = vadd.f32 %v1904_v27, %v1894_v26  ;;  %v1921_v16 = vmul.f32 %v9910_v57, %v9893_v1  ;;  %v9919_v18 = vld [vmem:[#allocation3] sm:$0xff]  ;;  %v9923_v35 = vld [vmem:[#allocation3 + $0x38] sm:$0xff]  ;;  %v8213_v26 = vld [vmem:[%s9150_s28 + $0x270] sm:$0xff]  }
 0x103   : > { %7535 = vmatpush3.bf16.msra.mxu0 %v8203_v3  ;;  %7556 = vmatprep.subr.bf16.mxu1 %v8208_v7  ;;  %v1879_v50 = vadd.f32 %v1872_v39, %v1862_v43  ;;  %v9907_v3 = vstv %s9841_s30  ;;  %v1825_v7 = vmul.f32 %v9919_v18, %v11887_v60  ;;  %v1835_v42 = vmul.f32 %v9923_v35, %v9740_v20  ;;  %v8216_v39 = vld [vmem:[%s9150_s28 + $0x2e8] sm:$0xff]   ;;  %s2661_s30 = sadd.s32 7, %s9928_s11  ;;  %s10335_s11 = sadd.s32 512, %s9166_s23 }
 0x104   : > { %7536 = vmatprep.subr.bf16.mxu0 %v8205_v49  ;;  %v1236_v49 = vadd.f32 %v1229_v32, %v1219_v55  ;;  %v9937_v27 = vld [vmem:[#allocation3 + $0x1a0] sm:$0xff]  ;;  %v1238_v43 = vadd.f32 %v1231_v12, %v1221_v0  ;;  %v8541_v32 = vld [vmem:[#allocation3 + $0x1d8] sm:$0xff]  ;;  %v8220_v0 = vld [vmem:[%s9150_s28 + $0x2f0] sm:$0xff]   ;;  %s10158_s7 = sld [smem:[#allocation8 + %s2661_s30]]  ;;  %s3303_s13 = sadd.s32 2, %s10335_s11 }
 0x105   : > { %v1896_v14 = vadd.f32 %v1889_v53, %v1879_v50  ;;  %11899 = vst [vmem:[#allocation33_spill] sm:$0xff] %v9937_v27  ;;  %v1940_v34 = vmul.f32 %v9937_v27, %v9907_v3  ;;  %v1928_v53 = vadd.f32 %v1921_v16, %v1911_v58  ;;  %v8218_v51 = vld [vmem:[%s9150_s28 + $0x2a8] sm:$0xff]   ;;  %v1842_v50 = vadd.f32 %v1835_v42, %v1825_v7  ;;  %v8217_v16 = vld [vmem:[%s9150_s28 + $0x278] sm:$0xff]   ;;  %v9964_v7 = vld [vmem:[#allocation3 + $0x1c8] sm:$0xff]  ;;  %s10378_s14 = sld [smem:[#allocation8 + %s3303_s13]]  ;;  %s3354_s25 = sadd.s32 5, %s10335_s11 }
 0x106   : > { %7557 = vmatpush3.bf16.msra.mxu1 %v8210_v11  ;;  %v9943_v11 = vld [vmem:[#allocation3 + $0x190] sm:$0xff]  ;;  %v1245_v12 = vadd.f32 %v9536_v22, %v1236_v49  ;;  %v9972_v49 = vld [vmem:[#allocation3 + $0x48] sm:$0xff]  ;;  %v8221_v27 = vld [vmem:[%s9150_s28 + $0x280] sm:$0xff]  }
 0x107   : > { %7537 = vmatpush3.bf16.msra.mxu0 %v8207_v10  ;;  %7558 = vmatprep.subr.bf16.mxu1 %v8212_v21  ;;  %v1913_v63 = vadd.f32 %v1906_v44, %v1896_v14  ;;  %v8215_v10 = vld [vmem:[%s9150_s28 + $0x230] sm:$0xff]   ;;  %v1938_v4 = vmul.f32 %v9943_v11, %v9907_v3  ;;  %v1957_v21 = vmul.f32 %v8541_v32, %v9932_v41  ;;  %v9950_v44 = vld [vmem:[#allocation3 + $0x70] sm:$0xff]  ;;  %v9985_v32 = vstv %s9935_s12  ;;  %s10181_s12 = sld [smem:[#allocation8 + %s2678_s21]] }
 0x108   : > { %7538 = vmatprep.subr.bf16.mxu0 %v8209_v8  ;;  %v1852_v8 = vmul.f32 %v9950_v44, %v9764_v33  ;;  %v1247_v14 = vadd.f32 %v9536_v22, %v1238_v43  ;;  %v9968_v42 = vld [vmem:[#allocation3 + $0x10] sm:$0xff]  ;;  %11901 = vst [vmem:[#allocation35_spill] sm:$0xff] %v9972_v49  ;;  %v1837_v22 = vmul.f32 %v9972_v49, %v9740_v20  ;;  %v9978_v43 = vld [vmem:[#allocation3 + $0xa8] sm:$0xff]  ;;  %v8223_v49 = vld [vmem:[%s9150_s28 + $0x240] sm:$0xff]  }
 0x109   : > { %v1930_v55 = vadd.f32 %v1923_v48, %v1913_v63  ;;  %v8219_v48 = vld [vmem:[%s9150_s28 + $0x238] sm:$0xff]   ;;  %11900 = vst [vmem:[#allocation34_spill] sm:$0xff] %v9968_v42  ;;  %v8222_v63 = vld [vmem:[%s9150_s28 + $0x2b0] sm:$0xff]   ;;  %11902 = vst [vmem:[#allocation23_spill] sm:$0xff] %v9978_v43 }
 0x10a   : > { %7559 = vmatpush3.bf16.msra.mxu1 %v8214_v54  ;;  %v1945_v54 = vadd.f32 %v1938_v4, %v1928_v53  ;;  %v1869_v53 = vmul.f32 %v9978_v43, %v9772_v38  ;;  %v8224_v4 = vld [vmem:[%s9150_s28 + $0x2f8] sm:$0xff]  }
 0x10b   : > { %7539 = vmatpush3.bf16.msra.mxu0 %v8211_v2  ;;  %7560 = vmatprep.subr.bf16.mxu1 %v8216_v39  ;;  %v1947_v58 = vadd.f32 %v1940_v34, %v1930_v55  ;;  %v1955_v2 = vmul.f32 %v9964_v7, %v9932_v41  ;;  %v1827_v39 = vmul.f32 %v9968_v42, %v11887_v60  ;;  %v1252_v55 = vmax.f32 %v1245_v12, 0.0  ;;  %v9997_v42 = vld [vmem:[#allocation3 + $0xe0] sm:$0xff] }
 0x10c   : > { %7540 = vmatprep.subr.bf16.mxu0 %v8213_v26  ;;  %v1859_v26 = vadd.f32 %v1852_v8, %v1842_v50  ;;  %v9989_v8 = vld [vmem:[#allocation3 + $0x80] sm:$0xff]  ;;  %11904 = vst [vmem:[#allocation36_spill] sm:$0xff] %v9997_v42 }
 0x10d   : > { %v1964_v34 = vadd.f32 %v1957_v21, %v1947_v58  ;;  %v1962_v21 = vadd.f32 %v1955_v2, %v1945_v54  ;;  %v1844_v50 = vadd.f32 %v1837_v22, %v1827_v39  ;;  %11903 = vst [vmem:[#allocation25_spill] sm:$0xff] %v9989_v8  ;;  %v1854_v58 = vmul.f32 %v9989_v8, %v9764_v33  ;;  %v8226_v2 = vld [vmem:[%s9150_s28 + $0x300] sm:$0xff]   ;;  %v11905_v39 = vld [vmem:[#allocation24_spill] sm:$0xff] }
 0x10e   : > { %7561 = vmatpush3.bf16.msra.mxu1 %v8218_v51  ;;  %v1254_v51 = vmax.f32 %v1247_v14, 0.0  ;;  %v1886_v14 = vmul.f32 %v9997_v42, %v9790_v30  ;;  %v1259_v54 = vpack.c.bf16 %v1252_v55, %v1252_v55  ;;  %v1830_v22 = vmul.f32 %v11887_v60, %v11905_v39  ;;  %v10022_v55 = vld [vmem:[#allocation3 + $0x68] sm:$0xff] }
 0x10f   : > { %7541 = vmatpush3.bf16.msra.mxu0 %v8215_v10  ;;  %7562 = vmatprep.subr.bf16.mxu1 %v8220_v0  ;;  %v8225_v10 = vld [vmem:[%s9150_s28 + $0x2b8] sm:$0xff]   ;;  %v1256_v0 = vmax.f32 %v9897_v5, 0.0  ;;  %v1973_v12 = vadd.f32 %v9985_v32, %v1964_v34  ;;  %11909 = vst [vmem:[#allocation21_spill] sm:$0xff] %v10022_v55  ;;  %v1971_v39 = vadd.f32 %v9985_v32, %v1962_v21  ;;  %v8228_v21 = vld [vmem:[%s9150_s28 + $0x308] sm:$0xff]  }
 0x110   : > { %7542 = vmatprep.subr.bf16.mxu0 %v8217_v16  ;;  %v1876_v16 = vadd.f32 %v1869_v53, %v1859_v26  ;;  %v10010_v34 = vpack.c.bf16 %v1254_v51, %v1254_v51  ;;  %v10012_v26 = vld [vmem:[#allocation3 + $0x118] sm:$0xff]  ;;  %v10018_v53 = vld [vmem:[#allocation3 + $0x30] sm:$0xff]  ;;  %v1861_v62 = vadd.f32 %v1854_v58, %v1844_v50  ;;  %v8229_v58 = vld [vmem:[%s9150_s28 + $0x350] sm:$0xff]  }
 0x111   : > { %11907 = vst [vmem:[#allocation37_spill] sm:$0xff] %v10012_v26  ;;  %11908 = vst [vmem:[#allocation38_spill] sm:$0xff] %v10018_v53  ;;  %v8227_v51 = vld [vmem:[%s9150_s28 + $0x2c0] sm:$0xff]   ;;  %v10047_v42 = vpack.c.bf16 %v1256_v0, %v1256_v0  ;;  %v1980_v17 = vmax.f32 %v1973_v12, 0.0  ;;  %v10061_v0 = vstv %s9957_s26  ;;  %v11914_v12 = vmov 0.0   ;;  %s3286_s26 = sadd.s32 1, %s10335_s11 }
 0x112   : > { %7563 = vmatpush3.bf16.msra.mxu1 %v8222_v63  ;;  %v11906_v63 = vld [vmem:[#allocation20_spill] sm:$0xff]  ;;  %s10363_s9 = sld [smem:[#allocation8 + %s3286_s26]]  ;;  %s10539_s26 = sadd.s32 640, %s9166_s23 }
 0x113   : > { %7543 = vmatpush3.bf16.msra.mxu0 %v8219_v48  ;;  %7564 = vmatprep.subr.bf16.mxu1 %v8224_v4  ;;  %v1840_v5 = vmul.f32 %v9740_v20, %v11906_v63  ;;  %v10016_v48 = vmul.f32 %v10012_v26, %v9847_v24  ;;  %v1831_v4 = vmul.f32 %v10018_v53, %v11887_v60  ;;  %v10032_v63 = vld [vmem:[#allocation3 + $0x150] sm:$0xff]  ;;  %v10038_v26 = vld [vmem:[#allocation3 + $0xb8] sm:$0xff] }
 0x114   : > { %7544 = vmatprep.subr.bf16.mxu0 %v8221_v27  ;;  %v1841_v27 = vmul.f32 %v10022_v55, %v9740_v20  ;;  %11910 = vst [vmem:[#allocation22_spill] sm:$0xff] %v10032_v63  ;;  %v10036_v8 = vmul.f32 %v10032_v63, %v9893_v1  ;;  %11911 = vst [vmem:[#allocation31_spill] sm:$0xff] %v10038_v26  ;;  %v1871_v31 = vmul.f32 %v10038_v26, %v9772_v38  ;;  %v10051_v63 = vld [vmem:[#allocation3 + $0xf0] sm:$0xff] }
 0x115   : > { %v10049_v55 = vadd.f32 %v1886_v14, %v1876_v16  ;;  %11912 = vst [vmem:[#allocation24_spill] sm:$0xff] %v10051_v63  ;;  %v1888_v50 = vmul.f32 %v10051_v63, %v9790_v30  ;;  %v1847_v26 = vadd.f32 %v1840_v5, %v1830_v22  ;;  %v11913_v53 = vld [vmem:[#allocation26_spill] sm:$0xff]  ;;  %v8230_v16 = vld [vmem:[%s9150_s28 + $0x3d0] sm:$0xff]   ;;  %v10072_v22 = vld [vmem:[#allocation3 + $0xa0] sm:$0xff]  ;;  %v1978_v5 = vmax.f32 %v1971_v39, 0.0 }
 0x116   : > { %7565 = vmatpush3.bf16.msra.mxu1 %v8225_v10  ;;  %v1857_v43 = vmul.f32 %v9764_v33, %v11913_v53  ;;  %v1829_v10 = vmul.f32 %v11887_v60, %v9641_v9  ;;  %v10066_v14 = vld [vmem:[#allocation3 + $0x128] sm:$0xff]  ;;  %11916 = vst [vmem:[#allocation26_spill] sm:$0xff] %v10072_v22  ;;  %v1858_v9 = vmul.f32 %v10072_v22, %v9764_v33  ;;  %v8557_v63 = vld [vmem:[#allocation3 + $0x160] sm:$0xff] }
 0x117   : > { %7545 = vmatpush3.bf16.msra.mxu0 %v8223_v49  ;;  %7566 = vmatprep.subr.bf16.mxu1 %v8226_v2  ;;  %11915 = vst [vmem:[#allocation20_spill] sm:$0xff] %v10066_v14  ;;  %v10070_v49 = vmul.f32 %v10066_v14, %v9847_v24  ;;  %v1848_v2 = vadd.f32 %v1841_v27, %v1831_v4  ;;  %v8232_v4 = vld [vmem:[%s9150_s28 + $0x390] sm:$0xff]  }
 0x118   : > { %7990 = vmatprep.subr.bf16.mxu0 %v11914_v12  ;;  %v1839_v60 = vmul.f32 %v9740_v20, %v9643_v59  ;;  %v1878_v53 = vadd.f32 %v1871_v31, %v1861_v62  ;;  %v10079_v13 = vmul.f32 %v8557_v63, %v9893_v1  ;;  %v1856_v14 = vmul.f32 %v9764_v33, %v9645_v47  ;;  %v8234_v47 = vld [vmem:[%s9150_s28 + $0x3d8] sm:$0xff]   ;;  %v10094_v33 = vld [vmem:[#allocation3 + $0xd8] sm:$0xff] }
 0x119   : > { %v1987_v27 = vpack.c.bf16 %v1980_v17, %v1980_v17  ;;  %v1873_v20 = vmul.f32 %v9772_v38, %v9659_v52  ;;  %v10087_v59 = vstv %s9961_s8  ;;  %v1875_v17 = vmul.f32 %v10094_v33, %v9772_v38  ;;  %v11917_v62 = vld [vmem:[#allocation27_spill] sm:$0xff]  ;;  %s10356_s8 = sld [smem:[#allocation8 + %s10335_s11]] }
 0x11a   : > { %1733 = vmatmul.mubr.bf16.vlgmr.msra.gmra.mrb[8].mxu0 %v1259_v54  ;;  %7567 = vmatpush3.bf16.msra.mxu1 %v8227_v51  ;;  %v1846_v22 = vadd.f32 %v1839_v60, %v1829_v10  ;;  %v1864_v31 = vadd.f32 %v1857_v43, %v1847_v26  ;;  %v1874_v52 = vmul.f32 %v9772_v38, %v11917_v62  ;;  %v10101_v54 = vstv %s10008_s16  ;;  %v8231_v43 = vld [vmem:[%s9150_s28 + $0x310] sm:$0xff]   ;;  %s3320_s16 = sadd.s32 3, %s10335_s11 }
 0x11b   : > { %7991 = vmatpush3.bf16.msra.mxu0 %v8228_v21  ;;  %7992 = vmatprep.mubr.msk.bf16.mxu0 %vm8931_vm0, %v11914_v12  ;;  %v1865_v51 = vadd.f32 %v1858_v9, %v1848_v2  ;;  %v1890_v63 = vmul.f32 %v9790_v30, %v9661_v29  ;;  %v10107_v21 = vstv %s10028_s17  ;;  %v1985_v26 = vpack.c.bf16 %v1978_v5, %v1978_v5  ;;  %v10116_v29 = vld [vmem:[#allocation3 + $0x108] sm:$0xff]  ;;  %v8233_v5 = vld [vmem:[%s9150_s28 + $0x358] sm:$0xff]   ;;  %s10404_s17 = sld [smem:[#allocation8 + %s3320_s16]] }
 0x11c   : > { %7576 = vmatprep.subr.bf16.mxu0 %v8229_v58  ;;  %7598 = vmatprep.subr.bf16.mxu1 %v8230_v16  ;;  %v1863_v39 = vadd.f32 %v1856_v14, %v1846_v22  ;;  %v1895_v38 = vadd.f32 %v1888_v50, %v1878_v53  ;;  %v2553_v10 = vmul.f32 %v9808_v37, %v10061_v0  ;;  %v8236_v16 = vld [vmem:[%s9150_s28 + $0x398] sm:$0xff]   ;;  %v10123_v2 = vstv %s10044_s18  ;;  %v8238_v37 = vld [vmem:[%s9150_s28 + $0x3e0] sm:$0xff]   ;;  %v10149_v62 = vld [vmem:[#allocation3 + $0x148] sm:$0xff]  ;;  %s3337_s18 = sadd.s32 4, %s10335_s11 }
 0x11d   : > { %1773 = vmatmul.mubr.bf16.vlgmr.msra.gmra.mrb[12].mxu1 %v10010_v34  ;;  %v2563_v58 = vmul.f32 %v9814_v23, %v10087_v59  ;;  %v1891_v34 = vmul.f32 %v10116_v29, %v9790_v30  ;;  %v1907_v50 = vmul.f32 %v9847_v24, %v9684_v40  ;;  %v1881_v23 = vadd.f32 %v1874_v52, %v1864_v31  ;;  %v10134_v40 = vld [vmem:[#allocation3 + $0x110] sm:$0xff]  ;;  %s10428_s24 = sld [smem:[#allocation8 + %s3337_s18]] }
 0x11e   : > { %7599 = vmatpush3.bf16.msra.mxu1 %v8232_v4  ;;  %2459 = vmatprep.mubr.bf16.mxu1 %v1987_v27  ;;  %v1880_v14 = vadd.f32 %v1873_v20, %v1863_v39  ;;  %v2580_v9 = vmul.f32 %v9818_v36, %v10101_v54  ;;  %v2597_v60 = vmul.f32 %v9834_v46, %v10107_v21 }
 0x11f   : > { %7600 = vmatprep.subr.bf16.mxu1 %v8234_v47  ;;  %v2570_v22 = vadd.f32 %v2563_v58, %v2553_v10  ;;  %v1882_v53 = vadd.f32 %v1875_v17, %v1865_v51  ;;  %v1892_v4 = vmul.f32 %v10134_v40, %v9790_v30  ;;  %v1924_v20 = vmul.f32 %v9893_v1, %v9701_v25  ;;  %v8235_v47 = vld [vmem:[%s9150_s28 + $0x318] sm:$0xff]   ;;  %v8240_v30 = vld [vmem:[%s9150_s28 + $0x3a0] sm:$0xff]  }
 0x120   : > { %v1897_v27 = vadd.f32 %v1890_v63, %v1880_v14  ;;  %v1910_v36 = vadd.f32 %v10016_v48, %v10049_v55  ;;  %v1912_v46 = vadd.f32 %v10070_v49, %v1895_v38  ;;  %v2614_v17 = vmul.f32 %v9851_v6, %v10123_v2  ;;  %v8242_v6 = vld [vmem:[%s9150_s28 + $0x3e8] sm:$0xff]   ;;  %v8239_v10 = vld [vmem:[%s9150_s28 + $0x320] sm:$0xff]  }
 0x121   : > { %v2587_v31 = vadd.f32 %v2580_v9, %v2570_v22  ;;  %v1909_v25 = vmul.f32 %v10149_v62, %v9847_v24  ;;  %v1941_v48 = vmul.f32 %v9907_v3, %v9714_v61  ;;  %v10156_v55 = vstv %s10089_s15  ;;  %v10161_v49 = vld [vmem:[#allocation3 + $0x140] sm:$0xff]  ;;  %v8237_v61 = vld [vmem:[%s9150_s28 + $0x360] sm:$0xff]   ;;  %s3371_s15 = sadd.s32 6, %s10335_s11 }
 0x122   : > { %7993 = vmatmul.mubr.msk.bf16.vlgmr.msra.gmra.mrb[12].mxu0 %vm929_vm1, %v10047_v42  ;;  %7601 = vmatpush3.bf16.msra.mxu1 %v8236_v16  ;;  %v1914_v52 = vadd.f32 %v1907_v50, %v1897_v27  ;;  %v1898_v42 = vadd.f32 %v1891_v34, %v1881_v23  ;;  %v1908_v51 = vmul.f32 %v10161_v49, %v9847_v24  ;;  %v10171_v16 = vld [vmem:[#allocation3 + $0x198] sm:$0xff]  ;;  %s10448_s30 = sld [smem:[#allocation8 + %s3371_s15]] }
 0x123   : > { %7577 = vmatpush3.bf16.msra.mxu0 %v8231_v43  ;;  %7602 = vmatprep.subr.bf16.mxu1 %v8238_v37  ;;  %v2604_v39 = vadd.f32 %v2597_v60, %v2587_v31  ;;  %v1899_v63 = vadd.f32 %v1892_v4, %v1882_v53  ;;  %v1958_v43 = vmul.f32 %v9932_v41, %v9725_v28  ;;  %v10179_v37 = vstv %s10125_s27  ;;  %v8246_v28 = vld [vmem:[%s9150_s28 + $0x3f0] sm:$0xff]   ;;  %v10188_v9 = vld [vmem:[#allocation3 + $0x178] sm:$0xff]  ;;  %v8241_v60 = vld [vmem:[%s9150_s28 + $0x368] sm:$0xff]   ;;  %s10436_s27 = sld [smem:[#allocation8 + %s3354_s25]]  ;;  %s4064_s25 = sadd.s32 4, %s10539_s26 }
 0x124   : > { %7578 = vmatprep.subr.bf16.mxu0 %v8233_v5  ;;  %2419 = vmatprep.mubr.bf16.mxu0 %v1985_v26  ;;  %v1931_v38 = vadd.f32 %v1924_v20, %v1914_v52  ;;  %v1929_v58 = vadd.f32 %v10079_v13, %v1912_v46  ;;  %v1939_v24 = vmul.f32 %v10171_v16, %v9907_v3  ;;  %v8244_v26 = vld [vmem:[%s9150_s28 + $0x3a8] sm:$0xff]   ;;  %v10184_v13 = vld [vmem:[#allocation3 + $0x188] sm:$0xff]  ;;  %v10199_v31 = vld [vmem:[#allocation3 + $0x1d0] sm:$0xff]  ;;  %s10690_s15 = sld [smem:[#allocation8 + %s4064_s25]] }
 0x125   : > { %v2621_v34 = vadd.f32 %v2614_v17, %v2604_v39  ;;  %v2631_v14 = vmul.f32 %v9879_v15, %v10156_v55  ;;  %v1937_v23 = vmul.f32 %v10184_v13, %v9907_v3  ;;  %v1915_v22 = vadd.f32 %v1908_v51, %v1898_v42  ;;  %v10194_v4 = vld [vmem:[#allocation3 + $0x180] sm:$0xff]  ;;  %v8250_v52 = vld [vmem:[%s9150_s28 + $0x3f8] sm:$0xff]  }
 0x126   : > { %7603 = vmatpush3.bf16.msra.mxu1 %v8240_v30  ;;  %v1948_v50 = vadd.f32 %v1941_v48, %v1931_v38  ;;  %v1925_v15 = vmul.f32 %v10188_v9, %v9893_v1  ;;  %v1927_v5 = vadd.f32 %v10036_v8, %v1910_v36  ;;  %v1916_v53 = vadd.f32 %v1909_v25, %v1899_v63  ;;  %v8248_v36 = vld [vmem:[%s9150_s28 + $0x3b0] sm:$0xff]   ;;  %v10218_v39 = vld [vmem:[#allocation3 + $0x1c0] sm:$0xff]  ;;  %v10222_v38 = vld [vmem:[#allocation3 + $0x1b8] sm:$0xff] }
 0x127   : > { %7579 = vmatpush3.bf16.msra.mxu0 %v8235_v47  ;;  %7604 = vmatprep.subr.bf16.mxu1 %v8242_v6  ;;  %v1926_v27 = vmul.f32 %v10194_v4, %v9893_v1  ;;  %v8243_v47 = vld [vmem:[%s9150_s28 + $0x328] sm:$0xff]   ;;  %v1946_v46 = vadd.f32 %v1939_v24, %v1929_v58  ;;  %v1956_v17 = vmul.f32 %v10199_v31, %v9932_v41  ;;  %v10210_v1 = vstv %s10158_s7  ;;  %v10213_v6 = vld [vmem:[#allocation3 + $0x1b0] sm:$0xff]  ;;  %s3388_s7 = sadd.s32 7, %s10335_s11 }
 0x128   : > { %7580 = vmatprep.subr.bf16.mxu0 %v8237_v61  ;;  %v1965_v20 = vadd.f32 %v1958_v43, %v1948_v50  ;;  %v2638_v30 = vadd.f32 %v2631_v14, %v2621_v34  ;;  %v2648_v8 = vmul.f32 %v9910_v57, %v10179_v37  ;;  %v1932_v48 = vadd.f32 %v1925_v15, %v1915_v22  ;;  %v8245_v57 = vld [vmem:[%s9150_s28 + $0x370] sm:$0xff]   ;;  %v8252_v14 = vld [vmem:[%s9150_s28 + $0x3b8] sm:$0xff]   ;;  %v8254_v50 = vld [vmem:[%s9150_s28 + $0x400] sm:$0xff]   ;;  %s10481_s21 = sld [smem:[#allocation8 + %s3388_s7]] }
 0x129   : > { %v1942_v42 = vmul.f32 %v10213_v6, %v9907_v3  ;;  %v1944_v51 = vadd.f32 %v1937_v23, %v1927_v5  ;;  %v1954_v61 = vmul.f32 %v10218_v39, %v9932_v41  ;;  %v1933_v63 = vadd.f32 %v1926_v27, %v1916_v53  ;;  %v8251_v53 = vld [vmem:[%s9150_s28 + $0x338] sm:$0xff]  }
 0x12a   : > { %7605 = vmatpush3.bf16.msra.mxu1 %v8244_v26  ;;  %v10207_v25 = vadd.f32 %v9985_v32, %v1965_v20  ;;  %v1943_v43 = vmul.f32 %v10222_v38, %v9907_v3  ;;  %v1963_v58 = vadd.f32 %v1956_v17, %v1946_v46  ;;  %v2655_v24 = vadd.f32 %v2648_v8, %v2638_v30  ;;  %v10237_v3 = vld [vmem:[#allocation3 + $0x1e8] sm:$0xff]  ;;  %v8256_v46 = vld [vmem:[%s9150_s28 + $0x3c0] sm:$0xff]   ;;  %v8258_v17 = vld [vmem:[%s9150_s28 + $0x408] sm:$0xff]  }
 0x12b   : > { %7581 = vmatpush3.bf16.msra.mxu0 %v8239_v10  ;;  %7606 = vmatprep.subr.bf16.mxu1 %v8246_v28  ;;  %v8247_v10 = vld [vmem:[%s9150_s28 + $0x330] sm:$0xff]   ;;  %v2665_v34 = vmul.f32 %v9943_v11, %v10210_v1  ;;  %v10231_v26 = vstv %s10181_s12  ;;  %v1949_v28 = vadd.f32 %v1942_v42, %v1932_v48  ;;  %v1959_v23 = vmul.f32 %v10237_v3, %v9932_v41  ;;  %v8249_v11 = vld [vmem:[%s9150_s28 + $0x378] sm:$0xff]   ;;  %v8253_v8 = vld [vmem:[%s9150_s28 + $0x380] sm:$0xff]   ;;  %s3405_s12 = sadd.s32 8, %s10335_s11 }
 0x12c   : > { %7582 = vmatprep.subr.bf16.mxu0 %v8241_v60  ;;  %v1961_v22 = vadd.f32 %v1954_v61, %v1944_v51  ;;  %v1950_v15 = vadd.f32 %v1943_v43, %v1933_v63  ;;  %v10242_v60 = vld [vmem:[#allocation3 + $0x1f0] sm:$0xff]  ;;  %v1972_v27 = vadd.f32 %v9985_v32, %v1963_v58  ;;  %v2562_v51 = vmul.f32 %v9923_v35, %v10087_v59  ;;  %v8260_v61 = vld [vmem:[%s9150_s28 + $0x3c8] sm:$0xff]   ;;  %v10266_v43 = vld [vmem:[#allocation3 + $0x28] sm:$0xff] }
 0x12d   : > { %v1960_v5 = vmul.f32 %v10242_v60, %v9932_v41  ;;  %v2672_v20 = vadd.f32 %v2665_v34, %v2655_v24  ;;  %v1966_v30 = vadd.f32 %v1959_v23, %v1949_v28  ;;  %v10264_v63 = vstv %s10234_s6  ;;  %v8257_v58 = vld [vmem:[%s9150_s28 + $0x388] sm:$0xff]   ;;  %s10499_s6 = sld [smem:[#allocation8 + %s3405_s12]]  ;;  %s4132_s12 = sadd.s32 8, %s10539_s26 }
 0x12e   : > { %7607 = vmatpush3.bf16.msra.mxu1 %v8248_v36  ;;  %v1970_v36 = vadd.f32 %v9985_v32, %v1961_v22  ;;  %v1979_v48 = vmax.f32 %v1972_v27, 0.0  ;;  %v8259_v28 = vld [vmem:[%s9150_s28 + $0x348] sm:$0xff]   ;;  %v10285_v27 = vld [vmem:[#allocation3 + $0x98] sm:$0xff] }
 0x12f   : > { %7583 = vmatpush3.bf16.msra.mxu0 %v8243_v47  ;;  %7608 = vmatprep.subr.bf16.mxu1 %v8250_v52  ;;  %v2682_v47 = vmul.f32 %v9964_v7, %v10231_v26  ;;  %v1967_v41 = vadd.f32 %v1960_v5, %v1950_v15  ;;  %v2555_v52 = vmul.f32 %v9855_v19, %v10061_v0  ;;  %v8263_v5 = vld [vmem:[%s9150_s28 + $0x490] sm:$0xff]  }
 0x130   : > { %7584 = vmatprep.subr.bf16.mxu0 %v8245_v57  ;;  %v2565_v7 = vmul.f32 %v9859_v45, %v10087_v59  ;;  %v2552_v57 = vmul.f32 %v9919_v18, %v10061_v0  ;;  %v2557_v19 = vmul.f32 %v10266_v43, %v10061_v0  ;;  %v10270_v45 = vld [vmem:[#allocation3 + $0x60] sm:$0xff]  ;;  %v8255_v18 = vld [vmem:[%s9150_s28 + $0x340] sm:$0xff]   ;;  %v1975_v35 = vadd.f32 %v9985_v32, %v1966_v30 }
 0x131   : > { %v2689_v42 = vadd.f32 %v2682_v47, %v2672_v20  ;;  %v1977_v24 = vmax.f32 %v1970_v36, 0.0  ;;  %v1976_v34 = vadd.f32 %v9985_v32, %v1967_v41  ;;  %v1986_v23 = vpack.c.bf16 %v1979_v48, %v1979_v48  ;;  %v11920_v48 = vld [vmem:[#allocation38_spill] sm:$0xff] }
 0x132   : > { %7609 = vmatpush3.bf16.msra.mxu1 %v8252_v14  ;;  %v2572_v14 = vadd.f32 %v2565_v7, %v2555_v52  ;;  %v2569_v22 = vadd.f32 %v2562_v51, %v2552_v57  ;;  %v2579_v15 = vmul.f32 %v9950_v44, %v10101_v54  ;;  %v2584_v32 = vmul.f32 %v10285_v27, %v10101_v54  ;;  %v11918_v44 = vld [vmem:[#allocation28_spill] sm:$0xff]  ;;  %v11919_v52 = vld [vmem:[#allocation23_spill] sm:$0xff]  ;;  %v10300_v51 = vld [vmem:[#allocation3 + $0xd0] sm:$0xff] }
 0x133   : > { %7585 = vmatpush3.bf16.msra.mxu0 %v8247_v10  ;;  %7610 = vmatprep.subr.bf16.mxu1 %v8254_v50  ;;  %v2567_v10 = vmul.f32 %v10270_v45, %v10087_v59  ;;  %v2582_v50 = vmul.f32 %v9865_v56, %v10101_v54  ;;  %v8266_v56 = vld [vmem:[%s9150_s28 + $0x4d8] sm:$0xff]   ;;  %v1982_v20 = vmax.f32 %v1975_v35, 0.0  ;;  %v1984_v47 = vpack.c.bf16 %v1977_v24, %v1977_v24 }
 0x134   : > { %7586 = vmatprep.subr.bf16.mxu0 %v8249_v11  ;;  %v2698_v11 = vadd.f32 %v10264_v63, %v2689_v42  ;;  %v2586_v41 = vadd.f32 %v2579_v15, %v2569_v22  ;;  %v2596_v7 = vmul.f32 %v11919_v52, %v10107_v21  ;;  %v2558_v42 = vmul.f32 %v11920_v48, %v10061_v0  ;;  %v11926_v48 = vld [vmem:[#allocation37_spill] sm:$0xff] }
 0x135   : > { %v2589_v30 = vadd.f32 %v2582_v50, %v2572_v14  ;;  %v1989_v35 = vpack.c.bf16 %v1982_v20, %v1982_v20  ;;  %v11923_v50 = vld [vmem:[#allocation29_spill] sm:$0xff]  ;;  %v2602_v22 = vmul.f32 %v10094_v33, %v10107_v21  ;;  %v2619_v33 = vmul.f32 %v10134_v40, %v10123_v2 }
 0x136   : > { %7611 = vmatpush3.bf16.msra.mxu1 %v8256_v46  ;;  %v8261_v46 = vld [vmem:[%s9150_s28 + $0x450] sm:$0xff]   ;;  %v2705_v36 = vmax.f32 %v2698_v11, 0.0  ;;  %v8268_v20 = vld [vmem:[%s9150_s28 + $0x498] sm:$0xff]  }
 0x137   : > { %7587 = vmatpush3.bf16.msra.mxu0 %v8251_v53  ;;  %7612 = vmatprep.subr.bf16.mxu1 %v8258_v17  ;;  %v2574_v53 = vadd.f32 %v2567_v10, %v2557_v19  ;;  %v1983_v17 = vmax.f32 %v1976_v34, 0.0  ;;  %v11921_v19 = vld [vmem:[#allocation21_spill] sm:$0xff] }
 0x138   : > { %7588 = vmatprep.subr.bf16.mxu0 %v8253_v8  ;;  %v2599_v8 = vmul.f32 %v11918_v44, %v10107_v21  ;;  %v2568_v10 = vmul.f32 %v11921_v19, %v10087_v59  ;;  %v8264_v34 = vld [vmem:[%s9150_s28 + $0x458] sm:$0xff]  }
 0x139   : > { %v2591_v57 = vadd.f32 %v2584_v32, %v2574_v53  ;;  %v1990_v15 = vpack.c.bf16 %v1983_v17, %v1983_v17  ;;  %v2603_v53 = vadd.f32 %v2596_v7, %v2586_v41  ;;  %v11924_v32 = vld [vmem:[#allocation36_spill] sm:$0xff]  ;;  %v8270_v17 = vld [vmem:[%s9150_s28 + $0x4e0] sm:$0xff]  }
 0x13a   : > { %7613 = vmatpush3.bf16.msra.mxu1 %v8260_v61  ;;  %v2601_v61 = vmul.f32 %v10300_v51, %v10107_v21  ;;  %v2606_v14 = vadd.f32 %v2599_v8, %v2589_v30  ;;  %v2575_v11 = vadd.f32 %v2568_v10, %v2558_v42  ;;  %v2618_v30 = vmul.f32 %v10116_v29, %v10123_v2  ;;  %v8267_v8 = vld [vmem:[%s9150_s28 + $0x460] sm:$0xff]  }
 0x13b   : > { %7589 = vmatpush3.bf16.msra.mxu0 %v8255_v18  ;;  %7996 = vmatprep.subr.bf16.mxu1 %v11914_v12  ;;  %v8262_v18 = vld [vmem:[%s9150_s28 + $0x410] sm:$0xff]   ;;  %v2636_v29 = vmul.f32 %v10149_v62, %v10156_v55  ;;  %v8269_v7 = vld [vmem:[%s9150_s28 + $0x420] sm:$0xff]   ;;  %v2630_v42 = vmul.f32 %v11926_v48, %v10156_v55  ;;  %v2653_v10 = vmul.f32 %v10194_v4, %v10179_v37 }
 0x13c   : > { %7590 = vmatprep.subr.bf16.mxu0 %v8257_v58  ;;  %v11922_v58 = vld [vmem:[#allocation26_spill] sm:$0xff]  ;;  %v11932_v48 = vld [vmem:[#allocation25_spill] sm:$0xff] }
 0x13d   : > { %2460 = vmatmul.mubr.bf16.vlgmr.msra.gmra.mrb[16].mxu1 %v1986_v23  ;;  %v2585_v24 = vmul.f32 %v11922_v58, %v10101_v54  ;;  %v2616_v23 = vmul.f32 %v11923_v50, %v10123_v2  ;;  %v11927_v58 = vld [vmem:[#allocation32_spill] sm:$0xff]  ;;  %v11928_v4 = vld [vmem:[#allocation22_spill] sm:$0xff] }
 0x13e   : > { %7997 = vmatpush3.bf16.msra.mxu1 %v8263_v5  ;;  %7998 = vmatprep.mubr.msk.bf16.mxu1 %vm8931_vm0, %v11914_v12  ;;  %v2712_v5 = vpack.c.bf16 %v2705_v36, %v2705_v36  ;;  %v8273_v50 = vld [vmem:[%s9150_s28 + $0x428] sm:$0xff]  }
 0x13f   : > { %7591 = vmatpush3.bf16.msra.mxu0 %v8259_v28  ;;  %7644 = vmatprep.subr.bf16.mxu1 %v8266_v56  ;;  %v8265_v28 = vld [vmem:[%s9150_s28 + $0x418] sm:$0xff]   ;;  %v2613_v56 = vmul.f32 %v11924_v32, %v10123_v2  ;;  %v2592_v44 = vadd.f32 %v2585_v24, %v2575_v11  ;;  %v2623_v36 = vadd.f32 %v2616_v23, %v2606_v14 }
 0x140   : > { %7620 = vmatprep.subr.bf16.mxu0 %v8261_v46  ;;  %v2608_v46 = vadd.f32 %v2601_v61, %v2591_v57  ;;  %v2635_v57 = vmul.f32 %v10161_v49, %v10156_v55  ;;  %v8272_v61 = vld [vmem:[%s9150_s28 + $0x4a0] sm:$0xff]   ;;  %v2650_v24 = vmul.f32 %v11927_v58, %v10179_v37  ;;  %v2670_v14 = vmul.f32 %v10222_v38, %v10210_v1  ;;  %v8278_v38 = vld [vmem:[%s9150_s28 + $0x4f0] sm:$0xff]  }
 0x141   : > { %v2609_v52 = vadd.f32 %v2602_v22, %v2592_v44  ;;  %v2620_v40 = vadd.f32 %v2613_v56, %v2603_v53  ;;  %v2647_v11 = vmul.f32 %v11928_v4, %v10179_v37  ;;  %v8276_v22 = vld [vmem:[%s9150_s28 + $0x4a8] sm:$0xff]   ;;  %v2687_v53 = vmul.f32 %v10242_v60, %v10231_v26  ;;  %v11929_v32 = vld [vmem:[#allocation34_spill] sm:$0xff]  ;;  %v11931_v60 = vld [vmem:[#allocation33_spill] sm:$0xff] }
 0x142   : > { %2420 = vmatmul.mubr.bf16.vlgmr.msra.gmra.mrb[16].mxu0 %v1984_v47  ;;  %v11925_v47 = vld [vmem:[#allocation30_spill] sm:$0xff]  ;;  %v2625_v19 = vadd.f32 %v2618_v30, %v2608_v46  ;;  %v2554_v56 = vmul.f32 %v11929_v32, %v10061_v0  ;;  %v2667_v44 = vmul.f32 %v11931_v60, %v10210_v1  ;;  %v2686_v58 = vmul.f32 %v10237_v3, %v10231_v26 }
 0x143   : > { %7621 = vmatpush3.bf16.msra.mxu0 %v8262_v18  ;;  %2499 = vmatprep.mubr.bf16.mxu0 %v1989_v35  ;;  %v2633_v41 = vmul.f32 %v11925_v47, %v10156_v55  ;;  %v2626_v62 = vadd.f32 %v2619_v33, %v2609_v52  ;;  %v8274_v18 = vld [vmem:[%s9150_s28 + $0x4e8] sm:$0xff]   ;;  %v2637_v23 = vadd.f32 %v2630_v42, %v2620_v40  ;;  %v8280_v47 = vld [vmem:[%s9150_s28 + $0x4b0] sm:$0xff]   ;;  %v8283_v3 = vld [vmem:[%s9150_s28 + $0x480] sm:$0xff]  }
 0x144   : > { %7622 = vmatprep.subr.bf16.mxu0 %v8264_v34  ;;  %v8271_v35 = vld [vmem:[%s9150_s28 + $0x468] sm:$0xff]   ;;  %v2669_v52 = vmul.f32 %v10213_v6, %v10210_v1  ;;  %v2581_v42 = vmul.f32 %v11932_v48, %v10101_v54 }
 0x145   : > { %7999 = vmatmul.mubr.msk.bf16.vlgmr.msra.gmra.mrb[20].mxu1 %vm929_vm1, %v1990_v15  ;;  %v2640_v49 = vadd.f32 %v2633_v41, %v2623_v36  ;;  %v2643_v34 = vadd.f32 %v2636_v29, %v2626_v62  ;;  %v2652_v15 = vmul.f32 %v10188_v9, %v10179_v37  ;;  %v8275_v9 = vld [vmem:[%s9150_s28 + $0x470] sm:$0xff]   ;;  %v2664_v36 = vmul.f32 %v10184_v13, %v10210_v1  ;;  %v8279_v13 = vld [vmem:[%s9150_s28 + $0x478] sm:$0xff]  }
 0x146   : > { %7645 = vmatpush3.bf16.msra.mxu1 %v8268_v20  ;;  %3146 = vmatprep.mubr.bf16.mxu1 %v2712_v5  ;;  %v11930_v20 = vld [vmem:[#allocation35_spill] sm:$0xff]  ;;  %v8281_v62 = vld [vmem:[%s9150_s28 + $0x438] sm:$0xff]  }
 0x147   : > { %7623 = vmatpush3.bf16.msra.mxu0 %v8265_v28  ;;  %7646 = vmatprep.subr.bf16.mxu1 %v8270_v17  ;;  %v2642_v28 = vadd.f32 %v2635_v57, %v2625_v19  ;;  %v2660_v5 = vadd.f32 %v2653_v10, %v2643_v34  ;;  %v2564_v46 = vmul.f32 %v11930_v20, %v10087_v59  ;;  %v8277_v17 = vld [vmem:[%s9150_s28 + $0x430] sm:$0xff]   ;;  %v8286_v34 = vld [vmem:[%s9150_s28 + $0x500] sm:$0xff]  }
 0x148   : > { %7624 = vmatprep.subr.bf16.mxu0 %v8267_v8  ;;  %v2657_v30 = vadd.f32 %v2650_v24, %v2640_v49  ;;  %v2654_v8 = vadd.f32 %v2647_v11, %v2637_v23  ;;  %v10396_v24 = vstv %s10356_s8  ;;  %v10407_v11 = vld [vmem:[#allocation3 + $0x20] sm:$0xff]  ;;  %s10561_s8 = sld [smem:[#allocation9 + %s10335_s11]] }
 0x149   : > { %v2677_v33 = vadd.f32 %v2670_v14, %v2660_v5  ;;  %v2659_v41 = vadd.f32 %v2652_v15, %v2642_v28  ;;  %v2571_v40 = vadd.f32 %v2564_v46, %v2554_v56  ;;  %v10411_v28 = vld [vmem:[#allocation3 + $0x58] sm:$0xff]  ;;  %s10587_s11 = sld [smem:[#allocation8 + %s10539_s26]] }
 0x14a   : > { %7647 = vmatpush3.bf16.msra.mxu1 %v8272_v61  ;;  %v2674_v57 = vadd.f32 %v2667_v44, %v2657_v30  ;;  %v10381_v61 = vld [vmem:[#allocation3 + $0x1d8] sm:$0xff]  ;;  %v2671_v10 = vadd.f32 %v2664_v36, %v2654_v8  ;;  %v2566_v15 = vmul.f32 %v10411_v28, %v10087_v59  ;;  %v8290_v59 = vld [vmem:[%s9150_s28 + $0x508] sm:$0xff]   ;;  %v10426_v44 = vstv %s10378_s14  ;;  %v10432_v36 = vld [vmem:[#allocation3 + $0x90] sm:$0xff]  ;;  %s4030_s14 = sadd.s32 2, %s10539_s26 }
 0x14b   : > { %7625 = vmatpush3.bf16.msra.mxu0 %v8269_v7  ;;  %7648 = vmatprep.subr.bf16.mxu1 %v8274_v18  ;;  %v2694_v29 = vadd.f32 %v2687_v53, %v2677_v33  ;;  %v8282_v7 = vld [vmem:[%s9150_s28 + $0x4f8] sm:$0xff]   ;;  %v2684_v6 = vmul.f32 %v10381_v61, %v10231_v26  ;;  %v2681_v18 = vmul.f32 %v10218_v39, %v10231_v26  ;;  %v10402_v39 = vstv %s10363_s9  ;;  %v8285_v5 = vld [vmem:[%s9150_s28 + $0x440] sm:$0xff]   ;;  %v11934_v30 = vld [vmem:[#allocation24_spill] sm:$0xff]  ;;  %s4013_s9 = sadd.s32 1, %s10539_s26  ;;  %s10628_s16 = sld [smem:[#allocation8 + %s4030_s14]] }
 0x14c   : > { %7626 = vmatprep.subr.bf16.mxu0 %v8271_v35  ;;  %v8284_v35 = vld [vmem:[%s9150_s28 + $0x4b8] sm:$0xff]   ;;  %v2676_v49 = vadd.f32 %v2669_v52, %v2659_v41  ;;  %v2588_v14 = vadd.f32 %v2581_v42, %v2571_v40  ;;  %v8580_v56 = vld [vmem:[#allocation3 + $0x18] sm:$0xff]  ;;  %v2615_v60 = vmul.f32 %v11934_v30, %v10123_v2  ;;  %v8287_v33 = vld [vmem:[%s9150_s28 + $0x488] sm:$0xff]   ;;  %v10479_v30 = vstv %s10428_s24  ;;  %s10599_s13 = sld [smem:[#allocation8 + %s4013_s9]]  ;;  %s4081_s24 = sadd.s32 5, %s10539_s26 }
 0x14d   : > { %v10386_v19 = vadd.f32 %v10264_v63, %v2694_v29  ;;  %v2691_v4 = vadd.f32 %v2684_v6, %v2674_v57  ;;  %v2688_v53 = vadd.f32 %v2681_v18, %v2671_v10  ;;  %v3282_v20 = vmul.f32 %v8580_v56, %v10396_v24  ;;  %v8289_v41 = vld [vmem:[%s9150_s28 + $0x448] sm:$0xff]   ;;  %v10440_v29 = vld [vmem:[#allocation3 + $0x8] sm:$0xff]  ;;  %s10841_s9 = sld [smem:[#allocation9 + %s10539_s26]] }
 0x14e   : > { %7649 = vmatpush3.bf16.msra.mxu1 %v8276_v22  ;;  %v2556_v22 = vmul.f32 %v10407_v11, %v10061_v0  ;;  %v2693_v32 = vadd.f32 %v2686_v58, %v2676_v49  ;;  %v8581_v0 = vld [vmem:[#allocation3 + $0x50] sm:$0xff]  ;;  %v10444_v40 = vld [vmem:[#allocation3 + $0x40] sm:$0xff]  ;;  %v8585_v6 = vld [vmem:[#allocation3 + $0x88] sm:$0xff]  ;;  %v10458_v58 = vstv %s10404_s17  ;;  %s4047_s17 = sadd.s32 3, %s10539_s26 }
 0x14f   : > { %7627 = vmatpush3.bf16.msra.mxu0 %v8273_v50  ;;  %7650 = vmatprep.subr.bf16.mxu1 %v8278_v38  ;;  %v11933_v50 = vld [vmem:[#allocation31_spill] sm:$0xff]  ;;  %v3292_v46 = vmul.f32 %v8581_v0, %v10402_v39  ;;  %v2697_v52 = vadd.f32 %v10264_v63, %v2688_v53  ;;  %v3290_v48 = vmul.f32 %v10444_v40, %v10402_v39  ;;  %v8294_v10 = vld [vmem:[%s9150_s28 + $0x510] sm:$0xff]   ;;  %s10665_s18 = sld [smem:[#allocation8 + %s4047_s17]] }
 0x150   : > { %7628 = vmatprep.subr.bf16.mxu0 %v8275_v9  ;;  %v2598_v23 = vmul.f32 %v11933_v50, %v10107_v21  ;;  %v8288_v38 = vld [vmem:[%s9150_s28 + $0x4c0] sm:$0xff]   ;;  %v2573_v8 = vadd.f32 %v2566_v15, %v2556_v22  ;;  %v8291_v42 = vld [vmem:[%s9150_s28 + $0x4c8] sm:$0xff]   ;;  %v10462_v50 = vld [vmem:[#allocation3 + $0xc8] sm:$0xff] }
 0x151   : > { %v3299_v57 = vadd.f32 %v3292_v46, %v3282_v20  ;;  %v10467_v15 = vld [vmem:[#allocation3 + $0x78] sm:$0xff]  ;;  %v8588_v20 = vld [vmem:[#allocation3 + $0xc0] sm:$0xff] }
 0x152   : > { %7651 = vmatpush3.bf16.msra.mxu1 %v8280_v47  ;;  %v2605_v9 = vadd.f32 %v2598_v23, %v2588_v14  ;;  %v2583_v47 = vmul.f32 %v10432_v36, %v10101_v54  ;;  %v1981_v54 = vmax.f32 %v10207_v25, 0.0  ;;  %v8292_v25 = vld [vmem:[%s9150_s28 + $0x558] sm:$0xff]   ;;  %v2600_v23 = vmul.f32 %v10462_v50, %v10107_v21 }
 0x153   : > { %7629 = vmatpush3.bf16.msra.mxu0 %v8277_v17  ;;  %7652 = vmatprep.subr.bf16.mxu1 %v8282_v7  ;;  %v2700_v17 = vadd.f32 %v10264_v63, %v2691_v4  ;;  %v3280_v7 = vmul.f32 %v10440_v29, %v10396_v24  ;;  %v2704_v4 = vmax.f32 %v2697_v52, 0.0  ;;  %v3326_v0 = vmul.f32 %v8588_v20, %v10458_v58  ;;  %v8298_v21 = vld [vmem:[%s9150_s28 + $0x5d8] sm:$0xff]  }
 0x154   : > { %7630 = vmatprep.subr.bf16.mxu0 %v8279_v13  ;;  %v2702_v13 = vadd.f32 %v10264_v63, %v2693_v32  ;;  %v2622_v18 = vadd.f32 %v2615_v60, %v2605_v9  ;;  %v2590_v14 = vadd.f32 %v2583_v47, %v2573_v8  ;;  %v1988_v53 = vpack.c.bf16 %v1981_v54, %v1981_v54  ;;  %v8296_v60 = vld [vmem:[%s9150_s28 + $0x560] sm:$0xff]   ;;  %v8590_v8 = vld [vmem:[#allocation3 + $0x100] sm:$0xff] }
 0x155   : > { %v3297_v22 = vadd.f32 %v3290_v48, %v3280_v7  ;;  %v2617_v47 = vmul.f32 %v8590_v8, %v10123_v2  ;;  %v2711_v52 = vpack.c.bf16 %v2704_v4, %v2704_v4  ;;  %v10487_v48 = vld [vmem:[#allocation3 + $0xb0] sm:$0xff]  ;;  %v8301_v4 = vld [vmem:[%s9150_s28 + $0x528] sm:$0xff]   ;;  %v3327_v20 = vmul.f32 %v10462_v50, %v10458_v58 }
 0x156   : > { %7653 = vmatpush3.bf16.msra.mxu1 %v8284_v35  ;;  %v11935_v35 = vld [vmem:[#allocation20_spill] sm:$0xff]  ;;  %v2709_v32 = vmax.f32 %v2702_v13, 0.0  ;;  %v3324_v54 = vmul.f32 %v10487_v48, %v10458_v58  ;;  %v8596_v50 = vld [vmem:[#allocation3 + $0x170] sm:$0xff] }
 0x157   : > { %7631 = vmatpush3.bf16.msra.mxu0 %v8281_v62  ;;  %7654 = vmatprep.subr.bf16.mxu1 %v8286_v34  ;;  %v3309_v62 = vmul.f32 %v8585_v6, %v10426_v44  ;;  %v2632_v49 = vmul.f32 %v11935_v35, %v10156_v55  ;;  %v2707_v34 = vmax.f32 %v2700_v17, 0.0  ;;  %v2607_v17 = vadd.f32 %v2600_v23, %v2590_v14  ;;  %v8593_v14 = vld [vmem:[#allocation3 + $0x138] sm:$0xff] }
 0x158   : > { %7632 = vmatprep.subr.bf16.mxu0 %v8283_v3  ;;  %v8293_v3 = vld [vmem:[%s9150_s28 + $0x518] sm:$0xff]   ;;  %v2716_v13 = vpack.c.bf16 %v2709_v32, %v2709_v32  ;;  %v2666_v35 = vmul.f32 %v10171_v16, %v10210_v1  ;;  %v2634_v23 = vmul.f32 %v8593_v14, %v10156_v55  ;;  %v3310_v55 = vmul.f32 %v10432_v36, %v10426_v44 }
 0x159   : > { %v3316_v56 = vadd.f32 %v3309_v62, %v3299_v57  ;;  %v2639_v46 = vadd.f32 %v2632_v49, %v2622_v18  ;;  %v10493_v57 = vstv %s10436_s27  ;;  %v8592_v62 = vld [vmem:[#allocation3 + $0xf8] sm:$0xff]  ;;  %v3283_v49 = vmul.f32 %v10407_v11, %v10396_v24  ;;  %s10729_s27 = sld [smem:[#allocation8 + %s4081_s24]] }
 0x15a   : > { %7655 = vmatpush3.bf16.msra.mxu1 %v8288_v38  ;;  %v8295_v38 = vld [vmem:[%s9150_s28 + $0x4d0] sm:$0xff]   ;;  %v3343_v2 = vmul.f32 %v8592_v62, %v10479_v30  ;;  %v3361_v62 = vmul.f32 %v8593_v14, %v10493_v57  ;;  %v8307_v14 = vld [vmem:[%s9150_s28 + $0x578] sm:$0xff]  }
 0x15b   : > { %7633 = vmatpush3.bf16.msra.mxu0 %v8285_v5  ;;  %7656 = vmatprep.subr.bf16.mxu1 %v8290_v59  ;;  %v3307_v5 = vmul.f32 %v10467_v15, %v10426_v44  ;;  %v10474_v59 = vld [vmem:[#allocation3 + $0x160] sm:$0xff]  ;;  %v3333_v6 = vadd.f32 %v3326_v0, %v3316_v56 }
 0x15c   : > { %7634 = vmatprep.subr.bf16.mxu0 %v8287_v33  ;;  %v2649_v9 = vmul.f32 %v10474_v59, %v10179_v37  ;;  %v2714_v33 = vpack.c.bf16 %v2707_v34, %v2707_v34  ;;  %v2624_v34 = vadd.f32 %v2617_v47, %v2607_v17  ;;  %v8306_v0 = vld [vmem:[%s9150_s28 + $0x5e8] sm:$0xff]   ;;  %v8305_v17 = vld [vmem:[%s9150_s28 + $0x530] sm:$0xff]  }
 0x15d   : > { %v3314_v7 = vadd.f32 %v3307_v5, %v3297_v22  ;;  %v10508_v22 = vld [vmem:[#allocation3 + $0xe8] sm:$0xff]  ;;  %v8595_v5 = vld [vmem:[#allocation3 + $0x130] sm:$0xff]  ;;  %v3350_v32 = vadd.f32 %v3343_v2, %v3333_v6 }
 0x15e   : > { %7657 = vmatpush3.bf16.msra.mxu1 %v8291_v42  ;;  %v8300_v42 = vld [vmem:[%s9150_s28 + $0x598] sm:$0xff]   ;;  %v2656_v18 = vadd.f32 %v2649_v9, %v2639_v46  ;;  %v3341_v11 = vmul.f32 %v10508_v22, %v10479_v30  ;;  %v8303_v46 = vld [vmem:[%s9150_s28 + $0x570] sm:$0xff]   ;;  %v2683_v9 = vmul.f32 %v10199_v31, %v10231_v26  ;;  %v2641_v47 = vadd.f32 %v2634_v23, %v2624_v34 }
 0x15f   : > { %7635 = vmatpush3.bf16.msra.mxu0 %v8289_v41  ;;  %7658 = vmatprep.subr.bf16.mxu1 %v8294_v10  ;;  %v8297_v41 = vld [vmem:[%s9150_s28 + $0x520] sm:$0xff]   ;;  %v3331_v16 = vadd.f32 %v3324_v54, %v3314_v7  ;;  %v10531_v7 = vld [vmem:[#allocation3 + $0x120] sm:$0xff]  ;;  %v8599_v2 = vld [vmem:[#allocation3 + $0x1a8] sm:$0xff] }
 0x160   : > { %7666 = vmatprep.subr.bf16.mxu0 %v8292_v25  ;;  %v8302_v10 = vld [vmem:[%s9150_s28 + $0x5e0] sm:$0xff]   ;;  %v8299_v25 = vld [vmem:[%s9150_s28 + $0x568] sm:$0xff]   ;;  %v2673_v36 = vadd.f32 %v2666_v35, %v2656_v18  ;;  %v3358_v54 = vmul.f32 %v10531_v7, %v10493_v57  ;;  %v10544_v18 = vstv %s10499_s6 }
 0x161   : > { %v10546_v35 = vld [vmem:[#allocation3] sm:$0xff] }
 0x162   : > { %2500 = vmatmul.mubr.bf16.vlgmr.msra.gmra.mrb[20].mxu0 %v1988_v53  ;;  %7659 = vmatpush3.bf16.msra.mxu1 %v8295_v38  ;;  %v3360_v53 = vmul.f32 %v8595_v5, %v10493_v57  ;;  %v8304_v38 = vld [vmem:[%s9150_s28 + $0x5a0] sm:$0xff]   ;;  %v10555_v23 = vadd.f32 %v2683_v9, %v2673_v36 }
 0x163   : > { %7667 = vmatpush3.bf16.msra.mxu0 %v8293_v3  ;;  %7688 = vmatprep.subr.bf16.mxu1 %v8298_v21  ;;  %v3293_v3 = vmul.f32 %v10411_v28, %v10402_v39  ;;  %v10517_v28 = vstv %s10448_s30  ;;  %v10523_v21 = vstv %s10481_s21  ;;  %s4098_s30 = sadd.s32 6, %s10539_s26  ;;  %s4115_s21 = sadd.s32 7, %s10539_s26 }
 0x164   : > { %7668 = vmatprep.subr.bf16.mxu0 %v8296_v60  ;;  %3186 = vmatprep.mubr.bf16.mxu0 %v2714_v33  ;;  %v3344_v33 = vmul.f32 %v8590_v8, %v10479_v30  ;;  %v3367_v31 = vadd.f32 %v3360_v53, %v3350_v32  ;;  %v8604_v32 = vld [vmem:[#allocation3 + $0x1a0] sm:$0xff]  ;;  %v3395_v9 = vmul.f32 %v8599_v2, %v10523_v21  ;;  %s10762_s7 = sld [smem:[#allocation8 + %s4098_s30]]  ;;  %s10870_s26 = sadd.s32 768, %s9166_s23 }
 0x165   : > { %3147 = vmatmul.mubr.bf16.vlgmr.msra.gmra.mrb[24].mxu1 %v2711_v52  ;;  %v3300_v56 = vadd.f32 %v3293_v3, %v3283_v49  ;;  %v3348_v52 = vadd.f32 %v3341_v11, %v3331_v16  ;;  %v3279_v49 = vmul.f32 %v10546_v35, %v10396_v24  ;;  %v8602_v3 = vld [vmem:[#allocation3 + $0x1e0] sm:$0xff]  ;;  %v3378_v16 = vmul.f32 %v8596_v50, %v10517_v28  ;;  %v8309_v11 = vld [vmem:[%s9150_s28 + $0x538] sm:$0xff]   ;;  %s10800_s6 = sld [smem:[#allocation8 + %s4115_s21]]  ;;  %s4757_s14 = sadd.s32 2, %s10870_s26 }
 0x166   : > { %7689 = vmatpush3.bf16.msra.mxu1 %v8300_v42  ;;  %3226 = vmatprep.mubr.bf16.mxu1 %v2716_v13  ;;  %v8308_v42 = vld [vmem:[%s9150_s28 + $0x5a8] sm:$0xff]   ;;  %v8598_v13 = vld [vmem:[#allocation3 + $0x168] sm:$0xff]  ;;  %s4774_s17 = sadd.s32 3, %s10870_s26  ;;  %s10924_s25 = sld [smem:[#allocation8 + %s4757_s14]] }
 0x167   : > { %7669 = vmatpush3.bf16.msra.mxu0 %v8297_v41  ;;  %7690 = vmatprep.subr.bf16.mxu1 %v8302_v10  ;;  %v3317_v60 = vadd.f32 %v3310_v55, %v3300_v56  ;;  %v2651_v41 = vmul.f32 %v8596_v50, %v10179_v37  ;;  %v3377_v8 = vmul.f32 %v8598_v13, %v10517_v28  ;;  %v8310_v37 = vld [vmem:[%s9150_s28 + $0x5f0] sm:$0xff]   ;;  %v10565_v55 = vld [vmem:[#allocation3 + $0x158] sm:$0xff]  ;;  %s4825_s30 = sadd.s32 6, %s10870_s26 }
 0x168   : > { %7670 = vmatprep.subr.bf16.mxu0 %v8299_v25  ;;  %v2668_v10 = vmul.f32 %v8599_v2, %v10210_v1  ;;  %v10550_v25 = vld [vmem:[#allocation3 + $0x38] sm:$0xff]  ;;  %v10558_v1 = vmul.f32 %v8602_v3, %v10231_v26  ;;  %v3365_v53 = vadd.f32 %v3358_v54, %v3348_v52  ;;  %v3394_v56 = vmul.f32 %v8604_v32, %v10523_v21  ;;  %v8312_v26 = vld [vmem:[%s9150_s28 + $0x5b0] sm:$0xff]   ;;  %v10602_v2 = vld [vmem:[#allocation3 + $0x190] sm:$0xff] }
 0x169   : > { %v3334_v6 = vadd.f32 %v3327_v20, %v3317_v60  ;;  %v3289_v34 = vmul.f32 %v10550_v25, %v10402_v39  ;;  %v2658_v5 = vadd.f32 %v2651_v41, %v2641_v47  ;;  %v3384_v20 = vadd.f32 %v3377_v8, %v3367_v31  ;;  %v8314_v60 = vld [vmem:[%s9150_s28 + $0x5f8] sm:$0xff]   ;;  %v10582_v41 = vld [vmem:[#allocation3 + $0x48] sm:$0xff]  ;;  %v8311_v54 = vld [vmem:[%s9150_s28 + $0x580] sm:$0xff]  }
 0x16a   : > { %7691 = vmatpush3.bf16.msra.mxu1 %v8304_v38  ;;  %v3375_v38 = vmul.f32 %v10565_v55, %v10517_v28  ;;  %v10578_v47 = vld [vmem:[#allocation3 + $0x10] sm:$0xff]  ;;  %11936 = vst [vmem:[#allocation27_spill] sm:$0xff] %v10582_v41  ;;  %v3291_v52 = vmul.f32 %v10582_v41, %v10402_v39  ;;  %v10594_v31 = vld [vmem:[#allocation3 + $0x68] sm:$0xff] }
 0x16b   : > { %7671 = vmatpush3.bf16.msra.mxu0 %v8301_v4  ;;  %7692 = vmatprep.subr.bf16.mxu1 %v8306_v0  ;;  %v3351_v4 = vadd.f32 %v3344_v33, %v3334_v6  ;;  %v10572_v0 = vld [vmem:[#allocation3 + $0x70] sm:$0xff]  ;;  %v3296_v33 = vadd.f32 %v3289_v34, %v3279_v49  ;;  %v3281_v50 = vmul.f32 %v10578_v47, %v10396_v24 }
 0x16c   : > { %7672 = vmatprep.subr.bf16.mxu0 %v8303_v46  ;;  %v3306_v46 = vmul.f32 %v10572_v0, %v10426_v44  ;;  %v3295_v13 = vmul.f32 %v10594_v31, %v10402_v39  ;;  %v3412_v6 = vmul.f32 %v8602_v3, %v10544_v18  ;;  %v3392_v49 = vmul.f32 %v10602_v2, %v10523_v21  ;;  %v8316_v3 = vld [vmem:[%s9150_s28 + $0x5b8] sm:$0xff]  }
 0x16d   : > { %v3368_v36 = vadd.f32 %v3361_v62, %v3351_v4  ;;  %v8313_v62 = vld [vmem:[%s9150_s28 + $0x540] sm:$0xff]   ;;  %v3411_v34 = vmul.f32 %v10381_v61, %v10544_v18  ;;  %v3298_v41 = vadd.f32 %v3291_v52, %v3281_v50 }
 0x16e   : > { %7693 = vmatpush3.bf16.msra.mxu1 %v8308_v42  ;;  %v8318_v61 = vld [vmem:[%s9150_s28 + $0x600] sm:$0xff]  }
 0x16f   : > { %7673 = vmatpush3.bf16.msra.mxu0 %v8305_v17  ;;  %7694 = vmatprep.subr.bf16.mxu1 %v8310_v37  ;;  %v10590_v17 = vld [vmem:[#allocation3 + $0x30] sm:$0xff]  ;;  %v3385_v8 = vadd.f32 %v3378_v16, %v3368_v36  ;;  %v2675_v37 = vadd.f32 %v2668_v10, %v2658_v5  ;;  %v3401_v16 = vadd.f32 %v3394_v56, %v3384_v20 }
 0x170   : > { %7674 = vmatprep.subr.bf16.mxu0 %v8307_v14  ;;  %v3285_v42 = vmul.f32 %v10590_v17, %v10396_v24  ;;  %v10608_v14 = vld [vmem:[#allocation3 + $0xa8] sm:$0xff]  ;;  %v3284_v10 = vmul.f32 %v10266_v43, %v10396_v24  ;;  %v3294_v5 = vmul.f32 %v10270_v45, %v10402_v39  ;;  %v3382_v36 = vadd.f32 %v3375_v38, %v3365_v53  ;;  %v8315_v43 = vld [vmem:[%s9150_s28 + $0x588] sm:$0xff]  }
 0x171   : > { %11937 = vst [vmem:[#allocation28_spill] sm:$0xff] %v10608_v14  ;;  %v3323_v4 = vmul.f32 %v10608_v14, %v10458_v58  ;;  %v3402_v32 = vadd.f32 %v3395_v9, %v3385_v8  ;;  %v10619_v14 = vld [vmem:[#allocation3 + $0x80] sm:$0xff]  ;;  %v3313_v24 = vadd.f32 %v3306_v46, %v3296_v33  ;;  %v2699_v38 = vadd.f32 %v10264_v63, %v10555_v23  ;;  %v10634_v9 = vld [vmem:[#allocation3 + $0x1c8] sm:$0xff]  ;;  %v8320_v33 = vld [vmem:[%s9150_s28 + $0x5c0] sm:$0xff]  }
 0x172   : > { %7695 = vmatpush3.bf16.msra.mxu1 %v8312_v26  ;;  %v3308_v56 = vmul.f32 %v10619_v14, %v10426_v44  ;;  %v3302_v26 = vadd.f32 %v3295_v13, %v3285_v42  ;;  %v10624_v45 = vld [vmem:[#allocation3 + $0xa0] sm:$0xff]  ;;  %v2692_v20 = vadd.f32 %v10558_v1, %v2675_v37  ;;  %v3409_v46 = vmul.f32 %v10634_v9, %v10544_v18 }
 0x173   : > { %7675 = vmatpush3.bf16.msra.mxu0 %v8309_v11  ;;  %7696 = vmatprep.subr.bf16.mxu1 %v8314_v60  ;;  %v3312_v39 = vmul.f32 %v10624_v45, %v10426_v44  ;;  %v3419_v11 = vadd.f32 %v3412_v6, %v3402_v32  ;;  %v8317_v53 = vld [vmem:[%s9150_s28 + $0x548] sm:$0xff]   ;;  %v10639_v60 = vstv %s10561_s8  ;;  %v3418_v50 = vadd.f32 %v3411_v34, %v3401_v16  ;;  %v10653_v6 = vld [vmem:[#allocation3 + $0xb8] sm:$0xff]  ;;  %s10807_s8 = sld [smem:[#allocation8 + %s4132_s12]] }
 0x174   : > { %7676 = vmatprep.subr.bf16.mxu0 %v8311_v54  ;;  %v3301_v52 = vadd.f32 %v3294_v5, %v3284_v10  ;;  %v3311_v54 = vmul.f32 %v10285_v27, %v10426_v44  ;;  %v8322_v1 = vld [vmem:[%s9150_s28 + $0x608] sm:$0xff]   ;;  %v3315_v8 = vadd.f32 %v3308_v56, %v3298_v41  ;;  %v3325_v27 = vmul.f32 %v10653_v6, %v10458_v58  ;;  %v10661_v16 = vld [vmem:[#allocation3 + $0xd8] sm:$0xff]  ;;  %v8321_v41 = vld [vmem:[%s9150_s28 + $0x550] sm:$0xff]   ;;  %s10999_s12 = sld [smem:[#allocation8 + %s4825_s30]] }
 0x175   : > { %v10646_v23 = vadd.f32 %v10639_v60, %v3419_v11  ;;  %v10649_v42 = vld [vmem:[#allocation3 + $0xe0] sm:$0xff]  ;;  %v10658_v44 = vstv %s10587_s11  ;;  %v3399_v37 = vadd.f32 %v3392_v49, %v3382_v36  ;;  %v3330_v34 = vadd.f32 %v3323_v4, %v3313_v24  ;;  %v10678_v24 = vld [vmem:[#allocation3 + $0x118] sm:$0xff]  ;;  %s4740_s11 = sadd.s32 1, %s10870_s26 }
 0x176   : > { %7697 = vmatpush3.bf16.msra.mxu1 %v8316_v3  ;;  %v3340_v13 = vmul.f32 %v10649_v42, %v10479_v30  ;;  %v3319_v3 = vadd.f32 %v3312_v39, %v3302_v26  ;;  %v3329_v10 = vmul.f32 %v10661_v16, %v10458_v58  ;;  %v2701_v5 = vadd.f32 %v10264_v63, %v2692_v20  ;;  %v8323_v56 = vld [vmem:[%s9150_s28 + $0x5c8] sm:$0xff]   ;;  %v10682_v39 = vld [vmem:[#allocation3 + $0xf0] sm:$0xff] }
 0x177   : > { %11938 = vst [vmem:[#allocation23_spill] sm:$0xff] %v10646_v23  ;;  %7677 = vmatpush3.bf16.msra.mxu0 %v8313_v62  ;;  %7698 = vmatprep.subr.bf16.mxu1 %v8318_v61  ;;  %v8319_v62 = vld [vmem:[%s9150_s28 + $0x590] sm:$0xff]   ;;  %v10670_v32 = vstv %s10599_s13  ;;  %v2706_v61 = vmax.f32 %v2699_v38, 0.0  ;;  %v3427_v49 = vadd.f32 %v10639_v60, %v3418_v50  ;;  %v3318_v4 = vadd.f32 %v3311_v54, %v3301_v52  ;;  %v10686_v38 = vld [vmem:[#allocation3 + $0x110] sm:$0xff]  ;;  %s10904_s13 = sld [smem:[#allocation8 + %s10870_s26]] }
 0x178   : > { %7678 = vmatprep.subr.bf16.mxu0 %v8315_v43  ;;  %v3328_v36 = vmul.f32 %v10300_v51, %v10458_v58  ;;  %v8324_v43 = vld [vmem:[%s9150_s28 + $0x610] sm:$0xff]   ;;  %v3357_v63 = vmul.f32 %v10678_v24, %v10493_v57  ;;  %v3332_v26 = vadd.f32 %v3325_v27, %v3315_v8  ;;  %v3342_v11 = vmul.f32 %v10682_v39, %v10479_v30 }
 0x179   : > { %v3416_v51 = vadd.f32 %v3409_v46, %v3399_v37  ;;  %v3347_v58 = vadd.f32 %v3340_v13, %v3330_v34  ;;  %v3346_v20 = vmul.f32 %v10686_v38, %v10479_v30  ;;  %v2708_v50 = vmax.f32 %v2701_v5, 0.0  ;;  %v8326_v13 = vld [vmem:[%s9150_s28 + $0x618] sm:$0xff]   ;;  %v8327_v34 = vld [vmem:[%s9150_s28 + $0x660] sm:$0xff]  }
 0x17a   : > { %7699 = vmatpush3.bf16.msra.mxu1 %v8320_v33  ;;  %v8325_v33 = vld [vmem:[%s9150_s28 + $0x5d0] sm:$0xff]   ;;  %v4007_v52 = vmul.f32 %v10440_v29, %v10658_v44  ;;  %v4017_v54 = vmul.f32 %v10444_v40, %v10670_v32  ;;  %v10699_v46 = vstv %s10628_s16  ;;  %v3434_v8 = vmax.f32 %v3427_v49, 0.0  ;;  %v10707_v29 = vld [vmem:[#allocation3 + $0x150] sm:$0xff]  ;;  %s10914_s16 = sld [smem:[#allocation8 + %s4740_s11]] }
 0x17b   : > { %7679 = vmatpush3.bf16.msra.mxu0 %v8317_v53  ;;  %7700 = vmatprep.subr.bf16.mxu1 %v8322_v1  ;;  %v3336_v53 = vadd.f32 %v3329_v10, %v3319_v3  ;;  %v2713_v1 = vpack.c.bf16 %v2706_v61, %v2706_v61  ;;  %v3335_v27 = vadd.f32 %v3328_v36, %v3318_v4  ;;  %v10711_v10 = vld [vmem:[#allocation3 + $0x128] sm:$0xff]  ;;  %s11096_s11 = sld [smem:[#allocation9 + %s10870_s26]] }
 0x17c   : > { %7680 = vmatprep.subr.bf16.mxu0 %v8319_v62  ;;  %v10702_v62 = vld [vmem:[#allocation3 + $0x108] sm:$0xff]  ;;  %v3374_v40 = vmul.f32 %v10707_v29, %v10517_v28  ;;  %v3349_v3 = vadd.f32 %v3342_v11, %v3332_v26  ;;  %v3359_v5 = vmul.f32 %v10711_v10, %v10493_v57  ;;  %v3364_v61 = vadd.f32 %v3357_v63, %v3347_v58 }
 0x17d   : > { %v3345_v37 = vmul.f32 %v10702_v62, %v10479_v30  ;;  %v8328_v30 = vld [vmem:[%s9150_s28 + $0x6e0] sm:$0xff]   ;;  %v10718_v49 = vld [vmem:[#allocation3 + $0x148] sm:$0xff]  ;;  %v2715_v36 = vpack.c.bf16 %v2708_v50, %v2708_v50  ;;  %v4034_v26 = vmul.f32 %v10467_v15, %v10699_v46  ;;  %v10725_v11 = vstv %s10665_s18  ;;  %v8332_v15 = vld [vmem:[%s9150_s28 + $0x6e8] sm:$0xff]   ;;  %s4791_s18 = sadd.s32 4, %s10870_s26 }
 0x17e   : > { %7701 = vmatpush3.bf16.msra.mxu1 %v8323_v56  ;;  %v3353_v56 = vadd.f32 %v3346_v20, %v3336_v53  ;;  %v3363_v4 = vmul.f32 %v10718_v49, %v10493_v57  ;;  %v2710_v63 = vmax.f32 %v10386_v19, 0.0  ;;  %v3441_v58 = vpack.c.bf16 %v3434_v8, %v3434_v8  ;;  %v10733_v20 = vld [vmem:[#allocation3 + $0x140] sm:$0xff]  ;;  %s10936_s24 = sld [smem:[#allocation8 + %s4791_s18]] }
 0x17f   : > { %7681 = vmatpush3.bf16.msra.mxu0 %v8321_v41  ;;  %7702 = vmatprep.subr.bf16.mxu1 %v8324_v43  ;;  %v3425_v41 = vadd.f32 %v10639_v60, %v3416_v51  ;;  %v4024_v43 = vadd.f32 %v4017_v54, %v4007_v52  ;;  %v8330_v51 = vld [vmem:[%s9150_s28 + $0x6a0] sm:$0xff]   ;;  %v3352_v53 = vadd.f32 %v3345_v37, %v3335_v27  ;;  %v10740_v52 = vld [vmem:[#allocation3 + $0x188] sm:$0xff]  ;;  %v10747_v8 = vld [vmem:[#allocation3 + $0x180] sm:$0xff] }
 0x180   : > { %8002 = vmatprep.subr.bf16.mxu0 %v11914_v12  ;;  %v3362_v50 = vmul.f32 %v10733_v20, %v10493_v57  ;;  %v3366_v19 = vadd.f32 %v3359_v5, %v3349_v3  ;;  %v3376_v54 = vmul.f32 %v10474_v59, %v10517_v28  ;;  %v3380_v27 = vmul.f32 %v10747_v8, %v10517_v28  ;;  %v8329_v37 = vld [vmem:[%s9150_s28 + $0x620] sm:$0xff]  }
 0x181   : > { %v3432_v57 = vmax.f32 %v3425_v41, 0.0  ;;  %v4041_v3 = vadd.f32 %v4034_v26, %v4024_v43  ;;  %v4051_v5 = vmul.f32 %v10487_v48, %v10725_v11  ;;  %v2717_v59 = vpack.c.bf16 %v2710_v63, %v2710_v63  ;;  %v10765_v48 = vld [vmem:[#allocation3 + $0x1c0] sm:$0xff]  ;;  %v10769_v43 = vld [vmem:[#allocation3 + $0x198] sm:$0xff] }
 0x182   : > { %3187 = vmatmul.mubr.bf16.vlgmr.msra.gmra.mrb[24].mxu0 %v2713_v1  ;;  %7703 = vmatpush3.bf16.msra.mxu1 %v8325_v33  ;;  %v3391_v33 = vmul.f32 %v10740_v52, %v10523_v21  ;;  %v3381_v1 = vadd.f32 %v3374_v40, %v3364_v61  ;;  %v3369_v40 = vadd.f32 %v3362_v50, %v3352_v53  ;;  %v10760_v61 = vstv %s10690_s15  ;;  %s10928_s15 = sld [smem:[#allocation8 + %s4774_s17]] }
 0x183   : > { %8003 = vmatpush3.bf16.msra.mxu0 %v8326_v13  ;;  %8004 = vmatprep.mubr.msk.bf16.mxu0 %vm8931_vm0, %v11914_v12  ;;  %v3370_v13 = vadd.f32 %v3363_v4, %v3353_v56  ;;  %v8336_v56 = vld [vmem:[%s9150_s28 + $0x6f0] sm:$0xff]   ;;  %v3408_v4 = vmul.f32 %v10765_v48, %v10544_v18  ;;  %11939 = vst [vmem:[#allocation38_spill] sm:$0xff] %v10769_v43 }
 0x184   : > { %7712 = vmatprep.subr.bf16.mxu0 %v8327_v34  ;;  %7734 = vmatprep.subr.bf16.mxu1 %v8328_v30  ;;  %v8334_v34 = vld [vmem:[%s9150_s28 + $0x6a8] sm:$0xff]   ;;  %v10755_v30 = vld [vmem:[#allocation3 + $0x178] sm:$0xff]  ;;  %v3393_v26 = vmul.f32 %v10769_v43, %v10523_v21  ;;  %v3398_v53 = vadd.f32 %v3391_v33, %v3381_v1  ;;  %v4058_v23 = vadd.f32 %v4051_v5, %v4041_v3  ;;  %v10798_v3 = vstv %s10729_s27  ;;  %v8634_v5 = vld [vmem:[#allocation3 + $0x1f0] sm:$0xff]  ;;  %s4808_s27 = sadd.s32 5, %s10870_s26 }
 0x185   : > { %3227 = vmatmul.mubr.bf16.vlgmr.msra.gmra.mrb[28].mxu1 %v2715_v36  ;;  %v3379_v41 = vmul.f32 %v10755_v30, %v10517_v28  ;;  %v3383_v36 = vadd.f32 %v3376_v54, %v3366_v19  ;;  %v10773_v28 = vld [vmem:[#allocation3 + $0x1d0] sm:$0xff]  ;;  %v3387_v50 = vadd.f32 %v3380_v27, %v3370_v13  ;;  %v8333_v54 = vld [vmem:[%s9150_s28 + $0x628] sm:$0xff]   ;;  %v4068_v43 = vmul.f32 %v10508_v22, %v10760_v61  ;;  %s10991_s21 = sld [smem:[#allocation8 + %s4808_s27]] }
 0x186   : > { %7735 = vmatpush3.bf16.msra.mxu1 %v8330_v51  ;;  %3913 = vmatprep.mubr.bf16.mxu1 %v3441_v58  ;;  %11940 = vst [vmem:[#allocation21_spill] sm:$0xff] %v10773_v28  ;;  %v3410_v63 = vmul.f32 %v10773_v28, %v10544_v18  ;;  %v8331_v51 = vld [vmem:[%s9150_s28 + $0x668] sm:$0xff]   ;;  %v3439_v58 = vpack.c.bf16 %v3432_v57, %v3432_v57  ;;  %v8338_v57 = vld [vmem:[%s9150_s28 + $0x6b0] sm:$0xff]   ;;  %v10793_v13 = vld [vmem:[#allocation3 + $0x1b0] sm:$0xff] }
 0x187   : > { %7736 = vmatprep.subr.bf16.mxu1 %v8332_v15  ;;  %v10779_v15 = vld [vmem:[#allocation3 + $0x1b8] sm:$0xff]  ;;  %v4012_v28 = vmul.f32 %v10590_v17, %v10658_v44  ;;  %v4022_v33 = vmul.f32 %v10594_v31, %v10670_v32  ;;  %v3386_v1 = vadd.f32 %v3379_v41, %v3369_v40  ;;  %v3396_v27 = vmul.f32 %v10793_v13, %v10523_v21  ;;  %v8340_v17 = vld [vmem:[%s9150_s28 + $0x6f8] sm:$0xff]   ;;  %v8335_v40 = vld [vmem:[%s9150_s28 + $0x670] sm:$0xff]  }
 0x188   : > { %v3397_v19 = vmul.f32 %v10779_v15, %v10523_v21  ;;  %v4039_v22 = vmul.f32 %v10624_v45, %v10699_v46  ;;  %v3400_v31 = vadd.f32 %v3393_v26, %v3383_v36  ;;  %v3415_v21 = vadd.f32 %v3408_v4, %v3398_v53  ;;  %v8342_v4 = vld [vmem:[%s9150_s28 + $0x6b8] sm:$0xff]  }
 0x189   : > { %v4056_v45 = vmul.f32 %v10661_v16, %v10725_v11  ;;  %v4085_v36 = vmul.f32 %v10531_v7, %v10798_v3  ;;  %v10822_v16 = vstv %s10762_s7  ;;  %v8344_v7 = vld [vmem:[%s9150_s28 + $0x700] sm:$0xff]   ;;  %s4842_s7 = sadd.s32 7, %s10870_s26 }
 0x18a   : > { %8005 = vmatmul.mubr.msk.bf16.vlgmr.msra.gmra.mrb[28].mxu0 %vm929_vm1, %v2717_v59  ;;  %7737 = vmatpush3.bf16.msra.mxu1 %v8334_v34  ;;  %v3414_v59 = vmul.f32 %v8634_v5, %v10544_v18  ;;  %v4029_v34 = vadd.f32 %v4022_v33, %v4012_v28  ;;  %v3404_v41 = vadd.f32 %v3397_v19, %v3387_v50  ;;  %v8339_v50 = vld [vmem:[%s9150_s28 + $0x678] sm:$0xff]  }
 0x18b   : > { %7713 = vmatpush3.bf16.msra.mxu0 %v8329_v37  ;;  %7738 = vmatprep.subr.bf16.mxu1 %v8336_v56  ;;  %v8337_v37 = vld [vmem:[%s9150_s28 + $0x630] sm:$0xff]   ;;  %v4075_v56 = vadd.f32 %v4068_v43, %v4058_v23  ;;  %v4073_v28 = vmul.f32 %v10686_v38, %v10760_v61  ;;  %v3417_v23 = vadd.f32 %v3410_v63, %v3400_v31  ;;  %v8341_v33 = vld [vmem:[%s9150_s28 + $0x638] sm:$0xff]  }
 0x18c   : > { %7714 = vmatprep.subr.bf16.mxu0 %v8331_v51  ;;  %3873 = vmatprep.mubr.bf16.mxu0 %v3439_v58  ;;  %v4046_v26 = vadd.f32 %v4039_v22, %v4029_v34  ;;  %v3403_v51 = vadd.f32 %v3396_v27, %v3386_v1  ;;  %v10817_v58 = vld [vmem:[#allocation3 + $0x1e8] sm:$0xff]  ;;  %v4090_v38 = vmul.f32 %v10718_v49, %v10798_v3  ;;  %v8346_v49 = vld [vmem:[%s9150_s28 + $0x6c0] sm:$0xff]   ;;  %v10838_v22 = vstv %s10800_s6  ;;  %s11007_s6 = sld [smem:[#allocation8 + %s4842_s7]] }
 0x18d   : > { %v3413_v53 = vmul.f32 %v10817_v58, %v10544_v18  ;;  %v10829_v19 = vadd.f32 %v10639_v60, %v3415_v21  ;;  %v3421_v18 = vadd.f32 %v3414_v59, %v3404_v41  ;;  %v4107_v63 = vmul.f32 %v10747_v8, %v10822_v16  ;;  %v8343_v59 = vld [vmem:[%s9150_s28 + $0x680] sm:$0xff]  }
 0x18e   : > { %7739 = vmatpush3.bf16.msra.mxu1 %v8338_v57  ;;  %v4063_v43 = vadd.f32 %v4056_v45, %v4046_v26  ;;  %v4092_v57 = vadd.f32 %v4085_v36, %v4075_v56  ;;  %v10845_v31 = vadd.f32 %v10639_v60, %v3417_v23  ;;  %v4124_v8 = vmul.f32 %v10779_v15, %v10838_v22  ;;  %v8345_v41 = vld [vmem:[%s9150_s28 + $0x640] sm:$0xff]   ;;  %v8350_v36 = vld [vmem:[%s9150_s28 + $0x6c8] sm:$0xff]  }
 0x18f   : > { %7715 = vmatpush3.bf16.msra.mxu0 %v8333_v54  ;;  %7740 = vmatprep.subr.bf16.mxu1 %v8340_v17  ;;  %v4102_v54 = vmul.f32 %v10565_v55, %v10822_v16  ;;  %v3420_v27 = vadd.f32 %v3413_v53, %v3403_v51  ;;  %v8348_v17 = vld [vmem:[%s9150_s28 + $0x708] sm:$0xff]   ;;  %v3431_v34 = vmax.f32 %v10829_v19, 0.0  ;;  %v10855_v21 = vstv %s10807_s8  ;;  %v10879_v23 = vld [vmem:[#allocation3 + $0x18] sm:$0xff]  ;;  %s4859_s8 = sadd.s32 8, %s10870_s26  ;;  %s11139_s26 = sadd.s32 896, %s9166_s23 }
 0x190   : > { %7716 = vmatprep.subr.bf16.mxu0 %v8335_v40  ;;  %v4080_v1 = vadd.f32 %v4073_v28, %v4063_v43  ;;  %v10852_v40 = vadd.f32 %v10639_v60, %v3421_v18  ;;  %v4141_v15 = vmul.f32 %v8634_v5, %v10855_v21  ;;  %v4006_v28 = vmul.f32 %v10546_v35, %v10658_v44  ;;  %s5467_s23 = sadd.s32 1, %s11139_s26  ;;  %s5484_s14 = sadd.s32 2, %s11139_s26 }
 0x191   : > { %v4109_v45 = vadd.f32 %v4102_v54, %v4092_v57  ;;  %v10863_v26 = vadd.f32 %v10639_v60, %v3420_v27  ;;  %v3433_v5 = vmax.f32 %v10845_v31, 0.0  ;;  %v8347_v60 = vld [vmem:[%s9150_s28 + $0x688] sm:$0xff]   ;;  %v4136_v35 = vmul.f32 %v10634_v9, %v10855_v21  ;;  %s11176_s17 = sld [smem:[#allocation8 + %s5467_s23]]  ;;  %s5552_s30 = sadd.s32 6, %s11139_s26 }
 0x192   : > { %7741 = vmatpush3.bf16.msra.mxu1 %v8342_v4  ;;  %v4097_v55 = vadd.f32 %v4090_v38, %v4080_v1  ;;  %v4016_v4 = vmul.f32 %v10550_v25, %v10670_v32  ;;  %v3437_v53 = vmax.f32 %v10852_v40, 0.0  ;;  %v4009_v43 = vmul.f32 %v10879_v23, %v10658_v44  ;;  %v10883_v38 = vld [vmem:[#allocation3 + $0x50] sm:$0xff]  ;;  %v11941_v27 = vld [vmem:[#allocation27_spill] sm:$0xff]  ;;  %s11181_s18 = sld [smem:[#allocation8 + %s5484_s14]] }
 0x193   : > { %7717 = vmatpush3.bf16.msra.mxu0 %v8337_v37  ;;  %7742 = vmatprep.subr.bf16.mxu1 %v8344_v7  ;;  %v4119_v37 = vmul.f32 %v10602_v2, %v10838_v22  ;;  %v8352_v2 = vld [vmem:[%s9150_s28 + $0x710] sm:$0xff]   ;;  %v8349_v7 = vld [vmem:[%s9150_s28 + $0x648] sm:$0xff]   ;;  %v3436_v9 = vmax.f32 %v10863_v26, 0.0  ;;  %v10891_v57 = vstv %s10841_s9  ;;  %v4033_v1 = vmul.f32 %v10572_v0, %v10699_v46  ;;  %s11055_s9 = sld [smem:[#allocation8 + %s4859_s8]] }
 0x194   : > { %7718 = vmatprep.subr.bf16.mxu0 %v8339_v50  ;;  %v4114_v56 = vadd.f32 %v4107_v63, %v4097_v55  ;;  %v4019_v50 = vmul.f32 %v10883_v38, %v10670_v32  ;;  %v4023_v54 = vadd.f32 %v4016_v4, %v4006_v28  ;;  %v8356_v63 = vld [vmem:[%s9150_s28 + $0x718] sm:$0xff]   ;;  %v8351_v55 = vld [vmem:[%s9150_s28 + $0x690] sm:$0xff]   ;;  %v4101_v40 = vmul.f32 %v10707_v29, %v10822_v16 }
 0x195   : > { %v4126_v25 = vadd.f32 %v4119_v37, %v4109_v45  ;;  %v8638_v0 = vld [vmem:[#allocation3 + $0x28] sm:$0xff] }
 0x196   : > { %7743 = vmatpush3.bf16.msra.mxu1 %v8346_v49  ;;  %v4131_v51 = vadd.f32 %v4124_v8, %v4114_v56  ;;  %v4008_v49 = vmul.f32 %v10578_v47, %v10658_v44  ;;  %v4011_v8 = vmul.f32 %v8638_v0, %v10658_v44  ;;  %v4026_v45 = vadd.f32 %v4019_v50, %v4009_v43  ;;  %v10910_v37 = vld [vmem:[#allocation3 + $0x88] sm:$0xff]  ;;  %v8641_v43 = vld [vmem:[#allocation3 + $0x98] sm:$0xff] }
 0x197   : > { %7719 = vmatpush3.bf16.msra.mxu0 %v8341_v33  ;;  %7744 = vmatprep.subr.bf16.mxu1 %v8348_v17  ;;  %v8354_v33 = vld [vmem:[%s9150_s28 + $0x6d0] sm:$0xff]   ;;  %v4018_v17 = vmul.f32 %v11941_v27, %v10670_v32  ;;  %v4036_v56 = vmul.f32 %v10910_v37, %v10699_v46  ;;  %v4038_v50 = vmul.f32 %v8641_v43, %v10699_v46  ;;  %v8364_v27 = vld [vmem:[%s9150_s28 + $0x7e8] sm:$0xff]  }
 0x198   : > { %7720 = vmatprep.subr.bf16.mxu0 %v8343_v59  ;;  %v4148_v18 = vadd.f32 %v4141_v15, %v4131_v51  ;;  %v8639_v59 = vld [vmem:[#allocation3 + $0x60] sm:$0xff]  ;;  %v8358_v15 = vld [vmem:[%s9150_s28 + $0x6d8] sm:$0xff]   ;;  %v8353_v4 = vld [vmem:[%s9150_s28 + $0x650] sm:$0xff]   ;;  %v4052_v0 = vmul.f32 %v10653_v6, %v10725_v11  ;;  %v3438_v6 = vpack.c.bf16 %v3431_v34, %v3431_v34 }
 0x199   : > { %v4021_v47 = vmul.f32 %v8639_v59, %v10670_v32  ;;  %v4025_v51 = vadd.f32 %v4018_v17, %v4008_v49  ;;  %v4067_v49 = vmul.f32 %v10649_v42, %v10760_v61  ;;  %v8367_v29 = vld [vmem:[%s9150_s28 + $0x730] sm:$0xff]  }
 0x19a   : > { %7745 = vmatpush3.bf16.msra.mxu1 %v8350_v36  ;;  %v10901_v31 = vadd.f32 %v10891_v57, %v4148_v18  ;;  %v11942_v36 = vld [vmem:[#allocation28_spill] sm:$0xff]  ;;  %v3440_v18 = vpack.c.bf16 %v3433_v5, %v3433_v5 }
 0x19b   : > { %7721 = vmatpush3.bf16.msra.mxu0 %v8345_v41  ;;  %7746 = vmatprep.subr.bf16.mxu1 %v8352_v2  ;;  %v4143_v41 = vadd.f32 %v4136_v35, %v4126_v25  ;;  %v4050_v28 = vmul.f32 %v11942_v36, %v10725_v11  ;;  %v4040_v2 = vadd.f32 %v4033_v1, %v4023_v54  ;;  %v8355_v35 = vld [vmem:[%s9150_s28 + $0x698] sm:$0xff]  }
 0x19c   : > { %7722 = vmatprep.subr.bf16.mxu0 %v8347_v60  ;;  %v4035_v60 = vmul.f32 %v10619_v14, %v10699_v46  ;;  %v4028_v25 = vadd.f32 %v4021_v47, %v4011_v8  ;;  %v4043_v54 = vadd.f32 %v4036_v56, %v4026_v45  ;;  %v10932_v14 = vld [vmem:[#allocation3 + $0xc0] sm:$0xff]  ;;  %v8359_v8 = vld [vmem:[%s9150_s28 + $0x760] sm:$0xff]  }
 0x19d   : > { %v4053_v1 = vmul.f32 %v10932_v14, %v10725_v11  ;;  %v4057_v17 = vadd.f32 %v4050_v28, %v4040_v2 }
 0x19e   : > { %7747 = vmatpush3.bf16.msra.mxu1 %v8354_v33  ;;  %v4152_v33 = vadd.f32 %v10891_v57, %v4143_v41  ;;  %v4045_v47 = vadd.f32 %v4038_v50, %v4028_v25  ;;  %v8643_v41 = vld [vmem:[#allocation3 + $0xd0] sm:$0xff]  ;;  %v8360_v25 = vld [vmem:[%s9150_s28 + $0x720] sm:$0xff]   ;;  %v4069_v50 = vmul.f32 %v10682_v39, %v10760_v61 }
 0x19f   : > { %7723 = vmatpush3.bf16.msra.mxu0 %v8349_v7  ;;  %7748 = vmatprep.subr.bf16.mxu1 %v8356_v63  ;;  %v8357_v7 = vld [vmem:[%s9150_s28 + $0x658] sm:$0xff]   ;;  %v8361_v63 = vld [vmem:[%s9150_s28 + $0x7a0] sm:$0xff]   ;;  %v4055_v45 = vmul.f32 %v8643_v41, %v10725_v11  ;;  %v4060_v36 = vadd.f32 %v4053_v1, %v4043_v54  ;;  %v4074_v43 = vadd.f32 %v4067_v49, %v4057_v17 }
 0x1a0   : > { %7724 = vmatprep.subr.bf16.mxu0 %v8351_v55  ;;  %v4042_v55 = vadd.f32 %v4035_v60, %v4025_v51  ;;  %v3443_v60 = vpack.c.bf16 %v3436_v9, %v3436_v9  ;;  %v3444_v1 = vpack.c.bf16 %v3437_v53, %v3437_v53  ;;  %v10972_v49 = vld [vmem:[#allocation3 + $0x130] sm:$0xff]  ;;  %v8368_v53 = vld [vmem:[%s9150_s28 + $0x7f0] sm:$0xff]  }
 0x1a1   : > { %v4062_v9 = vadd.f32 %v4055_v45, %v4045_v47  ;;  %v4087_v39 = vmul.f32 %v10972_v49, %v10798_v3  ;;  %v4089_v47 = vmul.f32 %v10733_v20, %v10798_v3  ;;  %v10995_v45 = vld [vmem:[#allocation3 + $0x168] sm:$0xff] }
 0x1a2   : > { %7749 = vmatpush3.bf16.msra.mxu1 %v8358_v15  ;;  %v7456_v5 = vpop.f32.mrb[0].mxu0  ;;  %v4159_v15 = vmax.f32 %v4152_v33, 0.0  ;;  %v4059_v34 = vadd.f32 %v4052_v0, %v4042_v55  ;;  %v4086_v0 = vmul.f32 %v10711_v10, %v10798_v3  ;;  %v4104_v10 = vmul.f32 %v10995_v45, %v10822_v16  ;;  %v8370_v20 = vld [vmem:[%s9150_s28 + $0x7b0] sm:$0xff]  }
 0x1a3   : > { %7725 = vmatpush3.bf16.msra.mxu0 %v8353_v4  ;;  %8008 = vmatprep.subr.bf16.mxu1 %v11914_v12  ;;  %v7457_v59 = vpop.f32.mrb[1].mxu0  ;;  %v10948_v4 = vld [vmem:[#allocation3 + $0xf8] sm:$0xff] }
 0x1a4   : > { %7726 = vmatprep.subr.bf16.mxu0 %v8355_v35  ;;  %v7458_v42 = vadd.f32 %v7457_v59, %v7456_v5  ;;  %v7459_v56 = vpop.f32.mrb[2].mxu0  ;;  %v4070_v28 = vmul.f32 %v10948_v4, %v10760_v61  ;;  %v4084_v35 = vmul.f32 %v10678_v24, %v10798_v3  ;;  %v4072_v24 = vmul.f32 %v10702_v62, %v10760_v61 }
 0x1a5   : > { %3914 = vmatmul.mubr.bf16.vlgmr.msra.gmra.mrb[32].mxu1 %v3440_v18  ;;  %v7460_v51 = vpop.f32.mrb[3].mxu0  ;;  %v8362_v18 = vld [vmem:[%s9150_s28 + $0x768] sm:$0xff]   ;;  %v4166_v62 = vpack.c.bf16 %v4159_v15, %v4159_v15  ;;  %v4076_v55 = vadd.f32 %v4069_v50, %v4059_v34  ;;  %v11005_v56 = vstv %s10904_s13  ;;  %v8372_v15 = vld [vmem:[%s9150_s28 + $0x7f8] sm:$0xff]   ;;  %s11163_s13 = sld [smem:[#allocation8 + %s11139_s26]] }
 0x1a6   : > { %8009 = vmatpush3.bf16.msra.mxu1 %v8361_v63  ;;  %8010 = vmatprep.mubr.msk.bf16.mxu1 %vm8931_vm0, %v11914_v12  ;;  %v4077_v63 = vadd.f32 %v4070_v28, %v4060_v36  ;;  %v4091_v17 = vadd.f32 %v4084_v35, %v4074_v43  ;;  %v4079_v59 = vadd.f32 %v4072_v24, %v4062_v9  ;;  %v11015_v51 = vstv %s10914_s16  ;;  %v8648_v43 = vld [vmem:[#allocation3 + $0x20] sm:$0xff]  ;;  %v8371_v50 = vld [vmem:[%s9150_s28 + $0x738] sm:$0xff]   ;;  %v8650_v24 = vld [vmem:[#allocation3 + $0x58] sm:$0xff]  ;;  %s5501_s16 = sadd.s32 3, %s11139_s26 }
 0x1a7   : > { %v7478_v2 = vpop.f32.mrb[0].mxu1  ;;  %7727 = vmatpush3.bf16.msra.mxu0 %v8357_v7  ;;  %7780 = vmatprep.subr.bf16.mxu1 %v8364_v27  ;;  %v8363_v7 = vld [vmem:[%s9150_s28 + $0x728] sm:$0xff]   ;;  %v4093_v28 = vadd.f32 %v4086_v0, %v4076_v55  ;;  %v4737_v34 = vmul.f32 %v8648_v43, %v11005_v56 }
 0x1a8   : > { %v7479_v19 = vpop.f32.mrb[1].mxu1  ;;  %7756 = vmatprep.subr.bf16.mxu0 %v8359_v8  ;;  %v8366_v27 = vld [vmem:[%s9150_s28 + $0x7a8] sm:$0xff]   ;;  %v8365_v8 = vld [vmem:[%s9150_s28 + $0x770] sm:$0xff]   ;;  %v4094_v41 = vadd.f32 %v4087_v39, %v4077_v63  ;;  %v4108_v36 = vadd.f32 %v4101_v40, %v4091_v17  ;;  %v4096_v35 = vadd.f32 %v4089_v47, %v4079_v59  ;;  %v8374_v63 = vld [vmem:[%s9150_s28 + $0x7b8] sm:$0xff]   ;;  %v4135_v39 = vmul.f32 %v10765_v48, %v10855_v21 }
 0x1a9   : > { %v7480_v26 = vadd.f32 %v7479_v19, %v7478_v2  ;;  %v7481_v33 = vpop.f32.mrb[2].mxu1  ;;  %v11024_v19 = vstv %s10924_s25  ;;  %v11040_v40 = vstv %s10928_s15  ;;  %v8376_v17 = vld [vmem:[%s9150_s28 + $0x800] sm:$0xff]   ;;  %s11186_s25 = sld [smem:[#allocation8 + %s5501_s16]]  ;;  %s5518_s15 = sadd.s32 4, %s11139_s26 }
 0x1aa   : > { %v7482_v54 = vpop.f32.mrb[3].mxu1  ;;  %3874 = vmatmul.mubr.bf16.vlgmr.msra.gmra.mrb[32].mxu0 %v3438_v6  ;;  %v11010_v6 = vld [vmem:[#allocation3 + $0x160] sm:$0xff]  ;;  %v8373_v48 = vld [vmem:[%s9150_s28 + $0x780] sm:$0xff]   ;;  %s11227_s27 = sld [smem:[#allocation8 + %s5518_s15]] }
 0x1ab   : > { %v10976_v5 = vadd.f32 %v7480_v26, %v7458_v42  ;;  %7757 = vmatpush3.bf16.msra.mxu0 %v8360_v25  ;;  %3953 = vmatprep.mubr.bf16.mxu0 %v3443_v60  ;;  %v4118_v42 = vmul.f32 %v10740_v52, %v10838_v22  ;;  %v4103_v2 = vmul.f32 %v11010_v6, %v10822_v16  ;;  %v8369_v52 = vld [vmem:[%s9150_s28 + $0x778] sm:$0xff]   ;;  %v11028_v33 = vld [vmem:[#allocation3 + $0x1a0] sm:$0xff] }
 0x1ac   : > { %7758 = vmatprep.subr.bf16.mxu0 %v8362_v18  ;;  %v4106_v25 = vmul.f32 %v10755_v30, %v10822_v16  ;;  %v4111_v26 = vadd.f32 %v4104_v10, %v4094_v41  ;;  %v4121_v9 = vmul.f32 %v11028_v33, %v10838_v22  ;;  %v8651_v54 = vld [vmem:[#allocation3 + $0x90] sm:$0xff]  ;;  %v4123_v10 = vmul.f32 %v10793_v13, %v10838_v22 }
 0x1ad   : > { %8011 = vmatmul.mubr.msk.bf16.vlgmr.msra.gmra.mrb[36].mxu1 %vm929_vm1, %v3444_v1  ;;  %v4764_v30 = vmul.f32 %v8651_v54, %v11024_v19  ;;  %v4110_v55 = vadd.f32 %v4103_v2, %v4093_v28  ;;  %v4125_v47 = vadd.f32 %v4118_v42, %v4108_v36  ;;  %v11058_v28 = vld [vmem:[#allocation3 + $0x1d8] sm:$0xff]  ;;  %v11062_v42 = vld [vmem:[#allocation3 + $0x100] sm:$0xff] }
 0x1ae   : > { %7781 = vmatpush3.bf16.msra.mxu1 %v8366_v27  ;;  %4600 = vmatprep.mubr.bf16.mxu1 %v4166_v62  ;;  %v11943_v27 = vld [vmem:[#allocation38_spill] sm:$0xff]  ;;  %v4113_v41 = vadd.f32 %v4106_v25, %v4096_v35  ;;  %v4138_v2 = vmul.f32 %v11058_v28, %v10855_v21  ;;  %v11944_v35 = vld [vmem:[#allocation21_spill] sm:$0xff] }
 0x1af   : > { %7759 = vmatpush3.bf16.msra.mxu0 %v8363_v7  ;;  %7782 = vmatprep.subr.bf16.mxu1 %v8368_v53  ;;  %v4747_v7 = vmul.f32 %v8650_v24, %v11015_v51  ;;  %v4120_v62 = vmul.f32 %v11943_v27, %v10838_v22  ;;  %v8378_v36 = vld [vmem:[%s9150_s28 + $0x7c0] sm:$0xff]   ;;  %v4137_v25 = vmul.f32 %v11944_v35, %v10855_v21  ;;  %v11112_v35 = vld [vmem:[#allocation3 + $0x1e0] sm:$0xff] }
 0x1b0   : > { %7760 = vmatprep.subr.bf16.mxu0 %v8365_v8  ;;  %v11019_v60 = vpop.f32.mrb[4].mxu1  ;;  %v11043_v8 = vld [vmem:[#allocation3 + $0xc8] sm:$0xff]  ;;  %v4130_v27 = vadd.f32 %v4123_v10, %v4113_v41 }
 0x1b1   : > { %v7988_v18 = vpop.f32.mrb[5].mxu1  ;;  %v4754_v0 = vadd.f32 %v4747_v7, %v4737_v34  ;;  %v4781_v59 = vmul.f32 %v11043_v8, %v11040_v40  ;;  %v4010_v34 = vmul.f32 %v8648_v43, %v10658_v44  ;;  %v4127_v7 = vadd.f32 %v4120_v62, %v4110_v55  ;;  %v8377_v44 = vld [vmem:[%s9150_s28 + $0x788] sm:$0xff]   ;;  %v11099_v10 = vld [vmem:[#allocation3 + $0x1a8] sm:$0xff] }
 0x1b2   : > { %7783 = vmatpush3.bf16.msra.mxu1 %v8370_v20  ;;  %v1090_v1 = vpop.f32.mrb[6].mxu1  ;;  %v8375_v20 = vld [vmem:[%s9150_s28 + $0x740] sm:$0xff]   ;;  %v4020_v18 = vmul.f32 %v8650_v24, %v10670_v32  ;;  %v4142_v43 = vadd.f32 %v4135_v39, %v4125_v47  ;;  %v4140_v32 = vmul.f32 %v10817_v58, %v10855_v21  ;;  %v8379_v24 = vld [vmem:[%s9150_s28 + $0x748] sm:$0xff]   ;;  %v8384_v58 = vld [vmem:[%s9150_s28 + $0x810] sm:$0xff]  }
 0x1b3   : > { %7761 = vmatpush3.bf16.msra.mxu0 %v8367_v29  ;;  %7784 = vmatprep.subr.bf16.mxu1 %v8372_v15  ;;  %v7989_v53 = vpop.f32.mrb[7].mxu1  ;;  %v11051_v29 = vstv %s10936_s24  ;;  %v4128_v15 = vadd.f32 %v4121_v9, %v4111_v26  ;;  %v11072_v26 = vstv %s10991_s21  ;;  %v8380_v9 = vld [vmem:[%s9150_s28 + $0x808] sm:$0xff]   ;;  %v11075_v1 = vld [vmem:[#allocation3 + $0x138] sm:$0xff]  ;;  %v4144_v47 = vadd.f32 %v4137_v25, %v4127_v7  ;;  %s5535_s24 = sadd.s32 5, %s11139_s26  ;;  %s5569_s21 = sadd.s32 7, %s11139_s26 }
 0x1b4   : > { %7762 = vmatprep.subr.bf16.mxu0 %v8369_v52  ;;  %v4771_v52 = vadd.f32 %v4764_v30, %v4754_v0  ;;  %v4798_v13 = vmul.f32 %v11062_v42, %v11051_v29  ;;  %v8382_v0 = vld [vmem:[%s9150_s28 + $0x7c8] sm:$0xff]   ;;  %v4027_v39 = vadd.f32 %v4020_v18, %v4010_v34  ;;  %v8386_v34 = vld [vmem:[%s9150_s28 + $0x7d0] sm:$0xff]   ;;  %v4054_v18 = vmul.f32 %v11043_v8, %v10725_v11  ;;  %v8385_v11 = vld [vmem:[%s9150_s28 + $0x798] sm:$0xff]   ;;  %s11239_s7 = sld [smem:[#allocation8 + %s5535_s24]] }
 0x1b5   : > { %v4145_v62 = vadd.f32 %v4138_v2, %v4128_v15  ;;  %v8381_v2 = vld [vmem:[%s9150_s28 + $0x790] sm:$0xff]   ;;  %v4746_v7 = vmul.f32 %v10883_v38, %v11015_v51  ;;  %v8387_v8 = vld [vmem:[%s9150_s28 + $0x758] sm:$0xff]   ;;  %s11280_s8 = sld [smem:[#allocation8 + %s5569_s21]] }
 0x1b6   : > { %7785 = vmatpush3.bf16.msra.mxu1 %v8374_v63  ;;  %v4788_v30 = vadd.f32 %v4781_v59, %v4771_v52  ;;  %v4815_v63 = vmul.f32 %v11075_v1, %v11072_v26  ;;  %v4037_v59 = vmul.f32 %v8651_v54, %v10699_v46  ;;  %v11105_v46 = vadd.f32 %v10891_v57, %v4142_v43 }
 0x1b7   : > { %7763 = vmatpush3.bf16.msra.mxu0 %v8371_v50  ;;  %7786 = vmatprep.subr.bf16.mxu1 %v8376_v17  ;;  %v11083_v50 = vstv %s10999_s12  ;;  %v11086_v17 = vld [vmem:[#allocation3 + $0x170] sm:$0xff]  ;;  %v4147_v54 = vadd.f32 %v4140_v32, %v4130_v27  ;;  %v11108_v52 = vstv %s11055_s9  ;;  %v11126_v43 = vadd.f32 %v10891_v57, %v4144_v47  ;;  %s11254_s12 = sld [smem:[#allocation8 + %s5552_s30]] }
 0x1b8   : > { %7764 = vmatprep.subr.bf16.mxu0 %v8373_v48  ;;  %v4805_v53 = vadd.f32 %v4798_v13, %v4788_v30  ;;  %v4832_v55 = vmul.f32 %v11086_v17, %v11083_v50  ;;  %v11093_v48 = vstv %s11007_s6  ;;  %v4154_v13 = vadd.f32 %v10891_v57, %v4145_v62  ;;  %v8388_v30 = vld [vmem:[%s9150_s28 + $0x818] sm:$0xff]   ;;  %s5586_s6 = sadd.s32 8, %s11139_s26 }
 0x1b9   : > { %v4849_v15 = vmul.f32 %v11099_v10, %v11093_v48  ;;  %v4866_v25 = vmul.f32 %v11112_v35, %v11108_v52  ;;  %v4044_v27 = vadd.f32 %v4037_v59, %v4027_v39  ;;  %v4156_v38 = vadd.f32 %v10891_v57, %v4147_v54  ;;  %v8392_v59 = vld [vmem:[%s9150_s28 + $0x820] sm:$0xff]   ;;  %s11304_s9 = sld [smem:[#allocation8 + %s5586_s6]] }
 0x1ba   : > { %7787 = vmatpush3.bf16.msra.mxu1 %v8378_v36  ;;  %v4822_v41 = vadd.f32 %v4815_v63, %v4805_v53  ;;  %v11945_v63 = vld [vmem:[#allocation23_spill] sm:$0xff]  ;;  %v8389_v53 = vld [vmem:[%s9150_s28 + $0x7d8] sm:$0xff]   ;;  %v4763_v39 = vmul.f32 %v10910_v37, %v11024_v19 }
 0x1bb   : > { %7765 = vmatpush3.bf16.msra.mxu0 %v8375_v20  ;;  %7788 = vmatprep.subr.bf16.mxu1 %v8380_v9  ;;  %v8383_v20 = vld [vmem:[%s9150_s28 + $0x750] sm:$0xff]   ;;  %v4736_v9 = vmul.f32 %v10879_v23, %v11005_v56  ;;  %v4158_v23 = vmax.f32 %v11105_v46, 0.0  ;;  %v4061_v47 = vadd.f32 %v4054_v18, %v4044_v27  ;;  %v8390_v37 = vld [vmem:[%s9150_s28 + $0x868] sm:$0xff]   ;;  %v11170_v27 = vld [vmem:[#allocation3 + $0x78] sm:$0xff] }
 0x1bc   : > { %7766 = vmatprep.subr.bf16.mxu0 %v8377_v44  ;;  %v4839_v36 = vadd.f32 %v4832_v55, %v4822_v41  ;;  %v3435_v44 = vmax.f32 %v11945_v63, 0.0  ;;  %v11134_v55 = vstv %s11096_s11  ;;  %v4071_v41 = vmul.f32 %v11062_v42, %v10760_v61  ;;  %v11149_v46 = vld [vmem:[#allocation3 + $0x8] sm:$0xff]  ;;  %v8391_v61 = vld [vmem:[%s9150_s28 + $0x828] sm:$0xff]   ;;  %s11371_s11 = sld [smem:[#allocation9 + %s11139_s26]] }
 0x1bd   : > { %v4734_v54 = vmul.f32 %v11149_v46, %v11005_v56  ;;  %v8396_v18 = vld [vmem:[%s9150_s28 + $0x8e8] sm:$0xff]  }
 0x1be   : > { %7789 = vmatpush3.bf16.msra.mxu1 %v8382_v0  ;;  %v4856_v32 = vadd.f32 %v4849_v15, %v4839_v36  ;;  %v4753_v0 = vadd.f32 %v4746_v7, %v4736_v9  ;;  %v3442_v42 = vpack.c.bf16 %v3435_v44, %v3435_v44  ;;  %v8393_v36 = vld [vmem:[%s9150_s28 + $0x7e0] sm:$0xff]   ;;  %v4078_v9 = vadd.f32 %v4071_v41, %v4061_v47  ;;  %v8399_v47 = vld [vmem:[%s9150_s28 + $0x838] sm:$0xff]  }
 0x1bf   : > { %7767 = vmatpush3.bf16.msra.mxu0 %v8379_v24  ;;  %7790 = vmatprep.subr.bf16.mxu1 %v8384_v58  ;;  %v4161_v24 = vmax.f32 %v4154_v13, 0.0  ;;  %v4160_v58 = vmax.f32 %v11126_v43, 0.0  ;;  %v4088_v7 = vmul.f32 %v11075_v1, %v10798_v3  ;;  %v8398_v3 = vld [vmem:[%s9150_s28 + $0x8a8] sm:$0xff]  }
 0x1c0   : > { %7768 = vmatprep.subr.bf16.mxu0 %v8381_v2  ;;  %v4873_v62 = vadd.f32 %v4866_v25, %v4856_v32  ;;  %v4163_v2 = vmax.f32 %v4156_v38, 0.0  ;;  %v4770_v25 = vadd.f32 %v4763_v39, %v4753_v0  ;;  %v8395_v32 = vld [vmem:[%s9150_s28 + $0x830] sm:$0xff]   ;;  %v11189_v39 = vld [vmem:[#allocation3 + $0xb0] sm:$0xff] }
 0x1c1   : > { %v4168_v63 = vpack.c.bf16 %v4161_v24, %v4161_v24  ;;  %v8400_v24 = vld [vmem:[%s9150_s28 + $0x8f0] sm:$0xff]  }
 0x1c2   : > { %7791 = vmatpush3.bf16.msra.mxu1 %v8386_v34  ;;  %v11146_v15 = vadd.f32 %v11134_v55, %v4873_v62  ;;  %v4780_v34 = vmul.f32 %v10932_v14, %v11040_v40  ;;  %v4761_v14 = vmul.f32 %v11170_v27, %v11024_v19  ;;  %v4170_v1 = vpack.c.bf16 %v4163_v2, %v4163_v2 }
 0x1c3   : > { %7769 = vmatpush3.bf16.msra.mxu0 %v8383_v20  ;;  %7792 = vmatprep.subr.bf16.mxu1 %v8388_v30  ;;  %v11153_v20 = vld [vmem:[#allocation3 + $0x40] sm:$0xff]  ;;  %v8394_v30 = vld [vmem:[%s9150_s28 + $0x870] sm:$0xff]   ;;  %v4105_v62 = vmul.f32 %v11086_v17, %v10822_v16 }
 0x1c4   : > { %11946 = vst [vmem:[#allocation26_spill] sm:$0xff] %v11146_v15  ;;  %7770 = vmatprep.subr.bf16.mxu0 %v8385_v11  ;;  %v4744_v13 = vmul.f32 %v11153_v20, %v11015_v51  ;;  %v4165_v11 = vpack.c.bf16 %v4158_v23, %v4158_v23  ;;  %v4787_v38 = vadd.f32 %v4780_v34, %v4770_v25  ;;  %v8402_v16 = vld [vmem:[%s9150_s28 + $0x8b0] sm:$0xff]   ;;  %v8401_v34 = vld [vmem:[%s9150_s28 + $0x880] sm:$0xff]  }
 0x1c5   : > { %v4095_v23 = vadd.f32 %v4088_v7, %v4078_v9  ;;  %v11202_v9 = vld [vmem:[#allocation3 + $0xe8] sm:$0xff] }
 0x1c6   : > { %7793 = vmatpush3.bf16.msra.mxu1 %v8389_v53  ;;  %v4751_v44 = vadd.f32 %v4744_v13, %v4734_v54  ;;  %v8397_v53 = vld [vmem:[%s9150_s28 + $0x878] sm:$0xff]  }
 0x1c7   : > { %7771 = vmatpush3.bf16.msra.mxu0 %v8387_v8  ;;  %7794 = vmatprep.subr.bf16.mxu1 %v8392_v59  ;;  %v4797_v8 = vmul.f32 %v10948_v4, %v11051_v29  ;;  %v4778_v4 = vmul.f32 %v11189_v39, %v11040_v40  ;;  %v8404_v13 = vld [vmem:[%s9150_s28 + $0x8f8] sm:$0xff]  }
 0x1c8   : > { %7802 = vmatprep.subr.bf16.mxu0 %v8390_v37  ;;  %v4768_v0 = vadd.f32 %v4761_v14, %v4751_v44  ;;  %v4814_v37 = vmul.f32 %v10972_v49, %v11072_v26  ;;  %v4795_v49 = vmul.f32 %v11202_v9, %v11051_v29 }
 0x1c9   : > { %v4804_v17 = vadd.f32 %v4797_v8, %v4787_v38  ;;  %v4139_v38 = vmul.f32 %v11112_v35, %v10855_v21  ;;  %v8405_v8 = vld [vmem:[%s9150_s28 + $0x888] sm:$0xff]   ;;  %v4848_v35 = vmul.f32 %v11028_v33, %v11093_v48 }
 0x1ca   : > { %3954 = vmatmul.mubr.bf16.vlgmr.msra.gmra.mrb[36].mxu0 %v3442_v42  ;;  %7795 = vmatpush3.bf16.msra.mxu1 %v8393_v36  ;;  %v4122_v42 = vmul.f32 %v11099_v10, %v10838_v22  ;;  %v8406_v10 = vld [vmem:[%s9150_s28 + $0x8b8] sm:$0xff]  }
 0x1cb   : > { %7803 = vmatpush3.bf16.msra.mxu0 %v8391_v61  ;;  %7824 = vmatprep.subr.bf16.mxu1 %v8396_v18  ;;  %v4112_v61 = vadd.f32 %v4105_v62, %v4095_v23  ;;  %v4785_v18 = vadd.f32 %v4778_v4, %v4768_v0  ;;  %v4821_v14 = vadd.f32 %v4814_v37, %v4804_v17  ;;  %v8407_v23 = vld [vmem:[%s9150_s28 + $0x848] sm:$0xff]   ;;  %v8410_v62 = vld [vmem:[%s9150_s28 + $0x8c0] sm:$0xff]   ;;  %v11252_v17 = vstv %s11181_s18  ;;  %v8411_v37 = vld [vmem:[%s9150_s28 + $0x850] sm:$0xff]  }
 0x1cc   : > { %7804 = vmatprep.subr.bf16.mxu0 %v8394_v30  ;;  %4640 = vmatprep.mubr.bf16.mxu0 %v4168_v63  ;;  %v7500_v59 = vpop.f32.mrb[4].mxu0  ;;  %v8403_v63 = vld [vmem:[%s9150_s28 + $0x840] sm:$0xff]   ;;  %v8412_v0 = vld [vmem:[%s9150_s28 + $0x908] sm:$0xff]  }
 0x1cd   : > { %4601 = vmatmul.mubr.bf16.vlgmr.msra.gmra.mrb[40].mxu1 %v4165_v11  ;;  %v7501_v41 = vpop.f32.mrb[5].mxu0 }
 0x1ce   : > { %7825 = vmatpush3.bf16.msra.mxu1 %v8398_v3  ;;  %4680 = vmatprep.mubr.bf16.mxu1 %v4170_v1  ;;  %v7502_v2 = vadd.f32 %v7501_v41, %v7500_v59  ;;  %v7503_v54 = vpop.f32.mrb[6].mxu0  ;;  %v8408_v3 = vld [vmem:[%s9150_s28 + $0x900] sm:$0xff]   ;;  %v4129_v1 = vadd.f32 %v4122_v42, %v4112_v61  ;;  %v11243_v59 = vstv %s11176_s17  ;;  %v11266_v42 = vld [vmem:[#allocation3 + $0xa0] sm:$0xff] }
 0x1cf   : > { %7805 = vmatpush3.bf16.msra.mxu0 %v8395_v32  ;;  %7826 = vmatprep.subr.bf16.mxu1 %v8400_v24  ;;  %v7504_v36 = vpop.f32.mrb[7].mxu0  ;;  %v4831_v32 = vmul.f32 %v10995_v45, %v11083_v50  ;;  %v4802_v24 = vadd.f32 %v4795_v49, %v4785_v18  ;;  %v11221_v45 = vld [vmem:[#allocation3 + $0x120] sm:$0xff] }
 0x1d0   : > { %7806 = vmatprep.subr.bf16.mxu0 %v8397_v53  ;;  %v7524_v25 = vpop.f32.mrb[8].mxu1  ;;  %v1048_v7 = vadd.f32 %v7502_v2, %v10976_v5  ;;  %v11235_v53 = vstv %s11163_s13  ;;  %v4146_v4 = vadd.f32 %v4139_v38, %v4129_v1  ;;  %v11258_v2 = vld [vmem:[#allocation3 + $0x30] sm:$0xff]  ;;  %v5493_v36 = vmul.f32 %v11266_v42, %v11252_v17  ;;  %v11295_v38 = vld [vmem:[#allocation3 + $0x48] sm:$0xff] }
 0x1d1   : > { %v7525_v30 = vpop.f32.mrb[9].mxu1  ;;  %v4838_v21 = vadd.f32 %v4831_v32, %v4821_v14  ;;  %v5466_v54 = vmul.f32 %v11258_v2, %v11235_v53  ;;  %v11286_v14 = vld [vmem:[#allocation3 + $0xd8] sm:$0xff]  ;;  %11950 = vst [vmem:[#allocation37_spill] sm:$0xff] %v11295_v38 }
 0x1d2   : > { %7827 = vmatpush3.bf16.msra.mxu1 %v8402_v16  ;;  %v11209_v44 = vadd.f32 %v7525_v30, %v7524_v25  ;;  %v7527_v22 = vpop.f32.mrb[10].mxu1  ;;  %v11215_v11 = vadd.f32 %v11019_v60, %v1048_v7  ;;  %v4812_v60 = vmul.f32 %v11221_v45, %v11072_v26  ;;  %v11247_v16 = vld [vmem:[#allocation3 + $0x158] sm:$0xff]  ;;  %v8414_v25 = vld [vmem:[%s9150_s28 + $0x8c8] sm:$0xff]   ;;  %v4865_v7 = vmul.f32 %v11058_v28, %v11108_v52  ;;  %v8413_v28 = vld [vmem:[%s9150_s28 + $0x898] sm:$0xff]  }
 0x1d3   : > { %7807 = vmatpush3.bf16.msra.mxu0 %v8399_v47  ;;  %v7528_v5 = vpop.f32.mrb[11].mxu1  ;;  %7828 = vmatprep.subr.bf16.mxu1 %v8404_v13  ;;  %v8409_v47 = vld [vmem:[%s9150_s28 + $0x890] sm:$0xff]   ;;  %11947 = vst [vmem:[#allocation29_spill] sm:$0xff] %v11247_v16  ;;  %v4829_v33 = vmul.f32 %v11247_v16, %v11083_v50  ;;  %v4855_v49 = vadd.f32 %v4848_v35, %v4838_v21  ;;  %v11278_v30 = vstv %s11186_s25  ;;  %v11382_v16 = vld [vmem:[#allocation3 + $0xb8] sm:$0xff] }
 0x1d4   : > { %7808 = vmatprep.subr.bf16.mxu0 %v8401_v34  ;;  %v4819_v41 = vadd.f32 %v4812_v60, %v4802_v24  ;;  %v11262_v13 = vld [vmem:[#allocation3 + $0x68] sm:$0xff]  ;;  %v11271_v34 = vld [vmem:[#allocation3 + $0x190] sm:$0xff]  ;;  %v11284_v22 = vadd.f32 %v10891_v57, %v4146_v4  ;;  %v5510_v32 = vmul.f32 %v11286_v14, %v11278_v30  ;;  %v4745_v57 = vmul.f32 %v11295_v38, %v11015_v51  ;;  %v11317_v4 = vld [vmem:[#allocation3] sm:$0xff] }
 0x1d5   : > { %v5476_v61 = vmul.f32 %v11262_v13, %v11243_v59  ;;  %11948 = vst [vmem:[#allocation36_spill] sm:$0xff] %v11271_v34  ;;  %v4846_v18 = vmul.f32 %v11271_v34, %v11093_v48  ;;  %v8415_v24 = vld [vmem:[%s9150_s28 + $0x858] sm:$0xff]   ;;  %v11310_v60 = vpack.c.bf16 %v4160_v58, %v4160_v58  ;;  %v8418_v35 = vld [vmem:[%s9150_s28 + $0x8d0] sm:$0xff]   ;;  %11951 = vst [vmem:[#allocation32_spill] sm:$0xff] %v11317_v4  ;;  %v11326_v58 = vstv %s11239_s7 }
 0x1d6   : > { %7829 = vmatpush3.bf16.msra.mxu1 %v8406_v10  ;;  %v4836_v5 = vadd.f32 %v4829_v33, %v4819_v41  ;;  %v11321_v41 = vld [vmem:[#allocation3 + $0x38] sm:$0xff]  ;;  %v8420_v33 = vld [vmem:[%s9150_s28 + $0x918] sm:$0xff]   ;;  %v11344_v38 = vstv %s11254_s12  ;;  %v11368_v34 = vstv %s11280_s8  ;;  %11961 = vst [vmem:[#allocation28_spill] sm:$0xff] %v11382_v16 }
 0x1d7   : > { %7809 = vmatpush3.bf16.msra.mxu0 %v8403_v63  ;;  %7830 = vmatprep.subr.bf16.mxu1 %v8408_v3  ;;  %v8416_v63 = vld [vmem:[%s9150_s28 + $0x910] sm:$0xff]   ;;  %v5483_v10 = vadd.f32 %v5476_v61, %v5466_v54  ;;  %v11291_v3 = vld [vmem:[#allocation3 + $0x10] sm:$0xff]  ;;  %11952 = vst [vmem:[#allocation22_spill] sm:$0xff] %v11321_v41  ;;  %v4743_v43 = vmul.f32 %v11321_v41, %v11015_v51  ;;  %v4162_v54 = vmax.f32 %v11284_v22, 0.0  ;;  %11955 = vst [vmem:[#allocation33_spill] sm:$0xff] %v11344_v38 }
 0x1d8   : > { %7810 = vmatprep.subr.bf16.mxu0 %v8405_v8  ;;  %11949 = vst [vmem:[#allocation30_spill] sm:$0xff] %v11291_v3  ;;  %v4735_v1 = vmul.f32 %v11291_v3, %v11005_v56  ;;  %v11300_v8 = vstv %s11227_s27  ;;  %v11330_v61 = vld [vmem:[#allocation3 + $0x1c8] sm:$0xff]  ;;  %11959 = vst [vmem:[#allocation20_spill] sm:$0xff] %v11368_v34 }
 0x1d9   : > { %11953 = vst [vmem:[#allocation34_spill] sm:$0xff] %v11330_v61 }
 0x1da   : > { %7831 = vmatpush3.bf16.msra.mxu1 %v8410_v62  ;;  %v11312_v62 = vld [vmem:[#allocation3 + $0x110] sm:$0xff]  ;;  %v4752_v15 = vadd.f32 %v4745_v57, %v4735_v1  ;;  %v11357_v1 = vld [vmem:[#allocation3 + $0x180] sm:$0xff] }
 0x1db   : > { %7811 = vmatpush3.bf16.msra.mxu0 %v8407_v23  ;;  %7832 = vmatprep.subr.bf16.mxu1 %v8412_v0  ;;  %v5500_v23 = vadd.f32 %v5493_v36, %v5483_v10  ;;  %v5527_v21 = vmul.f32 %v11312_v62, %v11300_v8  ;;  %v4872_v0 = vadd.f32 %v4865_v7, %v4855_v49  ;;  %v11334_v49 = vld [vmem:[#allocation3 + $0x148] sm:$0xff]  ;;  %v8417_v10 = vld [vmem:[%s9150_s28 + $0x8a0] sm:$0xff]  }
 0x1dc   : > { %7812 = vmatprep.subr.bf16.mxu0 %v8409_v47  ;;  %v4733_v47 = vmul.f32 %v11317_v4, %v11005_v56  ;;  %v4863_v36 = vmul.f32 %v11330_v61, %v11108_v52  ;;  %v5544_v7 = vmul.f32 %v11334_v49, %v11326_v58  ;;  %v5561_v57 = vmul.f32 %v11357_v1, %v11344_v38  ;;  %v11363_v61 = vld [vmem:[#allocation3 + $0x28] sm:$0xff]  ;;  %v8423_v38 = vld [vmem:[%s9150_s28 + $0x8e0] sm:$0xff]  }
 0x1dd   : > { %v4881_v41 = vadd.f32 %v11134_v55, %v4872_v0  ;;  %11958 = vst [vmem:[#allocation24_spill] sm:$0xff] %v11363_v61 }
 0x1de   : > { %7833 = vmatpush3.bf16.msra.mxu1 %v8414_v25  ;;  %v5517_v25 = vadd.f32 %v5510_v32, %v5500_v23  ;;  %v8419_v32 = vld [vmem:[%s9150_s28 + $0x860] sm:$0xff]   ;;  %v11347_v23 = vld [vmem:[#allocation3 + $0x70] sm:$0xff]  ;;  %v4750_v4 = vadd.f32 %v4743_v43, %v4733_v47 }
 0x1df   : > { %7813 = vmatpush3.bf16.msra.mxu0 %v8411_v37  ;;  %7834 = vmatprep.subr.bf16.mxu1 %v8416_v63  ;;  %v4853_v37 = vadd.f32 %v4846_v18, %v4836_v5  ;;  %v11339_v63 = vld [vmem:[#allocation3 + $0x80] sm:$0xff]  ;;  %11956 = vst [vmem:[#allocation25_spill] sm:$0xff] %v11347_v23  ;;  %v4760_v3 = vmul.f32 %v11347_v23, %v11024_v19  ;;  %v11378_v47 = vld [vmem:[#allocation3 + $0x1b8] sm:$0xff] }
 0x1e0   : > { %7814 = vmatprep.subr.bf16.mxu0 %v8413_v28  ;;  %11954 = vst [vmem:[#allocation35_spill] sm:$0xff] %v11339_v63  ;;  %v4762_v22 = vmul.f32 %v11339_v63, %v11024_v19  ;;  %v11351_v28 = vld [vmem:[#allocation3 + $0xa8] sm:$0xff]  ;;  %v5534_v5 = vadd.f32 %v5527_v21, %v5517_v25  ;;  %v8421_v63 = vld [vmem:[%s9150_s28 + $0x8d8] sm:$0xff]   ;;  %v4738_v23 = vmul.f32 %v11363_v61, %v11005_v56  ;;  %v8422_v21 = vld [vmem:[%s9150_s28 + $0x920] sm:$0xff]  }
 0x1e1   : > { %11957 = vst [vmem:[#allocation31_spill] sm:$0xff] %v11351_v28  ;;  %v11355_v18 = vmul.f32 %v11351_v28, %v11040_v40  ;;  %v11374_v25 = vld [vmem:[#allocation3 + $0x60] sm:$0xff]  ;;  %v5578_v43 = vmul.f32 %v11378_v47, %v11368_v34  ;;  %v4870_v28 = vadd.f32 %v4863_v36, %v4853_v37  ;;  %v11394_v34 = vld [vmem:[#allocation3 + $0x1f0] sm:$0xff]  ;;  %v4888_v37 = vmax.f32 %v4881_v41, 0.0  ;;  %v8426_v41 = vld [vmem:[%s9150_s28 + $0x9f0] sm:$0xff]  }
 0x1e2   : > { %7835 = vmatpush3.bf16.msra.mxu1 %v8418_v35  ;;  %11960 = vst [vmem:[#allocation27_spill] sm:$0xff] %v11374_v25  ;;  %v4748_v35 = vmul.f32 %v11374_v25, %v11015_v51  ;;  %v5551_v0 = vadd.f32 %v5544_v7, %v5534_v5  ;;  %v4769_v61 = vadd.f32 %v4762_v22, %v4752_v15  ;;  %v8424_v36 = vld [vmem:[%s9150_s28 + $0x928] sm:$0xff]  }
 0x1e3   : > { %7815 = vmatpush3.bf16.msra.mxu0 %v8415_v24  ;;  %7836 = vmatprep.subr.bf16.mxu1 %v8420_v33  ;;  %v4779_v24 = vmul.f32 %v11382_v16, %v11040_v40  ;;  %v11387_v33 = vstv %s11304_s9  ;;  %v4739_v7 = vmul.f32 %v11258_v2, %v11005_v56  ;;  %v4749_v5 = vmul.f32 %v11262_v13, %v11015_v51  ;;  %v8425_v51 = vld [vmem:[%s9150_s28 + $0x970] sm:$0xff]   ;;  %v11404_v13 = vld [vmem:[#allocation3 + $0x98] sm:$0xff] }
 0x1e4   : > { %7816 = vmatprep.subr.bf16.mxu0 %v8417_v10  ;;  %v5568_v25 = vadd.f32 %v5561_v57, %v5551_v0  ;;  %v5595_v15 = vmul.f32 %v11394_v34, %v11387_v33  ;;  %v4169_v10 = vpack.c.bf16 %v4162_v54, %v4162_v54  ;;  %v5461_v22 = vmul.f32 %v11149_v46, %v11235_v53 }
 0x1e5   : > { %v5471_v56 = vmul.f32 %v11153_v20, %v11243_v59  ;;  %v4755_v2 = vadd.f32 %v4748_v35, %v4738_v23  ;;  %v4765_v57 = vmul.f32 %v11404_v13, %v11024_v19  ;;  %v4164_v46 = vmax.f32 %v10901_v31, 0.0 }
 0x1e6   : > { %7837 = vmatpush3.bf16.msra.mxu1 %v8421_v63  ;;  %v5585_v63 = vadd.f32 %v5578_v43, %v5568_v25  ;;  %v4879_v54 = vadd.f32 %v11134_v55, %v4870_v28  ;;  %v4767_v20 = vadd.f32 %v4760_v3, %v4750_v4  ;;  %v4756_v35 = vadd.f32 %v4749_v5, %v4739_v7  ;;  %v8428_v43 = vld [vmem:[%s9150_s28 + $0x9b0] sm:$0xff]  }
 0x1e7   : > { %7817 = vmatpush3.bf16.msra.mxu0 %v8419_v32  ;;  %7838 = vmatprep.subr.bf16.mxu1 %v8422_v21  ;;  %v11412_v32 = vld [vmem:[#allocation3 + $0xf0] sm:$0xff]  ;;  %v4786_v21 = vadd.f32 %v4779_v24, %v4769_v61  ;;  %v4766_v25 = vmul.f32 %v11266_v42, %v11024_v19  ;;  %v4895_v31 = vpack.c.bf16 %v4888_v37, %v4888_v37  ;;  %v11423_v4 = vstv %s11371_s11  ;;  %v11436_v24 = vld [vmem:[#allocation3 + $0xe0] sm:$0xff]  ;;  %v11441_v37 = vld [vmem:[#allocation3 + $0x128] sm:$0xff] }
 0x1e8   : > { %8014 = vmatprep.subr.bf16.mxu0 %v11914_v12  ;;  %v4796_v23 = vmul.f32 %v11412_v32, %v11051_v29  ;;  %v5602_v0 = vadd.f32 %v5595_v15, %v5585_v63  ;;  %v5478_v16 = vadd.f32 %v5471_v56, %v5461_v22  ;;  %v5488_v3 = vmul.f32 %v11170_v27, %v11252_v17  ;;  %v8430_v61 = vld [vmem:[%s9150_s28 + $0x9f8] sm:$0xff]   ;;  %v8427_v15 = vld [vmem:[%s9150_s28 + $0x930] sm:$0xff]  }
 0x1e9   : > { %v4772_v28 = vadd.f32 %v4765_v57, %v4755_v2  ;;  %v11428_v19 = vld [vmem:[#allocation3 + $0xd0] sm:$0xff]  ;;  %v4886_v27 = vmax.f32 %v4879_v54, 0.0  ;;  %v4794_v7 = vmul.f32 %v11436_v24, %v11051_v29  ;;  %v4813_v22 = vmul.f32 %v11441_v37, %v11072_v26 }
 0x1ea   : > { %4641 = vmatmul.mubr.bf16.vlgmr.msra.gmra.mrb[40].mxu0 %v11310_v60  ;;  %7839 = vmatpush3.bf16.msra.mxu1 %v8423_v38  ;;  %v4782_v42 = vmul.f32 %v11428_v19, %v11040_v40  ;;  %v11433_v38 = vadd.f32 %v11423_v4, %v5602_v0  ;;  %v4784_v60 = vadd.f32 %v11355_v18, %v4767_v20  ;;  %v8432_v57 = vld [vmem:[%s9150_s28 + $0x9b8] sm:$0xff]   ;;  %v8434_v20 = vld [vmem:[%s9150_s28 + $0xa00] sm:$0xff]  }
 0x1eb   : > { %8015 = vmatpush3.bf16.msra.mxu0 %v8424_v36  ;;  %8016 = vmatprep.mubr.msk.bf16.mxu0 %vm8931_vm0, %v11914_v12  ;;  %v4803_v36 = vadd.f32 %v4796_v23, %v4786_v21  ;;  %v4773_v56 = vadd.f32 %v4766_v25, %v4756_v35  ;;  %v4171_v2 = vpack.c.bf16 %v4164_v46, %v4164_v46  ;;  %v11451_v21 = vld [vmem:[#allocation3 + $0x108] sm:$0xff]  ;;  %v8429_v46 = vld [vmem:[%s9150_s28 + $0x978] sm:$0xff]   ;;  %v11456_v0 = vld [vmem:[#allocation3 + $0x118] sm:$0xff] }
 0x1ec   : > { %7848 = vmatprep.subr.bf16.mxu0 %v8425_v51  ;;  %7870 = vmatprep.subr.bf16.mxu1 %v8426_v41  ;;  %v4783_v51 = vmul.f32 %v11286_v14, %v11040_v40  ;;  %v5495_v63 = vadd.f32 %v5488_v3, %v5478_v16  ;;  %v4789_v23 = vadd.f32 %v4782_v42, %v4772_v28  ;;  %v8431_v3 = vld [vmem:[%s9150_s28 + $0x938] sm:$0xff]   ;;  %v295_v28 = vld [vmem:[#allocation2] sm:$0xff] }
 0x1ed   : > { %v7546_v5 = vpop.f32.mrb[8].mxu0  ;;  %4681 = vmatmul.mubr.bf16.vlgmr.msra.gmra.mrb[44].mxu1 %v4169_v10  ;;  %v5505_v10 = vmul.f32 %v11189_v39, %v11278_v30  ;;  %v4799_v40 = vmul.f32 %v11451_v21, %v11051_v29  ;;  %v4893_v25 = vpack.c.bf16 %v4886_v27, %v4886_v27  ;;  %v4801_v16 = vadd.f32 %v4794_v7, %v4784_v60 }
 0x1ee   : > { %v7547_v18 = vpop.f32.mrb[9].mxu0  ;;  %7871 = vmatpush3.bf16.msra.mxu1 %v8428_v43  ;;  %5367 = vmatprep.mubr.bf16.mxu1 %v4895_v31  ;;  %v4811_v39 = vmul.f32 %v11456_v0, %v11072_v26  ;;  %v4830_v43 = vmul.f32 %v11010_v6, %v11083_v50  ;;  %v4820_v42 = vadd.f32 %v4813_v22, %v4803_v36  ;;  %v8438_v36 = vld [vmem:[%s9150_s28 + $0xa08] sm:$0xff]  }
 0x1ef   : > { %v7548_v41 = vadd.f32 %v7547_v18, %v7546_v5  ;;  %v7549_v54 = vpop.f32.mrb[10].mxu0  ;;  %7872 = vmatprep.subr.bf16.mxu1 %v8430_v61  ;;  %v4790_v5 = vadd.f32 %v4783_v51, %v4773_v56  ;;  %v4800_v27 = vmul.f32 %v11312_v62, %v11051_v29  ;;  %v8433_v18 = vld [vmem:[%s9150_s28 + $0x980] sm:$0xff]   ;;  %v5522_v6 = vmul.f32 %v11202_v9, %v11300_v8  ;;  %v11472_v56 = vld [vmem:[#allocation3 + $0x140] sm:$0xff]  ;;  %v11476_v51 = vld [vmem:[#allocation3 + $0x150] sm:$0xff] }
 0x1f0   : > { %v7550_v14 = vpop.f32.mrb[11].mxu0  ;;  %v7568_v35 = vpop.f32.mrb[12].mxu1  ;;  %v8436_v54 = vld [vmem:[%s9150_s28 + $0x9c0] sm:$0xff]   ;;  %v4806_v22 = vadd.f32 %v4799_v40, %v4789_v23  ;;  %v4816_v29 = vmul.f32 %v11472_v56, %v11072_v26  ;;  %v4828_v9 = vmul.f32 %v11476_v51, %v11083_v50  ;;  %v4817_v23 = vmul.f32 %v11334_v49, %v11072_v26 }
 0x1f1   : > { %v1735_v31 = vadd.f32 %v7548_v41, %v11209_v44  ;;  %v7569_v61 = vpop.f32.mrb[13].mxu1  ;;  %v5512_v14 = vadd.f32 %v5505_v10, %v5495_v63  ;;  %v8435_v63 = vld [vmem:[%s9150_s28 + $0x940] sm:$0xff]   ;;  %v4818_v10 = vadd.f32 %v4811_v39, %v4801_v16  ;;  %v4837_v41 = vadd.f32 %v4830_v43, %v4820_v42  ;;  %v8442_v16 = vld [vmem:[%s9150_s28 + $0xa10] sm:$0xff]   ;;  %v8439_v42 = vld [vmem:[%s9150_s28 + $0x948] sm:$0xff]  }
 0x1f2   : > { %8017 = vmatmul.mubr.msk.bf16.vlgmr.msra.gmra.mrb[44].mxu0 %vm929_vm1, %v4171_v2  ;;  %7873 = vmatpush3.bf16.msra.mxu1 %v8432_v57  ;;  %v7570_v60 = vadd.f32 %v7569_v61, %v7568_v35  ;;  %v7571_v7 = vpop.f32.mrb[14].mxu1  ;;  %v11480_v2 = vld [vmem:[#allocation3 + $0x198] sm:$0xff]  ;;  %v1093_v40 = vadd.f32 %v11215_v11, %v295_v28  ;;  %v5539_v61 = vmul.f32 %v11221_v45, %v11326_v58  ;;  %v8437_v28 = vld [vmem:[%s9150_s28 + $0x988] sm:$0xff]   ;;  %v11500_v45 = vld [vmem:[#allocation3 + $0x1d0] sm:$0xff] }
 0x1f3   : > { %7849 = vmatpush3.bf16.msra.mxu0 %v8427_v15  ;;  %v7572_v44 = vpop.f32.mrb[15].mxu1  ;;  %7874 = vmatprep.subr.bf16.mxu1 %v8434_v20  ;;  %v4847_v15 = vmul.f32 %v11480_v2, %v11093_v48  ;;  %v4807_v20 = vadd.f32 %v4800_v27, %v4790_v5  ;;  %v4823_v39 = vadd.f32 %v4816_v29, %v4806_v22  ;;  %v11492_v43 = vld [vmem:[#allocation3 + $0x178] sm:$0xff]  ;;  %v11963_v22 = vld [vmem:[#allocation29_spill] sm:$0xff] }
 0x1f4   : > { %7850 = vmatprep.subr.bf16.mxu0 %v8429_v46  ;;  %v1775_v62 = vadd.f32 %v7570_v60, %v1735_v31  ;;  %5327 = vmatprep.mubr.bf16.mxu0 %v4893_v25  ;;  %v8440_v25 = vld [vmem:[%s9150_s28 + $0x9c8] sm:$0xff]   ;;  %v5529_v31 = vadd.f32 %v5522_v6, %v5512_v14  ;;  %v4833_v26 = vmul.f32 %v11492_v43, %v11083_v50 }
 0x1f5   : > { %v1814_v57 = vpop.f32.mrb[12].mxu0  ;;  %v4854_v5 = vadd.f32 %v4847_v15, %v4837_v41  ;;  %v4824_v27 = vadd.f32 %v4817_v23, %v4807_v20  ;;  %v4834_v7 = vmul.f32 %v11357_v1, %v11083_v50  ;;  %v4835_v14 = vadd.f32 %v4828_v9, %v4818_v10  ;;  %v8441_v1 = vld [vmem:[%s9150_s28 + $0x990] sm:$0xff]  }
 0x1f6   : > { %v1815_v46 = vadd.f32 %v1814_v57, %v1775_v62  ;;  %v7994_v35 = vpop.f32.mrb[13].mxu0  ;;  %7875 = vmatpush3.bf16.msra.mxu1 %v8436_v54  ;;  %v8444_v54 = vld [vmem:[%s9150_s28 + $0x9d0] sm:$0xff]   ;;  %v5546_v44 = vadd.f32 %v5539_v61, %v5529_v31  ;;  %v8446_v62 = vld [vmem:[%s9150_s28 + $0xa18] sm:$0xff]   ;;  %v4840_v15 = vadd.f32 %v4833_v26, %v4823_v39  ;;  %v4851_v20 = vmul.f32 %v11378_v47, %v11093_v48 }
 0x1f7   : > { %7851 = vmatpush3.bf16.msra.mxu0 %v8431_v3  ;;  %v1817_v60 = vpop.f32.mrb[14].mxu0  ;;  %7876 = vmatprep.subr.bf16.mxu1 %v8438_v36  ;;  %v4864_v3 = vmul.f32 %v11500_v45, %v11108_v52  ;;  %v11962_v36 = vld [vmem:[#allocation33_spill] sm:$0xff]  ;;  %v4841_v41 = vadd.f32 %v4834_v7, %v4824_v27  ;;  %v11965_v31 = vld [vmem:[#allocation36_spill] sm:$0xff]  ;;  %v11966_v7 = vld [vmem:[#allocation34_spill] sm:$0xff] }
 0x1f8   : > { %v11496_v11 = vadd.f32 %v1815_v46, %v1093_v40  ;;  %7852 = vmatprep.subr.bf16.mxu0 %v8433_v18  ;;  %v7995_v49 = vpop.f32.mrb[15].mxu0  ;;  %v11507_v18 = vld [vmem:[#allocation3 + $0x188] sm:$0xff]  ;;  %v5556_v29 = vmul.f32 %v11963_v22, %v11962_v36  ;;  %v11514_v57 = vld [vmem:[#allocation3 + $0x1b0] sm:$0xff]  ;;  %v11523_v40 = vld [vmem:[#allocation3 + $0x1c0] sm:$0xff] }
 0x1f9   : > { %v4845_v6 = vmul.f32 %v11507_v18, %v11093_v48  ;;  %v4850_v50 = vmul.f32 %v11514_v57, %v11093_v48  ;;  %v8443_v9 = vld [vmem:[%s9150_s28 + $0x950] sm:$0xff]   ;;  %v4871_v10 = vadd.f32 %v4864_v3, %v4854_v5  ;;  %v4862_v46 = vmul.f32 %v11523_v40, %v11108_v52  ;;  %v8450_v60 = vld [vmem:[%s9150_s28 + $0xa20] sm:$0xff]   ;;  %v8445_v39 = vld [vmem:[%s9150_s28 + $0x998] sm:$0xff]  }
 0x1fa   : > { %7877 = vmatpush3.bf16.msra.mxu1 %v8440_v25  ;;  %v5563_v35 = vadd.f32 %v5556_v29, %v5546_v44  ;;  %v11964_v25 = vld [vmem:[#allocation20_spill] sm:$0xff]  ;;  %v8447_v26 = vld [vmem:[%s9150_s28 + $0x958] sm:$0xff]   ;;  %v4868_v5 = vmul.f32 %v11394_v34, %v11108_v52  ;;  %v8449_v44 = vld [vmem:[%s9150_s28 + $0x9a0] sm:$0xff]  }
 0x1fb   : > { %7853 = vmatpush3.bf16.msra.mxu0 %v8435_v63  ;;  %7878 = vmatprep.subr.bf16.mxu1 %v8442_v16  ;;  %v8448_v63 = vld [vmem:[%s9150_s28 + $0x9d8] sm:$0xff]   ;;  %v4852_v23 = vadd.f32 %v4845_v6, %v4835_v14  ;;  %v5573_v61 = vmul.f32 %v11965_v31, %v11964_v25  ;;  %v4857_v16 = vadd.f32 %v4850_v50, %v4840_v15  ;;  %v11530_v48 = vld [vmem:[#allocation3 + $0x1e8] sm:$0xff]  ;;  %v8454_v14 = vld [vmem:[%s9150_s28 + $0xa28] sm:$0xff]  }
 0x1fc   : > { %7854 = vmatprep.subr.bf16.mxu0 %v8437_v28  ;;  %v4867_v47 = vmul.f32 %v11530_v48, %v11108_v52  ;;  %v4880_v49 = vadd.f32 %v11134_v55, %v4871_v10  ;;  %v4858_v28 = vadd.f32 %v4851_v20, %v4841_v41  ;;  %v8703_v22 = vld [vmem:[#allocation3 + $0x18] sm:$0xff]  ;;  %v11967_v50 = vld [vmem:[#allocation32_spill] sm:$0xff] }
 0x1fd   : > { %v4869_v3 = vadd.f32 %v4862_v46, %v4852_v23  ;;  %v5580_v27 = vadd.f32 %v5573_v61, %v5563_v35  ;;  %v5463_v29 = vmul.f32 %v8703_v22, %v11235_v53  ;;  %v8456_v41 = vld [vmem:[%s9150_s28 + $0x9e8] sm:$0xff]   ;;  %v8451_v61 = vld [vmem:[%s9150_s28 + $0x960] sm:$0xff]   ;;  %v8462_v22 = vld [vmem:[%s9150_s28 + $0xaf8] sm:$0xff]  }
 0x1fe   : > { %7879 = vmatpush3.bf16.msra.mxu1 %v8444_v54  ;;  %v5590_v54 = vmul.f32 %v11966_v7, %v11387_v33  ;;  %v4874_v6 = vadd.f32 %v4867_v47, %v4857_v16  ;;  %v4887_v34 = vmax.f32 %v4880_v49, 0.0  ;;  %v4875_v15 = vadd.f32 %v4868_v5, %v4858_v28  ;;  %v11969_v23 = vld [vmem:[#allocation24_spill] sm:$0xff]  ;;  %v11970_v35 = vld [vmem:[#allocation27_spill] sm:$0xff] }
 0x1ff   : > { %7855 = vmatpush3.bf16.msra.mxu0 %v8439_v42  ;;  %7880 = vmatprep.subr.bf16.mxu1 %v8446_v62  ;;  %v8452_v42 = vld [vmem:[%s9150_s28 + $0x9e0] sm:$0xff]   ;;  %v8704_v62 = vld [vmem:[#allocation3 + $0x50] sm:$0xff]  ;;  %v4878_v20 = vadd.f32 %v11134_v55, %v4869_v3  ;;  %v5465_v46 = vmul.f32 %v11969_v23, %v11235_v53  ;;  %v5475_v31 = vmul.f32 %v11970_v35, %v11243_v59  ;;  %v8453_v16 = vld [vmem:[%s9150_s28 + $0x9a8] sm:$0xff]  }
 0x200   : > { %7856 = vmatprep.subr.bf16.mxu0 %v8441_v1  ;;  %v5473_v52 = vmul.f32 %v8704_v62, %v11243_v59  ;;  %v5460_v1 = vmul.f32 %v11967_v50, %v11235_v53  ;;  %v8455_v28 = vld [vmem:[%s9150_s28 + $0x968] sm:$0xff]   ;;  %v4894_v5 = vpack.c.bf16 %v4887_v34, %v4887_v34 }
 0x201   : > { %v4885_v7 = vmax.f32 %v4878_v20, 0.0  ;;  %v5509_v20 = vmul.f32 %v11428_v19, %v11278_v30  ;;  %v5521_v19 = vmul.f32 %v11436_v24, %v11300_v8 }
 0x202   : > { %7881 = vmatpush3.bf16.msra.mxu1 %v8448_v63  ;;  %v5597_v63 = vadd.f32 %v5590_v54, %v5580_v27  ;;  %v5480_v47 = vadd.f32 %v5473_v52, %v5463_v29  ;;  %v8459_v54 = vld [vmem:[%s9150_s28 + $0xab0] sm:$0xff]   ;;  %v8706_v52 = vld [vmem:[#allocation3 + $0xc0] sm:$0xff] }
 0x203   : > { %7857 = vmatpush3.bf16.msra.mxu0 %v8443_v9  ;;  %7882 = vmatprep.subr.bf16.mxu1 %v8450_v60  ;;  %v11968_v9 = vld [vmem:[#allocation22_spill] sm:$0xff]  ;;  %v4883_v60 = vadd.f32 %v11134_v55, %v4874_v6  ;;  %v5482_v6 = vadd.f32 %v5475_v31, %v5465_v46  ;;  %v5507_v34 = vmul.f32 %v8706_v52, %v11278_v30 }
 0x204   : > { %7858 = vmatprep.subr.bf16.mxu0 %v8445_v39  ;;  %v5470_v10 = vmul.f32 %v11968_v9, %v11243_v59  ;;  %v8705_v39 = vld [vmem:[#allocation3 + $0x88] sm:$0xff]  ;;  %v8460_v46 = vld [vmem:[%s9150_s28 + $0xa78] sm:$0xff]   ;;  %v8468_v52 = vld [vmem:[%s9150_s28 + $0xac0] sm:$0xff]  }
 0x205   : > { %v5490_v49 = vmul.f32 %v8705_v39, %v11252_v17  ;;  %v4890_v29 = vmax.f32 %v4883_v60, 0.0 }
 0x206   : > { %7883 = vmatpush3.bf16.msra.mxu1 %v8452_v42  ;;  %v4884_v42 = vadd.f32 %v11134_v55, %v4875_v15  ;;  %v5477_v3 = vadd.f32 %v5470_v10, %v5460_v1  ;;  %v8457_v55 = vld [vmem:[%s9150_s28 + $0xa70] sm:$0xff]   ;;  %v11972_v1 = vld [vmem:[#allocation31_spill] sm:$0xff] }
 0x207   : > { %7859 = vmatpush3.bf16.msra.mxu0 %v8447_v26  ;;  %7884 = vmatprep.subr.bf16.mxu1 %v8454_v14  ;;  %v11971_v26 = vld [vmem:[#allocation25_spill] sm:$0xff]  ;;  %v5606_v14 = vadd.f32 %v11423_v4, %v5597_v63  ;;  %v5497_v62 = vadd.f32 %v5490_v49, %v5480_v47  ;;  %v5504_v9 = vmul.f32 %v11972_v1, %v11278_v30 }
 0x208   : > { %7860 = vmatprep.subr.bf16.mxu0 %v8449_v44  ;;  %v5487_v27 = vmul.f32 %v11971_v26, %v11252_v17  ;;  %v5492_v44 = vmul.f32 %v11404_v13, %v11252_v17  ;;  %v4891_v15 = vmax.f32 %v4884_v42, 0.0  ;;  %v4892_v13 = vpack.c.bf16 %v4885_v7, %v4885_v7  ;;  %v8458_v63 = vld [vmem:[%s9150_s28 + $0xa30] sm:$0xff]   ;;  %v8464_v42 = vld [vmem:[%s9150_s28 + $0xab8] sm:$0xff]  }
 0x209   : > { %v5613_v10 = vmax.f32 %v5606_v14, 0.0  ;;  %v4897_v23 = vpack.c.bf16 %v4890_v29, %v4890_v29  ;;  %v5514_v31 = vadd.f32 %v5507_v34, %v5497_v62  ;;  %v8463_v14 = vld [vmem:[%s9150_s28 + $0xa80] sm:$0xff]  }
 0x20a   : > { %7885 = vmatpush3.bf16.msra.mxu1 %v8456_v41  ;;  %v5494_v50 = vadd.f32 %v5487_v27, %v5477_v3  ;;  %v5499_v41 = vadd.f32 %v5492_v44, %v5482_v6  ;;  %v4898_v39 = vpack.c.bf16 %v4891_v15, %v4891_v15  ;;  %v5526_v27 = vmul.f32 %v11451_v21, %v11300_v8  ;;  %v8708_v44 = vld [vmem:[#allocation3 + $0x130] sm:$0xff]  ;;  %v8465_v29 = vld [vmem:[%s9150_s28 + $0xa40] sm:$0xff]  }
 0x20b   : > { %7861 = vmatpush3.bf16.msra.mxu0 %v8451_v61  ;;  %8020 = vmatprep.subr.bf16.mxu1 %v11914_v12  ;;  %v8707_v61 = vld [vmem:[#allocation3 + $0xf8] sm:$0xff]  ;;  %v5620_v3 = vpack.c.bf16 %v5613_v10, %v5613_v10  ;;  %v5541_v24 = vmul.f32 %v8708_v44, %v11326_v58  ;;  %v5538_v21 = vmul.f32 %v11456_v0, %v11326_v58  ;;  %v8467_v10 = vld [vmem:[%s9150_s28 + $0xa88] sm:$0xff]  }
 0x20c   : > { %7862 = vmatprep.subr.bf16.mxu0 %v8453_v16  ;;  %v5524_v60 = vmul.f32 %v8707_v61, %v11300_v8  ;;  %v8461_v16 = vld [vmem:[%s9150_s28 + $0xa38] sm:$0xff]   ;;  %v5511_v49 = vadd.f32 %v5504_v9, %v5494_v50  ;;  %v5516_v26 = vadd.f32 %v5509_v20, %v5499_v41  ;;  %v5543_v15 = vmul.f32 %v11472_v56, %v11326_v58  ;;  %v8470_v9 = vld [vmem:[%s9150_s28 + $0xb08] sm:$0xff]   ;;  %v8709_v20 = vld [vmem:[#allocation3 + $0x168] sm:$0xff] }
 0x20d   : > { %5368 = vmatmul.mubr.bf16.vlgmr.msra.gmra.mrb[48].mxu1 %v4894_v5  ;;  %v8469_v56 = vld [vmem:[%s9150_s28 + $0xa48] sm:$0xff]   ;;  %v8711_v44 = vld [vmem:[#allocation3 + $0x1d8] sm:$0xff] }
 0x20e   : > { %8021 = vmatpush3.bf16.msra.mxu1 %v8459_v54  ;;  %8022 = vmatprep.mubr.msk.bf16.mxu1 %vm8931_vm0, %v11914_v12  ;;  %v8466_v54 = vld [vmem:[%s9150_s28 + $0xb00] sm:$0xff]   ;;  %v5531_v6 = vadd.f32 %v5524_v60, %v5514_v31  ;;  %v5533_v34 = vadd.f32 %v5526_v27, %v5516_v26  ;;  %v5555_v31 = vmul.f32 %v11476_v51, %v11962_v36  ;;  %v8471_v60 = vld [vmem:[%s9150_s28 + $0xa90] sm:$0xff]  }
 0x20f   : > { %7863 = vmatpush3.bf16.msra.mxu0 %v8455_v28  ;;  %7916 = vmatprep.subr.bf16.mxu1 %v8462_v22  ;;  %v5572_v26 = vmul.f32 %v11507_v18, %v11964_v25  ;;  %v8477_v18 = vld [vmem:[%s9150_s28 + $0xa58] sm:$0xff]  }
 0x210   : > { %7892 = vmatprep.subr.bf16.mxu0 %v8457_v55  ;;  %v7614_v35 = vpop.f32.mrb[16].mxu1  ;;  %v5528_v55 = vadd.f32 %v5521_v19, %v5511_v49  ;;  %v5548_v41 = vadd.f32 %v5541_v24, %v5531_v6  ;;  %v8474_v19 = vld [vmem:[%s9150_s28 + $0xb10] sm:$0xff]   ;;  %v5592_v24 = vmul.f32 %v8711_v44, %v11387_v33 }
 0x211   : > { %v7615_v47 = vpop.f32.mrb[17].mxu1 }
 0x212   : > { %5328 = vmatmul.mubr.bf16.vlgmr.msra.gmra.mrb[48].mxu0 %v4892_v13  ;;  %v7616_v28 = vadd.f32 %v7615_v47, %v7614_v35  ;;  %v7617_v5 = vpop.f32.mrb[18].mxu1  ;;  %v5545_v35 = vadd.f32 %v5538_v21, %v5528_v55  ;;  %v5550_v47 = vadd.f32 %v5543_v15, %v5533_v34  ;;  %v8480_v55 = vld [vmem:[%s9150_s28 + $0xad8] sm:$0xff]   ;;  %v5594_v15 = vmul.f32 %v11530_v48, %v11387_v33 }
 0x213   : > { %7893 = vmatpush3.bf16.msra.mxu0 %v8458_v63  ;;  %v7618_v7 = vpop.f32.mrb[19].mxu1  ;;  %5407 = vmatprep.mubr.bf16.mxu0 %v4897_v23  ;;  %v5558_v63 = vmul.f32 %v8709_v20, %v11962_v36  ;;  %v8710_v5 = vld [vmem:[#allocation3 + $0x1a0] sm:$0xff]  ;;  %v8713_v20 = vld [vmem:[#allocation3 + $0x58] sm:$0xff] }
 0x214   : > { %7894 = vmatprep.subr.bf16.mxu0 %v8460_v46  ;;  %v5575_v51 = vmul.f32 %v8710_v5, %v11964_v25  ;;  %v5577_v7 = vmul.f32 %v11514_v57, %v11964_v25  ;;  %v11973_v57 = vld [vmem:[#allocation30_spill] sm:$0xff]  ;;  %v8487_v5 = vld [vmem:[%s9150_s28 + $0xae8] sm:$0xff]  }
 0x215   : > { %v7592_v22 = vpop.f32.mrb[16].mxu0  ;;  %8023 = vmatmul.mubr.msk.bf16.vlgmr.msra.gmra.mrb[52].mxu1 %vm929_vm1, %v4898_v39  ;;  %v5560_v39 = vmul.f32 %v11492_v43, %v11962_v36  ;;  %v8476_v43 = vld [vmem:[%s9150_s28 + $0xad0] sm:$0xff]   ;;  %v5462_v21 = vmul.f32 %v11973_v57, %v11235_v53  ;;  %v8494_v57 = vld [vmem:[%s9150_s28 + $0xbf8] sm:$0xff]  }
 0x216   : > { %v7593_v62 = vpop.f32.mrb[17].mxu0  ;;  %7917 = vmatpush3.bf16.msra.mxu1 %v8464_v42  ;;  %6054 = vmatprep.mubr.bf16.mxu1 %v5620_v3  ;;  %v8473_v42 = vld [vmem:[%s9150_s28 + $0xa50] sm:$0xff]   ;;  %v5562_v3 = vadd.f32 %v5555_v31, %v5545_v35 }
 0x217   : > { %7895 = vmatpush3.bf16.msra.mxu0 %v8461_v16  ;;  %v7594_v50 = vadd.f32 %v7593_v62, %v7592_v22  ;;  %v7595_v1 = vpop.f32.mrb[18].mxu0  ;;  %7918 = vmatprep.subr.bf16.mxu1 %v8466_v54  ;;  %v8472_v16 = vld [vmem:[%s9150_s28 + $0xac8] sm:$0xff]   ;;  %v5567_v27 = vadd.f32 %v5560_v39, %v5550_v47  ;;  %v8478_v54 = vld [vmem:[%s9150_s28 + $0xb18] sm:$0xff]  }
 0x218   : > { %7896 = vmatprep.subr.bf16.mxu0 %v8463_v14  ;;  %v7596_v13 = vpop.f32.mrb[19].mxu0  ;;  %v11599_v0 = vpop.f32.mrb[20].mxu1  ;;  %v8475_v14 = vld [vmem:[%s9150_s28 + $0xa98] sm:$0xff]   ;;  %v5579_v22 = vadd.f32 %v5572_v26, %v5562_v3  ;;  %v8479_v1 = vld [vmem:[%s9150_s28 + $0xaa0] sm:$0xff]  }
 0x219   : > { %v11602_v23 = vadd.f32 %v7616_v28, %v7594_v50  ;;  %v8000_v46 = vpop.f32.mrb[21].mxu1  ;;  %v5565_v28 = vadd.f32 %v5558_v63, %v5548_v41  ;;  %v11974_v62 = vld [vmem:[#allocation37_spill] sm:$0xff]  ;;  %v5584_v34 = vadd.f32 %v5577_v7, %v5567_v27  ;;  %v8482_v50 = vld [vmem:[%s9150_s28 + $0xb20] sm:$0xff]   ;;  %v5474_v63 = vmul.f32 %v8713_v20, %v11243_v59 }
 0x21a   : > { %7919 = vmatpush3.bf16.msra.mxu1 %v8468_v52  ;;  %v2544_v61 = vpop.f32.mrb[22].mxu1  ;;  %v5472_v52 = vmul.f32 %v11974_v62, %v11243_v59  ;;  %v11975_v46 = vld [vmem:[#allocation35_spill] sm:$0xff]  ;;  %v8714_v39 = vld [vmem:[#allocation3 + $0x90] sm:$0xff] }
 0x21b   : > { %7897 = vmatpush3.bf16.msra.mxu0 %v8465_v29  ;;  %7920 = vmatprep.subr.bf16.mxu1 %v8470_v9  ;;  %v8001_v49 = vpop.f32.mrb[23].mxu1  ;;  %v5582_v6 = vadd.f32 %v5575_v51, %v5565_v28  ;;  %v5589_v29 = vmul.f32 %v11523_v40, %v11387_v33  ;;  %v8481_v9 = vld [vmem:[%s9150_s28 + $0xa60] sm:$0xff]   ;;  %v5489_v35 = vmul.f32 %v11975_v46, %v11252_v17  ;;  %v8486_v61 = vld [vmem:[%s9150_s28 + $0xb28] sm:$0xff]   ;;  %v8488_v27 = vld [vmem:[%s9150_s28 + $0xb78] sm:$0xff]  }
 0x21c   : > { %7898 = vmatprep.subr.bf16.mxu0 %v8467_v10  ;;  %v8712_v10 = vld [vmem:[#allocation3 + $0x20] sm:$0xff]  ;;  %v5479_v48 = vadd.f32 %v5472_v52, %v5462_v21  ;;  %v5601_v31 = vadd.f32 %v5594_v15, %v5584_v34  ;;  %v5491_v49 = vmul.f32 %v8714_v39, %v11252_v17  ;;  %v8492_v21 = vld [vmem:[%s9150_s28 + $0xb80] sm:$0xff]  }
 0x21d   : > { %v5599_v40 = vadd.f32 %v5592_v24, %v5582_v6  ;;  %v5596_v13 = vadd.f32 %v5589_v29, %v5579_v22  ;;  %v5464_v41 = vmul.f32 %v8712_v10, %v11235_v53  ;;  %v8485_v53 = vld [vmem:[%s9150_s28 + $0xa68] sm:$0xff]   ;;  %v8491_v24 = vld [vmem:[%s9150_s28 + $0xaf0] sm:$0xff]   ;;  %v5523_v22 = vmul.f32 %v11412_v32, %v11300_v8  ;;  %v8717_v20 = vld [vmem:[#allocation3 + $0x138] sm:$0xff] }
 0x21e   : > { %7921 = vmatpush3.bf16.msra.mxu1 %v8472_v16  ;;  %v5496_v51 = vadd.f32 %v5489_v35, %v5479_v48  ;;  %v5610_v26 = vadd.f32 %v11423_v4, %v5601_v31  ;;  %v8716_v34 = vld [vmem:[#allocation3 + $0x100] sm:$0xff] }
 0x21f   : > { %7899 = vmatpush3.bf16.msra.mxu0 %v8469_v56  ;;  %7922 = vmatprep.subr.bf16.mxu1 %v8474_v19  ;;  %v8484_v56 = vld [vmem:[%s9150_s28 + $0xae0] sm:$0xff]   ;;  %v5608_v16 = vadd.f32 %v11423_v4, %v5599_v40  ;;  %v5605_v59 = vadd.f32 %v11423_v4, %v5596_v13  ;;  %v5481_v47 = vadd.f32 %v5474_v63, %v5464_v41  ;;  %v8495_v10 = vld [vmem:[%s9150_s28 + $0xb88] sm:$0xff]  }
 0x220   : > { %7900 = vmatprep.subr.bf16.mxu0 %v8471_v60  ;;  %v8483_v60 = vld [vmem:[%s9150_s28 + $0xaa8] sm:$0xff]   ;;  %v11976_v19 = vld [vmem:[#allocation26_spill] sm:$0xff]  ;;  %v5617_v29 = vmax.f32 %v5610_v26, 0.0  ;;  %v5525_v15 = vmul.f32 %v8716_v34, %v11300_v8  ;;  %v5542_v63 = vmul.f32 %v8717_v20, %v11326_v58  ;;  %v5574_v26 = vmul.f32 %v11480_v2, %v11964_v25  ;;  %v8508_v2 = vld [vmem:[%s9150_s28 + $0xbd0] sm:$0xff]  }
 0x221   : > { %v4889_v28 = vmax.f32 %v11976_v19, 0.0  ;;  %v5615_v7 = vmax.f32 %v5608_v16, 0.0  ;;  %v5612_v17 = vmax.f32 %v5605_v59, 0.0  ;;  %v8498_v13 = vld [vmem:[%s9150_s28 + $0xc00] sm:$0xff]   ;;  %v8718_v46 = vld [vmem:[#allocation3 + $0x160] sm:$0xff]  ;;  %v8499_v59 = vld [vmem:[%s9150_s28 + $0xb90] sm:$0xff]  }
 0x222   : > { %7923 = vmatpush3.bf16.msra.mxu1 %v8476_v43  ;;  %v8490_v43 = vld [vmem:[%s9150_s28 + $0xb30] sm:$0xff]   ;;  %v5624_v40 = vpack.c.bf16 %v5617_v29, %v5617_v29  ;;  %v5557_v35 = vmul.f32 %v8718_v46, %v11962_v36  ;;  %v8502_v16 = vld [vmem:[%s9150_s28 + $0xc08] sm:$0xff]   ;;  %v8719_v19 = vld [vmem:[#allocation3 + $0x170] sm:$0xff] }
 0x223   : > { %7901 = vmatpush3.bf16.msra.mxu0 %v8473_v42  ;;  %7924 = vmatprep.subr.bf16.mxu1 %v8478_v54  ;;  %v11977_v42 = vld [vmem:[#allocation28_spill] sm:$0xff]  ;;  %v5498_v54 = vadd.f32 %v5491_v49, %v5481_v47  ;;  %v4896_v44 = vpack.c.bf16 %v4889_v28, %v4889_v28  ;;  %v5622_v62 = vpack.c.bf16 %v5615_v7, %v5615_v7  ;;  %v8522_v20 = vld [vmem:[%s9150_s28 + $0xc38] sm:$0xff]  }
 0x224   : > { %7902 = vmatprep.subr.bf16.mxu0 %v8475_v14  ;;  %v5506_v3 = vmul.f32 %v11977_v42, %v11278_v30  ;;  %v8715_v14 = vld [vmem:[#allocation3 + $0xc8] sm:$0xff]  ;;  %v5559_v28 = vmul.f32 %v8719_v19, %v11962_v36  ;;  %v8504_v42 = vld [vmem:[%s9150_s28 + $0xbc8] sm:$0xff]   ;;  %v8503_v36 = vld [vmem:[%s9150_s28 + $0xb98] sm:$0xff]  }
 0x225   : > { %v5508_v6 = vmul.f32 %v8715_v14, %v11278_v30  ;;  %v5619_v30 = vpack.c.bf16 %v5612_v17, %v5612_v17  ;;  %v8506_v7 = vld [vmem:[%s9150_s28 + $0xc10] sm:$0xff]   ;;  %v8721_v29 = vld [vmem:[#allocation3 + $0x1e0] sm:$0xff] }
 0x226   : > { %7925 = vmatpush3.bf16.msra.mxu1 %v8480_v55  ;;  %v8489_v55 = vld [vmem:[%s9150_s28 + $0xb38] sm:$0xff]  }
 0x227   : > { %7903 = vmatpush3.bf16.msra.mxu0 %v8477_v18  ;;  %7926 = vmatprep.subr.bf16.mxu1 %v8482_v50  ;;  %v5513_v18 = vadd.f32 %v5506_v3, %v5496_v51  ;;  %v5515_v52 = vadd.f32 %v5508_v6, %v5498_v54  ;;  %v8496_v50 = vld [vmem:[%s9150_s28 + $0xbb8] sm:$0xff]   ;;  %v8720_v54 = vld [vmem:[#allocation3 + $0x1a8] sm:$0xff] }
 0x228   : > { %7904 = vmatprep.subr.bf16.mxu0 %v8479_v1  ;;  %v5540_v1 = vmul.f32 %v11441_v37, %v11326_v58  ;;  %v8500_v37 = vld [vmem:[%s9150_s28 + $0xbc0] sm:$0xff]   ;;  %v5576_v14 = vmul.f32 %v8720_v54, %v11964_v25 }
 0x229   : > { %v5530_v32 = vadd.f32 %v5523_v22, %v5513_v18  ;;  %v5532_v8 = vadd.f32 %v5525_v15, %v5515_v52  ;;  %v8510_v18 = vld [vmem:[%s9150_s28 + $0xc18] sm:$0xff]   ;;  %v8507_v25 = vld [vmem:[%s9150_s28 + $0xba0] sm:$0xff]   ;;  %v8518_v15 = vld [vmem:[%s9150_s28 + $0xc28] sm:$0xff]  }
 0x22a   : > { %7927 = vmatpush3.bf16.msra.mxu1 %v8484_v56  ;;  %v8516_v52 = vld [vmem:[%s9150_s28 + $0xbe0] sm:$0xff]  }
 0x22b   : > { %7905 = vmatpush3.bf16.msra.mxu0 %v8481_v9  ;;  %7928 = vmatprep.subr.bf16.mxu1 %v8486_v61  ;;  %v8493_v9 = vld [vmem:[%s9150_s28 + $0xb40] sm:$0xff]   ;;  %v5547_v48 = vadd.f32 %v5540_v1, %v5530_v32  ;;  %v5549_v49 = vadd.f32 %v5542_v63, %v5532_v8  ;;  %v8521_v8 = vld [vmem:[%s9150_s28 + $0xbf0] sm:$0xff]  }
 0x22c   : > { %7906 = vmatprep.subr.bf16.mxu0 %v8483_v60  ;;  %v8497_v60 = vld [vmem:[%s9150_s28 + $0xb48] sm:$0xff]  }
 0x22d   : > { %v5564_v3 = vadd.f32 %v5557_v35, %v5547_v48  ;;  %v5566_v17 = vadd.f32 %v5559_v28, %v5549_v49 }
 0x22e   : > { %7929 = vmatpush3.bf16.msra.mxu1 %v8487_v5 }
 0x22f   : > { %7907 = vmatpush3.bf16.msra.mxu0 %v8485_v53  ;;  %7930 = vmatprep.subr.bf16.mxu1 %v8490_v43  ;;  %v5583_v22 = vadd.f32 %v5576_v14, %v5566_v17 }
 0x230   : > { %7938 = vmatprep.subr.bf16.mxu0 %v8488_v27 }
 0x232   : > { %5408 = vmatmul.mubr.bf16.vlgmr.msra.gmra.mrb[52].mxu0 %v4896_v44  ;;  %7931 = vmatpush3.bf16.msra.mxu1 %v8491_v24  ;;  %v5591_v44 = vmul.f32 %v11500_v45, %v11387_v33  ;;  %v8505_v24 = vld [vmem:[%s9150_s28 + $0xb58] sm:$0xff]   ;;  %v8509_v45 = vld [vmem:[%s9150_s28 + $0xb60] sm:$0xff]  }
 0x233   : > { %7939 = vmatpush3.bf16.msra.mxu0 %v8489_v55  ;;  %7960 = vmatprep.subr.bf16.mxu1 %v8494_v57  ;;  %v8512_v55 = vld [vmem:[%s9150_s28 + $0xbd8] sm:$0xff]  }
 0x234   : > { %7940 = vmatprep.subr.bf16.mxu0 %v8492_v21  ;;  %6094 = vmatprep.mubr.bf16.mxu0 %v5622_v62  ;;  %v8514_v21 = vld [vmem:[%s9150_s28 + $0xc20] sm:$0xff]   ;;  %v8511_v62 = vld [vmem:[%s9150_s28 + $0xba8] sm:$0xff]  }
 0x235   : > { %v7636_v41 = vpop.f32.mrb[20].mxu0  ;;  %6055 = vmatmul.mubr.bf16.vlgmr.msra.gmra.mrb[56].mxu1 %v5619_v30 }
 0x236   : > { %v7637_v56 = vpop.f32.mrb[21].mxu0  ;;  %7961 = vmatpush3.bf16.msra.mxu1 %v8496_v50  ;;  %6134 = vmatprep.mubr.bf16.mxu1 %v5624_v40  ;;  %v8515_v50 = vld [vmem:[%s9150_s28 + $0xbb0] sm:$0xff]   ;;  %v8519_v40 = vld [vmem:[%s9150_s28 + $0xbe8] sm:$0xff]  }
 0x237   : > { %7941 = vmatpush3.bf16.msra.mxu0 %v8493_v9  ;;  %v7638_v31 = vadd.f32 %v7637_v56, %v7636_v41  ;;  %v7639_v61 = vpop.f32.mrb[22].mxu0  ;;  %7962 = vmatprep.subr.bf16.mxu1 %v8498_v13  ;;  %v8517_v9 = vld [vmem:[%s9150_s28 + $0xb70] sm:$0xff]  }
 0x238   : > { %7942 = vmatprep.subr.bf16.mxu0 %v8495_v10  ;;  %v7640_v53 = vpop.f32.mrb[23].mxu0  ;;  %v7660_v58 = vpop.f32.mrb[24].mxu1  ;;  %v8520_v13 = vld [vmem:[%s9150_s28 + $0xc30] sm:$0xff]  }
 0x239   : > { %v2502_v47 = vadd.f32 %v7638_v31, %v11602_v23  ;;  %v7661_v39 = vpop.f32.mrb[25].mxu1  ;;  %v8501_v23 = vld [vmem:[%s9150_s28 + $0xb50] sm:$0xff]  }
 0x23a   : > { %7963 = vmatpush3.bf16.msra.mxu1 %v8500_v37  ;;  %v11675_v5 = vadd.f32 %v7661_v39, %v7660_v58  ;;  %v7663_v51 = vpop.f32.mrb[26].mxu1 }
 0x23b   : > { %v2542_v43 = vadd.f32 %v11599_v0, %v2502_v47  ;;  %7943 = vmatpush3.bf16.msra.mxu0 %v8497_v60  ;;  %v7664_v27 = vpop.f32.mrb[27].mxu1  ;;  %7964 = vmatprep.subr.bf16.mxu1 %v8502_v16  ;;  %v5581_v0 = vadd.f32 %v5574_v26, %v5564_v3 }
 0x23c   : > { %7944 = vmatprep.subr.bf16.mxu0 %v8499_v59 }
 0x23d   : > { %v11686_v6 = vadd.f32 %v2542_v43, %v11496_v11  ;;  %v5593_v11 = vmul.f32 %v8721_v29, %v11387_v33  ;;  %v5598_v57 = vadd.f32 %v5591_v44, %v5581_v0  ;;  %v8513_v33 = vld [vmem:[%s9150_s28 + $0xb68] sm:$0xff]  }
 0x23e   : > { %7965 = vmatpush3.bf16.msra.mxu1 %v8504_v42 }
 0x23f   : > { %7945 = vmatpush3.bf16.msra.mxu0 %v8501_v23  ;;  %7966 = vmatprep.subr.bf16.mxu1 %v8506_v7  ;;  %v5600_v30 = vadd.f32 %v5593_v11, %v5583_v22  ;;  %v5607_v34 = vadd.f32 %v11423_v4, %v5598_v57 }
 0x240   : > { %7946 = vmatprep.subr.bf16.mxu0 %v8503_v36 }
 0x241   : > { %v5609_v32 = vadd.f32 %v11423_v4, %v5600_v30  ;;  %v5614_v1 = vmax.f32 %v5607_v34, 0.0  ;;  %v5618_v4 = vmax.f32 %v11433_v38, 0.0 }
 0x242   : > { %7967 = vmatpush3.bf16.msra.mxu1 %v8508_v2 }
 0x243   : > { %7947 = vmatpush3.bf16.msra.mxu0 %v8505_v24  ;;  %7968 = vmatprep.subr.bf16.mxu1 %v8510_v18  ;;  %v5616_v10 = vmax.f32 %v5609_v32, 0.0  ;;  %v5621_v41 = vpack.c.bf16 %v5614_v1, %v5614_v1  ;;  %v5625_v48 = vpack.c.bf16 %v5618_v4, %v5618_v4 }
 0x244   : > { %7948 = vmatprep.subr.bf16.mxu0 %v8507_v25 }
 0x245   : > { %v5623_v63 = vpack.c.bf16 %v5616_v10, %v5616_v10 }
 0x246   : > { %7969 = vmatpush3.bf16.msra.mxu1 %v8512_v55 }
 0x247   : > { %7949 = vmatpush3.bf16.msra.mxu0 %v8509_v45  ;;  %7970 = vmatprep.subr.bf16.mxu1 %v8514_v21 }
 0x248   : > { %7950 = vmatprep.subr.bf16.mxu0 %v8511_v62 }
 0x24a   : > { %7971 = vmatpush3.bf16.msra.mxu1 %v8516_v52 }
 0x24b   : > { %7951 = vmatpush3.bf16.msra.mxu0 %v8513_v33  ;;  %7972 = vmatprep.subr.bf16.mxu1 %v8518_v15 }
 0x24c   : > { %7952 = vmatprep.subr.bf16.mxu0 %v8515_v50 }
 0x24e   : > { %7973 = vmatpush3.bf16.msra.mxu1 %v8519_v40 }
 0x24f   : > { %7953 = vmatpush3.bf16.msra.mxu0 %v8517_v9  ;;  %7974 = vmatprep.subr.bf16.mxu1 %v8520_v13 }
 0x250   : > { %8026 = vmatprep.subr.bf16.mxu0 %v11914_v12 }
 0x252   : > { %6095 = vmatmul.mubr.bf16.vlgmr.msra.gmra.mrb[56].mxu0 %v5621_v41  ;;  %7975 = vmatpush3.bf16.msra.mxu1 %v8521_v8 }
 0x253   : > { %8027 = vmatpush3.bf16.msra.mxu0 %v8522_v20  ;;  %8028 = vmatprep.mubr.msk.bf16.mxu0 %vm8931_vm0, %v11914_v12 }
 0x255   : > { %v7682_v56 = vpop.f32.mrb[24].mxu0  ;;  %6135 = vmatmul.mubr.bf16.vlgmr.msra.gmra.mrb[60].mxu1 %v5623_v63 }
 0x256   : > { %v7683_v37 = vpop.f32.mrb[25].mxu0 }
 0x257   : > { %v7684_v46 = vadd.f32 %v7683_v37, %v7682_v56  ;;  %v7685_v35 = vpop.f32.mrb[26].mxu0 }
 0x258   : > { %v7686_v31 = vpop.f32.mrb[27].mxu0  ;;  %v7704_v61 = vpop.f32.mrb[28].mxu1 }
 0x259   : > { %v3189_v60 = vadd.f32 %v7684_v46, %v11675_v5  ;;  %v7705_v16 = vpop.f32.mrb[29].mxu1 }
 0x25a   : > { %8029 = vmatmul.mubr.msk.bf16.vlgmr.msra.gmra.mrb[60].mxu0 %vm929_vm1, %v5625_v48  ;;  %v7706_v53 = vadd.f32 %v7705_v16, %v7704_v61  ;;  %v7707_v58 = vpop.f32.mrb[30].mxu1 }
 0x25b   : > { %v7708_v38 = vpop.f32.mrb[31].mxu1 }
 0x25c   : > { %v3229_v59 = vadd.f32 %v7706_v53, %v3189_v60 }
 0x25d   : > { %v3268_v47 = vpop.f32.mrb[28].mxu0 }
 0x25e   : > { %v3269_v39 = vadd.f32 %v3268_v47, %v3229_v59  ;;  %v8006_v12 = vpop.f32.mrb[29].mxu0 }
 0x25f   : > { %v3271_v49 = vpop.f32.mrb[30].mxu0 }
 0x260   : > { %v3274_v19 = vadd.f32 %v3269_v39, %v11686_v6  ;;  %v8007_v28 = vpop.f32.mrb[31].mxu0 }
 0x278   : > { %v7750_v51 = vpop.f32.mrb[32].mxu1 }
 0x279   : > { %v7751_v42 = vpop.f32.mrb[33].mxu1 }
 0x27a   : > { %v7752_v3 = vadd.f32 %v7751_v42, %v7750_v51  ;;  %v7753_v26 = vpop.f32.mrb[34].mxu1 }
 0x27b   : > { %v7754_v43 = vpop.f32.mrb[35].mxu1 }
 0x27d   : > { %v7728_v5 = vpop.f32.mrb[32].mxu0 }
 0x27e   : > { %v7729_v23 = vpop.f32.mrb[33].mxu0 }
 0x27f   : > { %v7730_v27 = vadd.f32 %v7729_v23, %v7728_v5  ;;  %v7731_v7 = vpop.f32.mrb[34].mxu0 }
 0x280   : > { %v7732_v36 = vpop.f32.mrb[35].mxu0  ;;  %v3995_v17 = vpop.f32.mrb[36].mxu1 }
 0x281   : > { %v3916_v54 = vadd.f32 %v7752_v3, %v7730_v27  ;;  %v8012_v14 = vpop.f32.mrb[37].mxu1 }
 0x282   : > { %v3998_v2 = vpop.f32.mrb[38].mxu1 }
 0x283   : > { %v8013_v0 = vpop.f32.mrb[39].mxu1 }
 0x29d   : > { %v7772_v44 = vpop.f32.mrb[36].mxu0 }
 0x29e   : > { %v7773_v24 = vpop.f32.mrb[37].mxu0 }
 0x29f   : > { %v7774_v18 = vadd.f32 %v7773_v24, %v7772_v44  ;;  %v7775_v6 = vpop.f32.mrb[38].mxu0 }
 0x2a0   : > { %v7776_v25 = vpop.f32.mrb[39].mxu0  ;;  %v7796_v22 = vpop.f32.mrb[40].mxu1 }
 0x2a1   : > { %v3956_v29 = vadd.f32 %v7774_v18, %v3916_v54  ;;  %v7797_v11 = vpop.f32.mrb[41].mxu1 }
 0x2a2   : > { %v7798_v55 = vadd.f32 %v7797_v11, %v7796_v22  ;;  %v7799_v57 = vpop.f32.mrb[42].mxu1 }
 0x2a3   : > { %v3996_v45 = vadd.f32 %v3995_v17, %v3956_v29  ;;  %v7800_v21 = vpop.f32.mrb[43].mxu1 }
 0x2a5   : > { %v4001_v62 = vadd.f32 %v3996_v45, %v3274_v19 }
 0x2bd   : > { %v7818_v30 = vpop.f32.mrb[40].mxu0 }
 0x2be   : > { %v7819_v52 = vpop.f32.mrb[41].mxu0 }
 0x2bf   : > { %v7820_v34 = vadd.f32 %v7819_v52, %v7818_v30  ;;  %v7821_v33 = vpop.f32.mrb[42].mxu0  ;;  %v7413_v52 = vld [vmem:[#allocation12] ss:$0 sm:$0xff] (!%p7412_p12) }
 0x2c0   : > { %v7822_v15 = vpop.f32.mrb[43].mxu0  ;;  %v7840_v50 = vpop.f32.mrb[44].mxu1 }
 0x2c1   : > { %v4643_v32 = vadd.f32 %v7820_v34, %v7798_v55  ;;  %v7841_v1 = vpop.f32.mrb[45].mxu1 }
 0x2c2   : > { %v7842_v40 = vadd.f32 %v7841_v1, %v7840_v50  ;;  %v7843_v9 = vpop.f32.mrb[46].mxu1 }
 0x2c3   : > { %v7844_v13 = vpop.f32.mrb[47].mxu1 }
 0x2c4   : > { %v4683_v10 = vadd.f32 %v7842_v40, %v4643_v32 }
 0x2c5   : > { %v4722_v41 = vpop.f32.mrb[44].mxu0 }
 0x2c6   : > { %v4723_v8 = vadd.f32 %v4722_v41, %v4683_v10  ;;  %v8018_v20 = vpop.f32.mrb[45].mxu0 }
 0x2c7   : > { %v4725_v63 = vpop.f32.mrb[46].mxu0 }
 0x2c8   : > { %v4728_v4 = vadd.f32 %v4723_v8, %v4001_v62  ;;  %v8019_v56 = vpop.f32.mrb[47].mxu0 }
 0x2e0   : > { %v7886_v37 = vpop.f32.mrb[48].mxu1 }
 0x2e1   : > { %v7887_v48 = vpop.f32.mrb[49].mxu1 }
 0x2e2   : > { %v7888_v46 = vadd.f32 %v7887_v48, %v7886_v37  ;;  %v7889_v35 = vpop.f32.mrb[50].mxu1 }
 0x2e3   : > { %v7890_v31 = vpop.f32.mrb[51].mxu1 }
 0x2e5   : > { %v7864_v61 = vpop.f32.mrb[48].mxu0 }
 0x2e6   : > { %v7865_v60 = vpop.f32.mrb[49].mxu0 }
 0x2e7   : > { %v7866_v16 = vadd.f32 %v7865_v60, %v7864_v61  ;;  %v7867_v53 = vpop.f32.mrb[50].mxu0 }
 0x2e8   : > { %v7868_v58 = vpop.f32.mrb[51].mxu0  ;;  %v5449_v38 = vpop.f32.mrb[52].mxu1 }
 0x2e9   : > { %v5370_v59 = vadd.f32 %v7888_v46, %v7866_v16  ;;  %v8024_v47 = vpop.f32.mrb[53].mxu1 }
 0x2ea   : > { %v5452_v39 = vpop.f32.mrb[54].mxu1 }
 0x2eb   : > { %v8025_v12 = vpop.f32.mrb[55].mxu1 }
 0x305   : > { %v7908_v49 = vpop.f32.mrb[52].mxu0 }
 0x306   : > { %v7909_v19 = vpop.f32.mrb[53].mxu0 }
 0x307   : > { %v7910_v28 = vadd.f32 %v7909_v19, %v7908_v49  ;;  %v7911_v51 = vpop.f32.mrb[54].mxu0 }
 0x308   : > { %v7912_v42 = vpop.f32.mrb[55].mxu0  ;;  %v7932_v3 = vpop.f32.mrb[56].mxu1 }
 0x309   : > { %v5410_v26 = vadd.f32 %v7910_v28, %v5370_v59  ;;  %v7933_v43 = vpop.f32.mrb[57].mxu1 }
 0x30a   : > { %v7934_v5 = vadd.f32 %v7933_v43, %v7932_v3  ;;  %v7935_v23 = vpop.f32.mrb[58].mxu1 }
 0x30b   : > { %v5450_v27 = vadd.f32 %v5449_v38, %v5410_v26  ;;  %v7936_v7 = vpop.f32.mrb[59].mxu1 }
 0x30d   : > { %v5455_v36 = vadd.f32 %v5450_v27, %v4728_v4 }
 0x325   : > { %v7954_v17 = vpop.f32.mrb[56].mxu0 }
 0x326   : > { %v7955_v54 = vpop.f32.mrb[57].mxu0 }
 0x327   : > { %v7956_v14 = vadd.f32 %v7955_v54, %v7954_v17  ;;  %v7957_v2 = vpop.f32.mrb[58].mxu0 }
 0x328   : > { %v7958_v0 = vpop.f32.mrb[59].mxu0  ;;  %v7976_v44 = vpop.f32.mrb[60].mxu1 }
 0x329   : > { %v6097_v24 = vadd.f32 %v7956_v14, %v7934_v5  ;;  %v7977_v18 = vpop.f32.mrb[61].mxu1 }
 0x32a   : > { %v7978_v6 = vadd.f32 %v7977_v18, %v7976_v44  ;;  %v7979_v25 = vpop.f32.mrb[62].mxu1 }
 0x32b   : > { %v7980_v22 = vpop.f32.mrb[63].mxu1 }
 0x32c   : > { %v6137_v29 = vadd.f32 %v7978_v6, %v6097_v24  ;;  %6187 = sbr.rel (%p7412_p12) target bundleno = 831 (0x33f), region = 68 }
 0x32d   : > { %v6176_v11 = vpop.f32.mrb[60].mxu0 }
 0x32e   : > { %v6177_v55 = vadd.f32 %v6176_v11, %v6137_v29  ;;  %v8030_v57 = vpop.f32.mrb[61].mxu0 }
 0x32f   : > { %v6179_v45 = vpop.f32.mrb[62].mxu0 }
 0x330   : > { %v6182_v21 = vadd.f32 %v6177_v55, %v5455_v36  ;;  %v8031_v62 = vpop.f32.mrb[63].mxu0 }
 0x332   : > { %6183 = vst [vmem:[#allocation2] sm:$0xff] %v6182_v21 }
 0x339   : > { %v6188_v30 = vld [vmem:[#allocation2] sm:$0xff] }
 0x33a   : > { %v6196_v34 = vadd.f32 %v7413_v52, %v6188_v30 }
 0x33c   : > { %v6197_v33 = vmax.f32 %v6196_v34, 0.0 }
 0x33e   : > { %6198 = vst [vmem:[#allocation13] sm:$0xff] %v6197_v33 }
 0x33f PF: > { %p8083_p0 = scmp.eq.s32.totalorder %s8982_s22, 1  ;;  %s8932_s28 = smov [#allocation13]  }
 0x340   : > { %s6206_s26 = sshll.u32 %s8932_s28, 4  ;;  %s6207_s26 = int_to_ptr.vmem [resolvable:$true] %s6206_s26 }
 0x341   : > { %s8836_s23 = scalar_lea.vmem %s6207_s26, 128  ;;  %p8843_p3 = scmp.lt.s32.totalorder %s6207_s26, %s6207_s26 }
 0x342   : > { %p8837_p2 = scmp.ne.s32.totalorder %s6207_s26, %s8836_s23  ;;  %p8844_p7 = scmp.lt.s32.totalorder %s8836_s23, %s8836_s23 }
 0x344   : > { %p8838_p6 = pnand %p8837_p2, %p8083_p0  ;;  %p8845_p10 = por %p8844_p7, %p8843_p3 }
 0x346   : > { %p8839_p13 = pneg %p8838_p6 }
 0x348   : > { %p8846_p9 = pnand %p8845_p10, %p8839_p13 }
 0x34a   : > { %8849 = shalt.err (!%p8846_p9)
}
 0x34b   : > { %s8850_s16 = scalar_lea.hbm %s11759_s5, 128 }
 0x34c   : > { %p8851_p5 = scmp.ne.s32.totalorder %s11759_s5, %s8850_s16  ;;  %p8856_p4 = scmp.lt.u32.totalorder %s8850_s16, %s11759_s5 }
 0x34e   : > { %p8852_p11 = pnand %p8851_p5, %p8083_p0 }
 0x350   : > { %p8853_p1 = pneg %p8852_p11 }
 0x352   : > { %p8858_p8 = pnand %p8856_p4, %p8853_p1 }
 0x354   : > { %8861 = shalt.err (!%p8858_p8)
}
 0x355   : > { %8054 = dma.vmem_to_hbm [thread:$0]  (%p8083_p0), %s6207_s26, 128, %s11759_s5, [#allocation5]  }
 0x356   : > { %8899 = dma.done.wait (%p8083_p0), [#allocation5], 128  }
 0x357   : > { %8901 = vsyncadd (%p8083_p0), [#allocation5], 4294967168 }
 0x358 PF: > { %p19_p12 = scmp.ge.s32.totalorder %s9080_s10, 4   ;;  %s11978_s18 = smov %s8908_s19 }
 0x359   : > { %s11979_s19 = smov %s8912_s20  ;;  %s11980_s20 = smov %s9089_s29 }
 0x35a   : > { %s11981_s21 = smov %s9080_s10  ;;  %21 = sbr.rel (!%p19_p12) target bundleno = 7 (0x7), region = 119 }
 0x361   :  { %6219 = vsyncpa [#allocation4], 1 }
 0x362   :  { %6221 = vsyncpa [#allocation4 + $0x1], 1 }
 0x363   :  { %6222 = vsyncpa [#allocation11], 1 }
 0x364   :  { %6224 = vsyncpa [#allocation11 + $0x1], 1 }
 0x365   :  { %6225 = vsyncpa [#allocation5], 1 }
 0x366   :  { %6227 = vsyncpa [#allocation5 + $0x1], 1 }
 0x367   :  { %6228 = vsyncpa [#allocation6], 1 }
 0x368   :  { %6230 = vsyncpa [#allocation6 + $0x1], 1 }
 0x369   :  { %6231 = vsyncpa [#allocation7], 1 }
 0x36a   :  { %6233 = vsyncpa [#allocation7 + $0x1], 1 }

</bundles_post_ra>
